<compile_context>
chip_gen: v6e
topology: v6e:2x2x1
jax: 0.10.0
libtpu: 0.0.40
codegen_flags: <defaults>
</compile_context>

<pallas_src>
import functools

import jax
import jax.numpy as jnp
from jax.experimental import pallas as pl
from jax.experimental.pallas import tpu as pltpu


# ----------------------------- Pallas kernels ------------------------------ #

def feast_conv_kernel(expa_ref, expb_ref, adj_ref, dinv_ref, xs_ref, w_ref,
                      b_ref, o_ref, *, num_heads, out_channels):
    """FeaStConv for one (target-tile i, source-tile j) grid point.

    Grid = (num_i, num_j); j (source axis) is the reduction axis (last,
    "arbitrary"); o_ref is the resident accumulator for the current i tile.
    """
    j = pl.program_id(1)

    @pl.when(j == 0)
    def _():
        o_ref[...] = jnp.zeros_like(o_ref)

    expa = expa_ref[...]                                  # [TN, H] f32 (targets)
    expb = expb_ref[...]                                  # [H, TJ] f32 (sources)

    # Rank-1 factorized head softmax: logits l[i,j,h] = u.(x_i - x_j) + c, so
    # exp(l - shift) = expa[i,h] * expb[h,j].  Denominator via H outer-product
    # accumulations (VALU; K=H is too small to be worth an MXU push).
    prods = [expa[:, h:h + 1] * expb[h:h + 1, :] for h in range(num_heads)]
    denom = prods[0]
    for h in range(1, num_heads):
        denom = denom + prods[h]
    # adjacency mask (bf16) folded once into 1/denom — no full f32 upcast pass.
    scale = pl.reciprocal(denom, approx=True) * adj_ref[...]        # [TN, TJ]

    # Fused per-head linear transform: one lane-dense MXU matmul, one bf16 cast.
    xl = jnp.dot(xs_ref[...], w_ref[...],
                 preferred_element_type=jnp.float32)                # [TJ, H*C]
    xl_b = xl.astype(jnp.bfloat16)

    # Per-head weighted aggregation (bf16 operands, f32 accumulation).
    # TODO(synk): could be fused into one stacked-K [TN, H*TJ] @ [H*TJ, C]
    # matmul with VMEM scratch; kept as an H-way loop for simplicity (H small).
    acc = jnp.zeros(o_ref.shape, jnp.float32)
    for h in range(num_heads):
        attn = prods[h] * scale                                     # [TN, TJ]
        acc = acc + jnp.dot(attn.astype(jnp.bfloat16),
                            xl_b[:, h * out_channels:(h + 1) * out_channels],
                            preferred_element_type=jnp.float32)
    o_ref[...] += acc

    @pl.when(j == pl.num_programs(1) - 1)
    def _():
        # mean aggregation (1/deg) + bias
        o_ref[...] = o_ref[...] * dinv_ref[...] + b_ref[...]


def relu_bn_kernel(x_ref, gamma_ref, beta_ref, o_ref, *, n_valid):
    """Fused ReLU + BatchNorm1d (training-mode stats over the n_valid real rows).

    Padded rows (>= n_valid) are excluded from the statistics; their outputs are
    junk but are masked out downstream by the adjacency (source pad columns = 0).
    """
    x = jnp.maximum(x_ref[...], 0.0)                                # ReLU
    rows = jax.lax.broadcasted_iota(jnp.int32, x.shape, 0)
    mask = (rows < n_valid).astype(jnp.float32)
    inv_n = 1.0 / n_valid
    mean = jnp.sum(x * mask, axis=0, keepdims=True) * inv_n
    xc = (x - mean) * mask
    var = jnp.sum(xc * xc, axis=0, keepdims=True) * inv_n           # biased var
    y = (x - mean) * jax.lax.rsqrt(var + 1e-5) * gamma_ref[...] + beta_ref[...]
    o_ref[...] = y.astype(o_ref.dtype)


# ------------------------------- wrappers ---------------------------------- #

def _tpu_budget():
    """Generation-aware (vmem_limit_bytes, max source tile)."""
    vmem_bytes = 128 * 1024 * 1024
    try:
        info = pltpu.get_tpu_info()
        vmem_bytes = int(getattr(info, "vmem_capacity_bytes", vmem_bytes))
    except Exception:
        pass
    if vmem_bytes <= 64 * 1024 * 1024:          # v7x-class: 64 MiB per TensorCore
        return 40 * 1024 * 1024, 256
    return 48 * 1024 * 1024, 512                # v5e / v6e: 128 MiB VMEM


def _tiling(n, tj_max, align=256):
    """Source-node tile TJ (multiple of `align`) and padded node count."""
    if n <= tj_max:
        tj = pl.cdiv(n, align) * align
        return tj, tj
    n_pad = pl.cdiv(n, tj_max) * tj_max
    return tj_max, n_pad


def _attention_factors(x_pad_b, u_b, c):
    """expA=[N_pad,H] (exp of target logit part + c), expB^T=[H,N_pad] (sources).

    Tiny wrapper matmul + exps; ratio is shift-invariant so softmax is exact."""
    q = jnp.dot(x_pad_b, u_b, preferred_element_type=jnp.float32)   # [N_pad, H]
    qc = q + c
    expa = jnp.exp(qc - jnp.max(qc, axis=1, keepdims=True))
    nq = -q
    expb = jnp.exp(nq - jnp.max(nq, axis=1, keepdims=True))
    return expa, expb.T


def feast_conv(x_pad_b, adj_pad, deg_inv, expa, expbt, p, num_heads,
               out_channels, tn, tj, vmem_limit):
    n_pad, fin = x_pad_b.shape
    h, c = num_heads, out_channels
    num_i = n_pad // tn
    num_j = n_pad // tj

    kernel = functools.partial(feast_conv_kernel, num_heads=h, out_channels=c)
    return pl.pallas_call(
        kernel,
        out_shape=jax.ShapeDtypeStruct((n_pad, c), jnp.float32),
        grid_spec=pltpu.PrefetchScalarGridSpec(
            num_scalar_prefetch=0,
            grid=(num_i, num_j),
            in_specs=[
                pl.BlockSpec((tn, h), lambda i, j: (i, 0)),      # expA (targets)
                pl.BlockSpec((h, tj), lambda i, j: (0, j)),      # expB^T (sources)
                pl.BlockSpec((tn, tj), lambda i, j: (i, j)),     # adjacency (bf16)
                pl.BlockSpec((tn, 1), lambda i, j: (i, 0)),      # 1 / deg
                pl.BlockSpec((tj, fin), lambda i, j: (j, 0)),    # x (sources)
                pl.BlockSpec((fin, h * c), lambda i, j: (0, 0)), # W_all [Fin, H*C]
                pl.BlockSpec((1, c), lambda i, j: (0, 0)),       # bias
            ],
            out_specs=pl.BlockSpec((tn, c), lambda i, j: (i, 0)),
        ),
        compiler_params=pltpu.CompilerParams(
            dimension_semantics=("parallel", "arbitrary"),
            vmem_limit_bytes=vmem_limit,
        ),
    )(expa, expbt, adj_pad, deg_inv, x_pad_b, p["W"], p["b"])


def relu_bn(y, gamma, beta, n_valid):
    """Separate cheap ReLU+BN pass; outputs bf16 padded for the next layer."""
    n_pad, c = y.shape
    kernel = functools.partial(relu_bn_kernel, n_valid=n_valid)
    # TODO(synk): single-block over [n_pad, C]; tile with partial stats for very
    # large graphs (fine for realistic mesh sizes since C is small).
    return pl.pallas_call(
        kernel,
        out_shape=jax.ShapeDtypeStruct((n_pad, c), jnp.bfloat16),
        grid_spec=pltpu.PrefetchScalarGridSpec(
            num_scalar_prefetch=0,
            grid=(1,),
            in_specs=[
                pl.BlockSpec((n_pad, c), lambda i: (0, 0)),
                pl.BlockSpec((1, c), lambda i: (0, 0)),
                pl.BlockSpec((1, c), lambda i: (0, 0)),
            ],
            out_specs=pl.BlockSpec((n_pad, c), lambda i: (0, 0)),
        ),
    )(y, gamma, beta)


# --------------------------- parameters & model ----------------------------- #

def init_feast_params(key, in_ch, out_ch, num_heads):
    # Matches FeatureSteeredConv.reset_parameters():
    #   linear.weight [H*C, Fin] ~ U(0,1);  u.weight [H, Fin] ~ U(0,1)
    #   c ~ N(0, 0.1);  bias ~ N(0, 0.1)
    kw, ku, kc, kb = jax.random.split(key, 4)
    lin_w = jax.random.uniform(kw, (num_heads * out_ch, in_ch), jnp.float32)
    u_w = jax.random.uniform(ku, (num_heads, in_ch), jnp.float32)
    c = 0.1 * jax.random.normal(kc, (num_heads,), jnp.float32)
    b = 0.1 * jax.random.normal(kb, (out_ch,), jnp.float32)
    # torch's linear(x).view(-1, H, C): output element h*C + ci belongs to head h,
    # so lin_w.T is already head-major on the lane axis -> fused [Fin, H*C].
    return {
        "W": lin_w.T.astype(jnp.bfloat16),      # [Fin, H*C]
        "U": u_w.T.astype(jnp.bfloat16),        # [Fin, H]
        "c": c.reshape(1, num_heads),           # f32
        "b": b.reshape(1, out_ch),              # f32
    }


def init_encoder_params(key, in_features, conv_channels, num_heads):
    channels = [in_features] + list(conv_channels)
    keys = jax.random.split(key, len(conv_channels))
    params = []
    for li, (cin, cout) in enumerate(zip(channels[:-1], channels[1:])):
        p = init_feast_params(keys[li], cin, cout, num_heads)
        if li < len(conv_channels) - 1:
            # BatchNorm1d default init: weight (gamma) = 1, bias (beta) = 0
            p["gamma"] = jnp.ones((1, cout), jnp.float32)
            p["beta"] = jnp.zeros((1, cout), jnp.float32)
        params.append(p)
    return params


def build_adjacency(edge_index, num_nodes):
    """Dense adjacency adj[dst, src] = 1; self-loops removed then re-added.

    Note: duplicate edges collapse to a single entry (diverges from PyG only
    for multigraphs)."""
    src, dst = edge_index[0], edge_index[1]
    adj = jnp.zeros((num_nodes, num_nodes), jnp.float32).at[dst, src].set(1.0)
    eye = jnp.eye(num_nodes, dtype=jnp.float32)
    return adj * (1.0 - eye) + eye


def graph_feature_encoder(x, edge_index, params, num_heads, conv_channels):
    """Forward pass of GraphFeatureEncoder (conv [+ relu + bn] per layer)."""
    n = x.shape[0]
    vmem_limit, tj_max = _tpu_budget()
    tj, n_pad = _tiling(n, tj_max)
    tn = min(tj, n_pad)

    adj = build_adjacency(edge_index, n)                         # [N, N] f32
    adj_pad = jnp.zeros((n_pad, n_pad), jnp.bfloat16).at[:n, :n].set(
        adj.astype(jnp.bfloat16))
    deg = jnp.sum(adj, axis=1)                                   # includes self-loop
    deg_inv = jnp.zeros((n_pad, 1), jnp.float32).at[:n, 0].set(
        1.0 / jnp.maximum(deg, 1.0))

    x_pad = jnp.zeros((n_pad, x.shape[1]), jnp.bfloat16).at[:n, :].set(
        x.astype(jnp.bfloat16))

    n_layers = len(params)
    y = None
    for li, p in enumerate(params):
        expa, expbt = _attention_factors(x_pad, p["U"], p["c"])
        # TODO(synk): BatchNorm running-stat (buffer) updates are not modeled;
        # training-mode forward output is unaffected.
        y = feast_conv(x_pad, adj_pad, deg_inv, expa, expbt, p, num_heads,
                       conv_channels[li], tn, tj, vmem_limit)    # [n_pad, C] f32
        if li < n_layers - 1:
            x_pad = relu_bn(y, p["gamma"], p["beta"], n)         # [n_pad, C] bf16
    return y[:n]


# ---------------------------------- main ------------------------------------ #

if __name__ == "__main__":
    key = jax.random.PRNGKey(0)
    k_x, k_p = jax.random.split(key)

    num_nodes = 16
    in_features = 8
    conv_channels = [16, 16, 32]
    num_heads = 4

    x = jax.random.normal(k_x, (num_nodes, in_features), jnp.float32)

    # deterministic ring graph, both directions (self-loops added by the encoder)
    src = jnp.arange(num_nodes, dtype=jnp.int32)
    dst = (src + 1) % num_nodes
    edge_index = jnp.stack(
        [jnp.concatenate([src, dst]), jnp.concatenate([dst, src])], axis=0)

    params = init_encoder_params(k_p, in_features, conv_channels, num_heads)

    out = graph_feature_encoder(x, edge_index, params, num_heads, conv_channels)
    out = jax.block_until_ready(out)
    assert out.shape == (num_nodes, conv_channels[-1])
    assert bool(jnp.all(jnp.isfinite(out)))
    print("KERNEL_OK")
</pallas_src>

<mosaic_0001>
module attributes {stable_mosaic.version = 11 : i64} {
  func.func @feast_conv_kernel(%arg0: i32, %arg1: i32, %arg2: memref<256x4xf32, #tpu.memory_space<vmem>>, %arg3: memref<4x256xf32, #tpu.memory_space<vmem>>, %arg4: memref<256x256xbf16, #tpu.memory_space<vmem>>, %arg5: memref<256x1xf32, #tpu.memory_space<vmem>>, %arg6: memref<256x8xbf16, #tpu.memory_space<vmem>>, %arg7: memref<8x64xbf16, #tpu.memory_space<vmem>>, %arg8: memref<1x16xf32, #tpu.memory_space<vmem>>, %arg9: memref<256x16xf32, #tpu.memory_space<vmem>>) attributes {dimension_semantics = [#tpu.dimension_semantics<parallel>, #tpu.dimension_semantics<arbitrary>], iteration_bounds = array<i64: 1, 1>, scalar_prefetch = 0 : i64, scratch_operands = 0 : i64, tpu.core_type = #tpu.core_type<tc>, window_params = [{transform_indices = @transform_0, window_bounds = array<i64: 256, 4>}, {transform_indices = @transform_1, window_bounds = array<i64: 4, 256>}, {transform_indices = @transform_2, window_bounds = array<i64: 256, 256>}, {transform_indices = @transform_3, window_bounds = array<i64: 256, 1>}, {transform_indices = @transform_4, window_bounds = array<i64: 256, 8>}, {pipeline_mode = #tpu.pipeline_mode<synchronous>, transform_indices = @transform_5, window_bounds = array<i64: 8, 64>}, {pipeline_mode = #tpu.pipeline_mode<synchronous>, transform_indices = @transform_6, window_bounds = array<i64: 1, 16>}, {transform_indices = @transform_7, window_bounds = array<i64: 256, 16>}]} {
    %c0_i32 = arith.constant 0 : i32
    %0 = arith.cmpi eq, %arg1, %c0_i32 : i32
    %1 = arith.extui %0 : i1 to i32
    %c0_i32_0 = arith.constant 0 : i32
    %2 = arith.cmpi ne, %1, %c0_i32_0 : i32
    scf.if %2 {
      %cst_21 = arith.constant 0.000000e+00 : f32
      %63 = vector.broadcast %cst_21 : f32 to vector<256x16xf32>
      %c0_22 = arith.constant 0 : index
      %c0_23 = arith.constant 0 : index
      %64 = vector.load %arg9[%c0_22, %c0_23] : memref<256x16xf32, #tpu.memory_space<vmem>>, vector<256x16xf32>
      tpu.vector_store %arg9[%c0_22, %c0_23], %63 {strides = array<i32>} : memref<256x16xf32, #tpu.memory_space<vmem>>, vector<256x16xf32>,
    } else {
    }
    %c0 = arith.constant 0 : index
    %c0_1 = arith.constant 0 : index
    %3 = vector.load %arg2[%c0, %c0_1] : memref<256x4xf32, #tpu.memory_space<vmem>>, vector<256x4xf32>
    %c0_2 = arith.constant 0 : index
    %c0_3 = arith.constant 0 : index
    %4 = vector.load %arg3[%c0_2, %c0_3] : memref<4x256xf32, #tpu.memory_space<vmem>>, vector<4x256xf32>
    %5 = vector.extract_strided_slice %3 {offsets = [0, 0], sizes = [256, 1], strides = [1, 1]} : vector<256x4xf32> to vector<256x1xf32>
    %6 = vector.extract_strided_slice %4 {offsets = [0, 0], sizes = [1, 256], strides = [1, 1]} : vector<4x256xf32> to vector<1x256xf32>
    %7 = vector.broadcast %5 : vector<256x1xf32> to vector<256x256xf32>
    %8 = vector.broadcast %6 : vector<1x256xf32> to vector<256x256xf32>
    %9 = arith.mulf %7, %8 : vector<256x256xf32>
    %10 = vector.extract_strided_slice %3 {offsets = [0, 1], sizes = [256, 1], strides = [1, 1]} : vector<256x4xf32> to vector<256x1xf32>
    %11 = vector.extract_strided_slice %4 {offsets = [1, 0], sizes = [1, 256], strides = [1, 1]} : vector<4x256xf32> to vector<1x256xf32>
    %12 = vector.broadcast %10 : vector<256x1xf32> to vector<256x256xf32>
    %13 = vector.broadcast %11 : vector<1x256xf32> to vector<256x256xf32>
    %14 = arith.mulf %12, %13 : vector<256x256xf32>
    %15 = vector.extract_strided_slice %3 {offsets = [0, 2], sizes = [256, 1], strides = [1, 1]} : vector<256x4xf32> to vector<256x1xf32>
    %16 = vector.extract_strided_slice %4 {offsets = [2, 0], sizes = [1, 256], strides = [1, 1]} : vector<4x256xf32> to vector<1x256xf32>
    %17 = vector.broadcast %15 : vector<256x1xf32> to vector<256x256xf32>
    %18 = vector.broadcast %16 : vector<1x256xf32> to vector<256x256xf32>
    %19 = arith.mulf %17, %18 : vector<256x256xf32>
    %20 = vector.extract_strided_slice %3 {offsets = [0, 3], sizes = [256, 1], strides = [1, 1]} : vector<256x4xf32> to vector<256x1xf32>
    %21 = vector.extract_strided_slice %4 {offsets = [3, 0], sizes = [1, 256], strides = [1, 1]} : vector<4x256xf32> to vector<1x256xf32>
    %22 = vector.broadcast %20 : vector<256x1xf32> to vector<256x256xf32>
    %23 = vector.broadcast %21 : vector<1x256xf32> to vector<256x256xf32>
    %24 = arith.mulf %22, %23 : vector<256x256xf32>
    %25 = arith.addf %9, %14 : vector<256x256xf32>
    %26 = arith.addf %25, %19 : vector<256x256xf32>
    %27 = arith.addf %26, %24 : vector<256x256xf32>
    %28 = tpu.reciprocal %27 {approx = true} : vector<256x256xf32> -> vector<256x256xf32>
    %c0_4 = arith.constant 0 : index
    %c0_5 = arith.constant 0 : index
    %29 = vector.load %arg4[%c0_4, %c0_5] : memref<256x256xbf16, #tpu.memory_space<vmem>>, vector<256x256xbf16>
    %30 = arith.extf %29 : vector<256x256xbf16> to vector<256x256xf32>
    %31 = arith.mulf %28, %30 : vector<256x256xf32>
    %c0_6 = arith.constant 0 : index
    %c0_7 = arith.constant 0 : index
    %32 = vector.load %arg6[%c0_6, %c0_7] : memref<256x8xbf16, #tpu.memory_space<vmem>>, vector<256x8xbf16>
    %c0_8 = arith.constant 0 : index
    %c0_9 = arith.constant 0 : index
    %33 = vector.load %arg7[%c0_8, %c0_9] : memref<8x64xbf16, #tpu.memory_space<vmem>>, vector<8x64xbf16>
    %cst = arith.constant dense<0.000000e+00> : vector<256x64xf32>
    %34 = tpu.matmul %32, %33, %cst {dimension_numbers = #tpu.dot_dimension_numbers<[1], [0], [0], [1], [0, 0, 1, 1], [], []>} : vector<256x8xbf16>, vector<8x64xbf16>, vector<256x64xf32> -> vector<256x64xf32>
    %35 = arith.truncf %34 : vector<256x64xf32> to vector<256x64xbf16>
    %cst_10 = arith.constant 0.000000e+00 : f32
    %36 = vector.broadcast %cst_10 : f32 to vector<256x16xf32>
    %37 = arith.mulf %9, %31 : vector<256x256xf32>
    %38 = arith.truncf %37 : vector<256x256xf32> to vector<256x256xbf16>
    %39 = vector.extract_strided_slice %35 {offsets = [0, 0], sizes = [256, 16], strides = [1, 1]} : vector<256x64xbf16> to vector<256x16xbf16>
    %cst_11 = arith.constant dense<0.000000e+00> : vector<256x16xf32>
    %40 = tpu.matmul %38, %39, %cst_11 {dimension_numbers = #tpu.dot_dimension_numbers<[1], [0], [0], [1], [0, 0, 1, 1], [], []>} : vector<256x256xbf16>, vector<256x16xbf16>, vector<256x16xf32> -> vector<256x16xf32>
    %41 = arith.addf %36, %40 : vector<256x16xf32>
    %42 = arith.mulf %14, %31 : vector<256x256xf32>
    %43 = arith.truncf %42 : vector<256x256xf32> to vector<256x256xbf16>
    %44 = vector.extract_strided_slice %35 {offsets = [0, 16], sizes = [256, 16], strides = [1, 1]} : vector<256x64xbf16> to vector<256x16xbf16>
    %cst_12 = arith.constant dense<0.000000e+00> : vector<256x16xf32>
    %45 = tpu.matmul %43, %44, %cst_12 {dimension_numbers = #tpu.dot_dimension_numbers<[1], [0], [0], [1], [0, 0, 1, 1], [], []>} : vector<256x256xbf16>, vector<256x16xbf16>, vector<256x16xf32> -> vector<256x16xf32>
    %46 = arith.addf %41, %45 : vector<256x16xf32>
    %47 = arith.mulf %19, %31 : vector<256x256xf32>
    %48 = arith.truncf %47 : vector<256x256xf32> to vector<256x256xbf16>
    %49 = vector.extract_strided_slice %35 {offsets = [0, 32], sizes = [256, 16], strides = [1, 1]} : vector<256x64xbf16> to vector<256x16xbf16>
    %cst_13 = arith.constant dense<0.000000e+00> : vector<256x16xf32>
    %50 = tpu.matmul %48, %49, %cst_13 {dimension_numbers = #tpu.dot_dimension_numbers<[1], [0], [0], [1], [0, 0, 1, 1], [], []>} : vector<256x256xbf16>, vector<256x16xbf16>, vector<256x16xf32> -> vector<256x16xf32>
    %51 = arith.addf %46, %50 : vector<256x16xf32>
    %52 = arith.mulf %24, %31 : vector<256x256xf32>
    %53 = arith.truncf %52 : vector<256x256xf32> to vector<256x256xbf16>
    %54 = vector.extract_strided_slice %35 {offsets = [0, 48], sizes = [256, 16], strides = [1, 1]} : vector<256x64xbf16> to vector<256x16xbf16>
    %cst_14 = arith.constant dense<0.000000e+00> : vector<256x16xf32>
    %55 = tpu.matmul %53, %54, %cst_14 {dimension_numbers = #tpu.dot_dimension_numbers<[1], [0], [0], [1], [0, 0, 1, 1], [], []>} : vector<256x256xbf16>, vector<256x16xbf16>, vector<256x16xf32> -> vector<256x16xf32>
    %56 = arith.addf %51, %55 : vector<256x16xf32>
    %c0_15 = arith.constant 0 : index
    %c0_16 = arith.constant 0 : index
    %57 = vector.load %arg9[%c0_15, %c0_16] : memref<256x16xf32, #tpu.memory_space<vmem>>, vector<256x16xf32>
    %58 = arith.addf %57, %56 : vector<256x16xf32>
    %c0_17 = arith.constant 0 : index
    %c0_18 = arith.constant 0 : index
    %59 = vector.load %arg9[%c0_17, %c0_18] : memref<256x16xf32, #tpu.memory_space<vmem>>, vector<256x16xf32>
    tpu.vector_store %arg9[%c0_17, %c0_18], %58 {strides = array<i32>} : memref<256x16xf32, #tpu.memory_space<vmem>>, vector<256x16xf32>,
    %c0_i32_19 = arith.constant 0 : i32
    %60 = arith.cmpi eq, %arg1, %c0_i32_19 : i32
    %61 = arith.extui %60 : i1 to i32
    %c0_i32_20 = arith.constant 0 : i32
    %62 = arith.cmpi ne, %61, %c0_i32_20 : i32
    scf.if %62 {
      %c0_21 = arith.constant 0 : index
      %c0_22 = arith.constant 0 : index
      %63 = vector.load %arg9[%c0_21, %c0_22] : memref<256x16xf32, #tpu.memory_space<vmem>>, vector<256x16xf32>
      %c0_23 = arith.constant 0 : index
      %c0_24 = arith.constant 0 : index
      %64 = vector.load %arg5[%c0_23, %c0_24] : memref<256x1xf32, #tpu.memory_space<vmem>>, vector<256x1xf32>
      %65 = vector.broadcast %64 : vector<256x1xf32> to vector<256x16xf32>
      %66 = arith.mulf %63, %65 : vector<256x16xf32>
      %c0_25 = arith.constant 0 : index
      %c0_26 = arith.constant 0 : index
      %67 = vector.load %arg8[%c0_25, %c0_26] : memref<1x16xf32, #tpu.memory_space<vmem>>, vector<1x16xf32>
      %68 = vector.broadcast %67 : vector<1x16xf32> to vector<256x16xf32>
      %69 = arith.addf %66, %68 : vector<256x16xf32>
      %c0_27 = arith.constant 0 : index
      %c0_28 = arith.constant 0 : index
      %70 = vector.load %arg9[%c0_27, %c0_28] : memref<256x16xf32, #tpu.memory_space<vmem>>, vector<256x16xf32>
      tpu.vector_store %arg9[%c0_27, %c0_28], %69 {strides = array<i32>} : memref<256x16xf32, #tpu.memory_space<vmem>>, vector<256x16xf32>,
    } else {
    }
    return
  }
  func.func @transform_0(%arg0: i32, %arg1: i32) -> (i32, i32) {
    %c0_i32 = arith.constant 0 : i32
    %c0_i32_0 = arith.constant 0 : i32
    return %arg0, %c0_i32 : i32, i32
  }
  func.func @transform_1(%arg0: i32, %arg1: i32) -> (i32, i32) {
    %c0_i32 = arith.constant 0 : i32
    %c0_i32_0 = arith.constant 0 : i32
    return %c0_i32, %arg1 : i32, i32
  }
  func.func @transform_2(%arg0: i32, %arg1: i32) -> (i32, i32) {
    %c0_i32 = arith.constant 0 : i32
    return %arg0, %arg1 : i32, i32
  }
  func.func @transform_3(%arg0: i32, %arg1: i32) -> (i32, i32) {
    %c0_i32 = arith.constant 0 : i32
    %c0_i32_0 = arith.constant 0 : i32
    return %arg0, %c0_i32 : i32, i32
  }
  func.func @transform_4(%arg0: i32, %arg1: i32) -> (i32, i32) {
    %c0_i32 = arith.constant 0 : i32
    %c0_i32_0 = arith.constant 0 : i32
    return %arg1, %c0_i32 : i32, i32
  }
  func.func @transform_5(%arg0: i32, %arg1: i32) -> (i32, i32) {
    %c0_i32 = arith.constant 0 : i32
    %c0_i32_0 = arith.constant 0 : i32
    %c0_i32_1 = arith.constant 0 : i32
    return %c0_i32, %c0_i32_0 : i32, i32
  }
  func.func @transform_6(%arg0: i32, %arg1: i32) -> (i32, i32) {
    %c0_i32 = arith.constant 0 : i32
    %c0_i32_0 = arith.constant 0 : i32
    %c0_i32_1 = arith.constant 0 : i32
    return %c0_i32, %c0_i32_0 : i32, i32
  }
  func.func @transform_7(%arg0: i32, %arg1: i32) -> (i32, i32) {
    %c0_i32 = arith.constant 0 : i32
    %c0_i32_0 = arith.constant 0 : i32
    return %arg0, %c0_i32 : i32, i32
  }
}

</mosaic_0001>

<bundles_post_ra>
// kernel: tpu_custom_call.1
= control target key start
LH: loop header
LB: loop body
LE: loop exit
PB: predicated region body
PF: predicated region fallthrough
CT: control target
= control target key end

     0   :  { %vm1548_vm0 = vcmask 1043456   ;;  %v8507_v0 = vmov 0   ;;  %vm1499_vm1 = vcmask 64512   ;;  %v8513_v40 = vmov 3   ;;  %s4168_s15 = smov 112   ;;  %s4169_s17 = smov 96   ;;  %s8499_s5 = inlined_call_operand.vmem [shape: bf16[8,64], index: 5, kind: input, shape index: {}]   ;;  %s8500_s0 = inlined_call_operand.vmem [shape: f32[256,4], index: 0, kind: input, shape index: {}]   ;;  %s8501_s4 = inlined_call_operand.vmem [shape: bf16[256,8], index: 4, kind: input, shape index: {}]   ;;  %s8502_s1 = inlined_call_operand.vmem [shape: f32[4,256], index: 1, kind: input, shape index: {}]   ;;  %s8503_s2 = inlined_call_operand.vmem [shape: bf16[256,256], index: 2, kind: input, shape index: {}]   ;;  %s8504_s3 = inlined_call_operand.vmem [shape: f32[256,1], index: 3, kind: input, shape index: {}]   ;;  %s8505_s7 = inlined_call_operand.vmem [shape: f32[256,16], index: 7, kind: output, shape index: {}]   ;;  %s8506_s6 = inlined_call_operand.vmem [shape: f32[1,16], index: 6, kind: input, shape index: {}]  }
   0x1   :  { %3957 = vset.pattern.permute.xlu1 %v8507_v0  ;;  %3956 = vset.pattern.permute.xlu0 %v8507_v0  ;;  %v1418_v1 = vld [vmem:[%s8499_s5] sm:$0xf]  ;;  %v4220_v2 = vld [vmem:[%s8500_s0 + $0x10] sm:$0xff]  ;;  %v4008_v7 = vld [vmem:[%s8501_s4 + $0x8] sm:$0xff]   ;;  %v8509_v43 = vmov 2   ;;  %v8511_v47 = vmov 1  }
   0x2   :  { %v4225_v3 = vld [vmem:[%s8500_s0] sm:$0xff]  ;;  %3946 = vmatprep.subr.msk.bf16.mxu0 %vm1548_vm0, %v1418_v1  ;;  %3947 = vmatprep.subr.msk.bf16.mxu1 %vm1548_vm0, %v1418_v1  ;;  %v1550_v4 = vsel %vm1548_vm0, %v1418_v1, 0  ;;  %v4009_v8 = vld [vmem:[%s8501_s4 + $0x48] sm:$0xff]   ;;  %v4246_v9 = vld [vmem:[%s8500_s0 + $0x18] sm:$0xff]  ;;  %s4170_s19 = smov 80   ;;  %vm31_vm2 = vcmask 130048  }
   0x3   :  { %v4006_v5 = vld [vmem:[%s8501_s4] sm:$0xff]   ;;  %109 = vperm.xlu1 %3957, %v4220_v2   ;;  %99 = vperm.xlu0 %3956, %v4225_v3   ;;  %v4251_v10 = vld [vmem:[%s8500_s0 + $0x8] sm:$0xff]  ;;  %v4010_v13 = vld [vmem:[%s8501_s4 + $0x10] sm:$0xff]  }
   0x4   :  { %v4007_v6 = vld [vmem:[%s8501_s4 + $0x40] sm:$0xff]   ;;  %3911 = vmatpush3.bf16.msra.mxu0 %v1550_v4  ;;  %3945 = vmatpush3.bf16.msra.mxu1 %v1550_v4  ;;  %v4258_v11 = vld [vmem:[%s8500_s0 + $0x28] sm:$0xff]  ;;  %v4011_v14 = vld [vmem:[%s8501_s4 + $0x50] sm:$0xff]  }
   0x5   :  { %3912 = vmatprep.mubr.msk.bf16.mxu0 %vm1499_vm1, %v4006_v5  ;;  %3928 = vmatprep.mubr.msk.bf16.mxu1 %vm1499_vm1, %v4007_v6  ;;  %v4263_v12 = vld [vmem:[%s8500_s0 + $0x20] sm:$0xff]  ;;  %v4012_v15 = vld [vmem:[%s8501_s4 + $0x18] sm:$0xff]   ;;  %v4291_v18 = vld [vmem:[%s8500_s0 + $0x30] sm:$0xff] }
   0x6   :  { %v4013_v16 = vld [vmem:[%s8501_s4 + $0x58] sm:$0xff]   ;;  %v4014_v19 = vld [vmem:[%s8501_s4 + $0x20] sm:$0xff]   ;;  %v4306_v21 = vld [vmem:[%s8500_s0 + $0x48] sm:$0xff] }
   0x7   :  { %3913 = vmatmul.mubr.msk.bf16.vlgmr.msra.gmra.mxu0 %vm1499_vm1, %v4008_v7  ;;  %3929 = vmatmul.mubr.msk.bf16.vlgmr.msra.gmra.mxu1 %vm1499_vm1, %v4009_v8  ;;  %v4286_v17 = vld [vmem:[%s8500_s0 + $0x38] sm:$0xff]  ;;  %v4015_v20 = vld [vmem:[%s8501_s4 + $0x60] sm:$0xff]   ;;  %v4016_v23 = vld [vmem:[%s8501_s4 + $0x28] sm:$0xff]  }
   0x8   :  { %114 = vperm.xlu1 %3957, %v4246_v9   ;;  %104 = vperm.xlu0 %3956, %v4251_v10   ;;  %v4311_v22 = vld [vmem:[%s8500_s0 + $0x40] sm:$0xff]  ;;  %v4017_v24 = vld [vmem:[%s8501_s4 + $0x68] sm:$0xff]   ;;  %v4324_v25 = vld [vmem:[%s8500_s0 + $0x58] sm:$0xff] }
   0x9   :  { %3916 = vmatprep.mubr.msk.bf16.mxu0 %vm1499_vm1, %v4010_v13  ;;  %3932 = vmatprep.mubr.msk.bf16.mxu1 %vm1499_vm1, %v4011_v14  ;;  %v4329_v26 = vld [vmem:[%s8500_s0 + $0x50] sm:$0xff]  ;;  %v4346_v29 = vld [vmem:[%s8500_s0 + $0x68] sm:$0xff]  ;;  %v4351_v30 = vld [vmem:[%s8500_s0 + $0x60] sm:$0xff] }
   0xa   :  { %v4018_v27 = vld [vmem:[%s8501_s4 + $0x30] sm:$0xff]   ;;  %v4020_v31 = vld [vmem:[%s8501_s4 + $0x38] sm:$0xff]   ;;  %v4380_v35 = vld [vmem:[%s8500_s0 + $0x88] sm:$0xff] }
   0xb   :  { %v4019_v28 = vld [vmem:[%s8501_s4 + $0x70] sm:$0xff]   ;;  %v4021_v32 = vld [vmem:[%s8501_s4 + $0x78] sm:$0xff]   ;;  %8898 = vst [vmem:[#allocation2_spill] sm:$0xff] %v4380_v35  ;;  %v4385_v36 = vld [vmem:[%s8500_s0 + $0x80] sm:$0xff] }
   0xc   :  { %124 = vperm.xlu1 %3957, %v4258_v11   ;;  %119 = vperm.xlu0 %3956, %v4263_v12   ;;  %v4366_v33 = vld [vmem:[%s8500_s0 + $0x78] sm:$0xff]  ;;  %v4371_v34 = vld [vmem:[%s8500_s0 + $0x70] sm:$0xff]  ;;  %v4404_v39 = vld [vmem:[%s8500_s0 + $0xa8] sm:$0xff] }
   0xd   :  { %v4392_v37 = vld [vmem:[%s8500_s0 + $0x98] sm:$0xff]  ;;  %v4397_v38 = vld [vmem:[%s8500_s0 + $0x90] sm:$0xff]  ;;  %v4419_v42 = vld [vmem:[%s8500_s0 + $0xc8] sm:$0xff] }
   0xe   :  { %8899 = vst [vmem:[#allocation3_spill] sm:$0xff] %v4392_v37  ;;  %8900 = vst [vmem:[#allocation4_spill] sm:$0xff] %v4397_v38  ;;  %v4412_v41 = vld [vmem:[%s8500_s0 + $0xb8] sm:$0xff]  ;;  %v4433_v45 = vld [vmem:[%s8500_s0 + $0xe8] sm:$0xff] }
   0xf   :  { %3917 = vmatmul.mubr.msk.bf16.gmra.mxu0 %vm1499_vm1, %v4012_v15  ;;  %3933 = vmatmul.mubr.msk.bf16.gmra.mxu1 %vm1499_vm1, %v4013_v16  ;;  %v4426_v44 = vld [vmem:[%s8500_s0 + $0xd8] sm:$0xff]  ;;  %8902 = vst [vmem:[#allocation6_spill] sm:$0xff] %v4433_v45 }
  0x10   :  { %134 = vperm.xlu1 %3957, %v4286_v17   ;;  %129 = vperm.xlu0 %3956, %v4291_v18   ;;  %8901 = vst [vmem:[#allocation5_spill] sm:$0xff] %v4426_v44  ;;  %v4440_v46 = vld [vmem:[%s8500_s0 + $0xf8] sm:$0xff] }
  0x11   :  { %3920 = vmatprep.mubr.msk.bf16.mxu0 %vm1499_vm1, %v4014_v19  ;;  %3936 = vmatprep.mubr.msk.bf16.mxu1 %vm1499_vm1, %v4015_v20  ;;  %8903 = vst [vmem:[#allocation7_spill] sm:$0xff] %v4440_v46 }
  0x14   :  { %144 = vperm.xlu1 %3957, %v4306_v21   ;;  %139 = vperm.xlu0 %3956, %v4311_v22  }
  0x17   :  { %3921 = vmatmul.mubr.msk.bf16.gmra.mxu0 %vm1499_vm1, %v4016_v23  ;;  %3937 = vmatmul.mubr.msk.bf16.gmra.mxu1 %vm1499_vm1, %v4017_v24 }
  0x18   :  { %154 = vperm.xlu1 %3957, %v4324_v25   ;;  %149 = vperm.xlu0 %3956, %v4329_v26  }
  0x19   :  { %3924 = vmatprep.mubr.msk.bf16.mxu0 %vm1499_vm1, %v4018_v27  ;;  %3940 = vmatprep.mubr.msk.bf16.mxu1 %vm1499_vm1, %v4019_v28 }
  0x1c   :  { %164 = vperm.xlu1 %3957, %v4346_v29   ;;  %159 = vperm.xlu0 %3956, %v4351_v30  }
  0x1f   :  { %3925 = vmatmul.mubr.msk.bf16.gmra.mxu0 %vm1499_vm1, %v4020_v31  ;;  %3941 = vmatmul.mubr.msk.bf16.gmra.mxu1 %vm1499_vm1, %v4021_v32 }
  0x20   :  { %174 = vperm.xlu1 %3957, %v4366_v33   ;;  %169 = vperm.xlu0 %3956, %v4371_v34  }
  0x24   :  { %184 = vperm.xlu1 %3957, %v4380_v35   ;;  %179 = vperm.xlu0 %3956, %v4385_v36  }
  0x28   :  { %194 = vperm.xlu1 %3957, %v4392_v37   ;;  %189 = vperm.xlu0 %3956, %v4397_v38  }
  0x2c   :  { %204 = vperm.xlu1 %3957, %v4404_v39   ;;  %3961 = vset.pattern.permute.xlu0 %v8513_v40 }
  0x2d   :  { %765 = vperm.xlu0 %3961, %v4251_v10  }
  0x30   :  { %214 = vperm.xlu1 %3957, %v4412_v41  }
  0x31   :  { %773 = vperm.xlu0 %3961, %v4246_v9  }
  0x34   :  { %224 = vperm.xlu1 %3957, %v4419_v42  }
  0x35   :  { %3964 = vset.pattern.permute.xlu0 %v8509_v43 }
  0x36   :  { %551 = vperm.xlu0 %3964, %v4225_v3  }
  0x38   :  { %234 = vperm.xlu1 %3957, %v4426_v44  }
  0x3a   :  { %559 = vperm.xlu0 %3964, %v4220_v2  }
  0x3c   :  { %244 = vperm.xlu1 %3957, %v4433_v45  }
  0x3e   :  { %567 = vperm.xlu0 %3964, %v4263_v12  }
  0x40   :  { %254 = vperm.xlu1 %3957, %v4440_v46  }
  0x42   :  { %575 = vperm.xlu0 %3964, %v4291_v18  }
  0x44   :  { %3958 = vset.pattern.permute.xlu1 %v8511_v47 }
  0x45   :  { %345 = vperm.xlu1 %3958, %v4251_v10  }
  0x46   :  { %583 = vperm.xlu0 %3964, %v4311_v22  }
  0x49   :  { %349 = vperm.xlu1 %3958, %v4220_v2  }
  0x4a   :  { %3969 = vset.pattern.permute.xlu0 %v8511_v47 }
  0x4b   :  { %341 = vperm.xlu0 %3969, %v4225_v3  }
  0x4d   :  { %357 = vperm.xlu1 %3958, %v4263_v12  }
  0x4f   :  { %353 = vperm.xlu0 %3969, %v4246_v9  }
  0x51   :  { %365 = vperm.xlu1 %3958, %v4291_v18  }
  0x53   :  { %361 = vperm.xlu0 %3969, %v4258_v11  }
  0x55   :  { %373 = vperm.xlu1 %3958, %v4311_v22  }
  0x57   :  { %369 = vperm.xlu0 %3969, %v4286_v17  }
  0x59   :  { %381 = vperm.xlu1 %3958, %v4329_v26  }
  0x5b   :  { %377 = vperm.xlu0 %3969, %v4306_v21  }
  0x5d   :  { %389 = vperm.xlu1 %3958, %v4351_v30  }
  0x5f   :  { %385 = vperm.xlu0 %3969, %v4324_v25  }
  0x61   :  { %3959 = vset.pattern.permute.xlu1 %v8509_v43 }
  0x62   :  { %555 = vperm.xlu1 %3959, %v4251_v10  }
  0x63   :  { %393 = vperm.xlu0 %3969, %v4346_v29  }
  0x66   :  { %3960 = vset.pattern.permute.xlu1 %v8513_v40 }
  0x67   :  { %761 = vperm.xlu1 %3960, %v4225_v3   ;;  %401 = vperm.xlu0 %3969, %v4366_v33  }
  0x6b   :  { %3962 = vset.pattern.permute.xlu1 %v8509_v43  ;;  %409 = vperm.xlu0 %3969, %v4380_v35  }
  0x6c   :  { %563 = vperm.xlu1 %3962, %v4246_v9  }
  0x70   :  { %3963 = vset.pattern.permute.xlu1 %v8513_v40 }
  0x71   :  { %769 = vperm.xlu1 %3963, %v4220_v2  }
  0x75   :  { %3965 = vset.pattern.permute.xlu1 %v8509_v43 }
  0x76   :  { %571 = vperm.xlu1 %3965, %v4258_v11  }
  0x7a   :  { %3966 = vset.pattern.permute.xlu1 %v8513_v40 }
  0x7b   :  { %777 = vperm.xlu1 %3966, %v4263_v12  }
  0x7e   :  { %v4476_v48 = vpop.permute.xlu1 %109  ;;  %v4478_v49 = vpop.permute.xlu0 %99 }
  0x7f   :  { %3967 = vset.pattern.permute.xlu1 %v8509_v43 }
  0x80   :  { %579 = vperm.xlu1 %3967, %v4286_v17   ;;  %v258_v17 = vlaneseq }
  0x83   :  { %v4482_v50 = vpop.permute.xlu1 %114  ;;  %v4484_v51 = vpop.permute.xlu0 %104 }
  0x84   :  { %3968 = vset.pattern.permute.xlu1 %v8513_v40 }
  0x85   :  { %785 = vperm.xlu1 %3968, %v4291_v18  }
  0x87   :  { %v4488_v52 = vpop.permute.xlu1 %124  ;;  %v4490_v53 = vpop.permute.xlu0 %119 }
  0x88   :  { %8904 = vst [vmem:[#allocation8_spill] sm:$0xff] %v4488_v52 }
  0x89   :  { %3970 = vset.pattern.permute.xlu1 %v8509_v43 }
  0x8a   :  { %587 = vperm.xlu1 %3970, %v4306_v21  }
  0x8b   :  { %v4494_v54 = vpop.permute.xlu1 %134  ;;  %v4496_v55 = vpop.permute.xlu0 %129 }
  0x8c   :  { %8905 = vst [vmem:[#allocation9_spill] sm:$0xff] %v4494_v54 }
  0x8e   :  { %3971 = vset.pattern.permute.xlu1 %v8513_v40 }
  0x8f   :  { %v4499_v56 = vpop.permute.xlu1 %144  ;;  %793 = vperm.xlu1 %3971, %v4311_v22   ;;  %v4502_v57 = vpop.permute.xlu0 %139  ;;  %v259_v22 = vshrl.u32 %v258_v17, 7 }
  0x90   :  { %8906 = vst [vmem:[#allocation10_spill] sm:$0xff] %v4499_v56 }
  0x91   :  { %v260_v31 = vsub.s32 0, %v259_v22  ;;  %v470_v32 = vsub.s32 1, %v259_v22  ;;  %v264_v17 = vsub.s32 4, %v259_v22  ;;  %v474_v0 = vsub.s32 5, %v259_v22 }
  0x93   :  { %v4504_v58 = vpop.permute.xlu1 %154  ;;  %3972 = vset.pattern.permute.xlu1 %v8509_v43  ;;  %v4507_v59 = vpop.permute.xlu0 %149 }
  0x94   :  { %8907 = vst [vmem:[#allocation11_spill] sm:$0xff] %v4504_v58  ;;  %8908 = vst [vmem:[#allocation12_spill] sm:$0xff] %v4507_v59  ;;  %591 = vperm.xlu1 %3972, %v4329_v26  }
  0x97   :  { %v4510_v60 = vpop.permute.xlu1 %164  ;;  %v4512_v61 = vpop.permute.xlu0 %159 }
  0x98   :  { %8909 = vst [vmem:[#allocation13_spill] sm:$0xff] %v4510_v60  ;;  %8910 = vst [vmem:[#allocation14_spill] sm:$0xff] %v4512_v61  ;;  %595 = vperm.xlu1 %3972, %v4324_v25  }
  0x9b   :  { %v4515_v62 = vpop.permute.xlu1 %174  ;;  %v4518_v63 = vpop.permute.xlu0 %169 }
  0x9c   :  { %8911 = vst [vmem:[#allocation15_spill] sm:$0xff] %v4515_v62  ;;  %3973 = vset.pattern.permute.xlu1 %v8513_v40  ;;  %8912 = vst [vmem:[#allocation16_spill] sm:$0xff] %v4518_v63 }
  0x9d   :  { %805 = vperm.xlu1 %3973, %v4324_v25  }
  0x9f   :  { %v4521_v1 = vpop.permute.xlu1 %184  ;;  %v4525_v2 = vpop.permute.xlu0 %179 }
  0xa0   :  { %8913 = vst [vmem:[#allocation17_spill] sm:$0xff] %v4521_v1  ;;  %8914 = vst [vmem:[#allocation18_spill] sm:$0xff] %v4525_v2  ;;  %v684_v2 = vsub.s32 6, %v259_v22 }
  0xa1   :  { %3974 = vset.pattern.permute.xlu1 %v8509_v43 }
  0xa2   :  { %599 = vperm.xlu1 %3974, %v4351_v30  }
  0xa3   :  { %v4527_v3 = vpop.permute.xlu1 %194  ;;  %v4532_v5 = vpop.permute.xlu0 %189 }
  0xa4   :  { %8915 = vst [vmem:[#allocation19_spill] sm:$0xff] %v4527_v3  ;;  %8917 = vst [vmem:[#allocation21_spill] sm:$0xff] %v4532_v5 }
  0xa6   :  { %603 = vperm.xlu1 %3974, %v4346_v29  }
  0xa7   :  { %v4530_v4 = vpop.permute.xlu1 %204 }
  0xa8   :  { %8916 = vst [vmem:[#allocation20_spill] sm:$0xff] %v4530_v4  ;;  %v4538_v7 = vpop.permute.xlu0 %765 }
  0xaa   :  { %3975 = vset.pattern.permute.xlu1 %v8513_v40 }
  0xab   :  { %v4535_v6 = vpop.permute.xlu1 %214  ;;  %813 = vperm.xlu1 %3975, %v4346_v29  }
  0xac   :  { %8918 = vst [vmem:[#allocation22_spill] sm:$0xff] %v4535_v6  ;;  %v4546_v10 = vpop.permute.xlu0 %773  ;;  %v680_v6 = vsub.s32 2, %v259_v22 }
  0xaf   :  { %v4540_v8 = vpop.permute.xlu1 %224  ;;  %3976 = vset.pattern.permute.xlu1 %v8511_v47 }
  0xb0   :  { %8919 = vst [vmem:[#allocation23_spill] sm:$0xff] %v4540_v8  ;;  %397 = vperm.xlu1 %3976, %v4371_v34  }
  0xb1   :  { %v4553_v12 = vpop.permute.xlu0 %551 }
  0xb3   :  { %v4544_v9 = vpop.permute.xlu1 %234 }
  0xb4   :  { %8920 = vst [vmem:[#allocation24_spill] sm:$0xff] %v4544_v9  ;;  %3977 = vset.pattern.permute.xlu1 %v8509_v43  ;;  %v8926_v9 = vmov 3  }
  0xb5   :  { %607 = vperm.xlu1 %3977, %v4371_v34   ;;  %v4559_v14 = vpop.permute.xlu0 %559 }
  0xb7   :  { %v4550_v11 = vpop.permute.xlu1 %244 }
  0xb8   :  { %8921 = vst [vmem:[#allocation25_spill] sm:$0xff] %v4550_v11 }
  0xb9   :  { %611 = vperm.xlu1 %3977, %v4366_v33   ;;  %v4567_v18 = vpop.permute.xlu0 %567 }
  0xbb   :  { %v4555_v13 = vpop.permute.xlu1 %254 }
  0xbc   :  { %8922 = vst [vmem:[#allocation26_spill] sm:$0xff] %v4555_v13 }
  0xbd   :  { %3978 = vset.pattern.permute.xlu1 %v8513_v40  ;;  %v4573_v27 = vpop.permute.xlu0 %575 }
  0xbe   :  { %821 = vperm.xlu1 %3978, %v4366_v33  }
  0xc0   :  { %v4561_v15 = vpop.permute.xlu1 %345 }
  0xc1   :  { %v4594_v5 = vpop.permute.xlu0 %583 }
  0xc2   :  { %3979 = vset.pattern.permute.xlu1 %v8511_v47  ;;  %8927 = vst [vmem:[#allocation30_spill] sm:$0xff] %v4594_v5 }
  0xc3   :  { %405 = vperm.xlu1 %3979, %v4385_v36  }
  0xc4   :  { %v4565_v16 = vpop.permute.xlu1 %349 }
  0xc7   :  { %3980 = vset.pattern.permute.xlu1 %v8509_v43  ;;  %v3914_v19 = vpop.f32.mrf.mxu0  ;;  %v3930_v20 = vpop.f32.mrf.mxu1 }
  0xc8   :  { %v4570_v21 = vpop.permute.xlu1 %357  ;;  %615 = vperm.xlu1 %3980, %v4385_v36   ;;  %v96_v36 = vld [vmem:[%s8502_s1] sm:$0xff] }
  0xc9   :  { %v1586_v23 = vpop.f32.mrf.mxu0  ;;  %v1650_v24 = vpop.f32.mrf.mxu1  ;;  %v261_v47 = vrot.slane %v96_v36, %v260_v31  ;;  %v471_v40 = vrot.slane %v96_v36, %v470_v32  ;;  %v265_v8 = vrot.slane %v96_v36, %v264_v17  ;;  %v475_v4 = vrot.slane %v96_v36, %v474_v0 }
  0xcb   :  { %v3915_v25 = vpop.f32.mrf.mxu0  ;;  %v3931_v26 = vpop.f32.mrf.mxu1  ;;  %v4604_v52 = vrot.slane %v261_v47, %v260_v31  ;;  %v4606_v17 = vrot.slane %v471_v40, %v470_v32 }
  0xcc   :  { %v4575_v28 = vpack.c.bf16 %v3915_v25, %v3914_v19  ;;  %v4577_v29 = vpack.c.bf16 %v3931_v26, %v3930_v20  ;;  %v4579_v30 = vpop.permute.xlu1 %365  ;;  %619 = vperm.xlu1 %3980, %v4380_v35   ;;  %v890_v25 = vsub.s32 3, %v259_v22  ;;  %v894_v26 = vsub.s32 7, %v259_v22 }
  0xcd   :  { %v1589_v33 = vpop.f32.mrf.mxu0  ;;  %v1653_v34 = vpop.f32.mrf.mxu1  ;;  %8931 = vst [vmem:[#allocation34_spill] sm:$0xff] %v4604_v52  ;;  %v681_v22 = vrot.slane %v96_v36, %v680_v6  ;;  %v4620_v40 = vmul.f32 %v4604_v52, %v4478_v49 }
  0xce   :  { %8923 = vst [vmem:[#allocation27_spill] sm:$0xff] %v4575_v28  ;;  %8924 = vst [vmem:[#allocation28_spill] sm:$0xff] %v4577_v29  ;;  %1939 = vrot.lane.b32.xlu0 %v4575_v28, %s4168_s15  ;;  %v4596_v3 = vpack.c.bf16 %v1653_v34, %v1650_v24  ;;  %v891_v61 = vrot.slane %v96_v36, %v890_v25  ;;  %v895_v59 = vrot.slane %v96_v36, %v894_v26 }
  0xcf   :  { %v3918_v19 = vpop.f32.mrf.mxu0  ;;  %v3934_v20 = vpop.f32.mrf.mxu1  ;;  %v4608_v24 = vrot.slane %v265_v8, %v260_v31  ;;  %v4610_v34 = vrot.slane %v475_v4, %v470_v32  ;;  %v4612_v60 = vpack.c.bf16 %v1589_v33, %v1586_v23  ;;  %8934 = vst [vmem:[#allocation37_spill] sm:$0xff] %v4620_v40  ;;  %v4640_v32 = vmul.f32 %v4606_v17, %v4561_v15 }
  0xd0   :  { %v4587_v43 = vpop.permute.xlu1 %373  ;;  %1955 = vrot.lane.b32.xlu1 %v4577_v29, %s4168_s15  ;;  %8928 = vst [vmem:[#allocation31_spill] sm:$0xff] %v4596_v3  ;;  %v4626_v8 = vrot.slane %v891_v61, %v890_v25  ;;  %v4628_v4 = vrot.slane %v895_v59, %v890_v25  ;;  %v342_v23 = vpop.permute.xlu0 %341  ;;  %v4656_v25 = vrot.slane %v681_v22, %v680_v6 }
  0xd1   :  { %8925 = vst [vmem:[#allocation29_spill] sm:$0xff] %v4587_v43  ;;  %v4591_v13 = vpop.f32.mrf.mxu0  ;;  %v1666_v11 = vpop.f32.mrf.mxu1  ;;  %3981 = vset.pattern.permute.xlu1 %v8926_v9  ;;  %8932 = vst [vmem:[#allocation35_spill] sm:$0xff] %v4608_v24  ;;  %v4624_v47 = vmul.f32 %v4608_v24, %v4478_v49  ;;  %v4643_v49 = vmul.f32 %v4606_v17, %v342_v23  ;;  %v4646_v59 = vmul.f32 %v4610_v34, %v342_v23 }
  0xd2   :  { %8933 = vst [vmem:[#allocation36_spill] sm:$0xff] %v4612_v60  ;;  %8936 = vst [vmem:[#allocation39_spill] sm:$0xff] %v4626_v8  ;;  %v4668_v38 = vmul.f32 %v4626_v8, %v4538_v7  ;;  %v4676_v22 = vmul.f32 %v4656_v25, %v4553_v12 }
  0xd3   :  { %v3919_v1 = vpop.f32.mrf.mxu0  ;;  %v3935_v63 = vpop.f32.mrf.mxu1  ;;  %8935 = vst [vmem:[#allocation38_spill] sm:$0xff] %v4624_v47  ;;  %8937 = vst [vmem:[#allocation40_spill] sm:$0xff] %v4628_v4 }
  0xd4   :  { %v4598_v56 = vpack.c.bf16 %v3919_v1, %v3918_v19  ;;  %v4600_v54 = vpop.permute.xlu1 %381  ;;  %1953 = vrot.lane.b32.xlu1 %v4596_v3, %s4168_s15  ;;  %v685_v1 = vrot.slane %v96_v36, %v684_v2  ;;  %v4636_v2 = vmul.f32 %v4604_v52, %v4484_v51  ;;  %8940 = vst [vmem:[#allocation43_spill] sm:$0xff] %v4643_v49  ;;  %8941 = vst [vmem:[#allocation44_spill] sm:$0xff] %v4646_v59 }
  0xd5   :  { %8930 = vst [vmem:[#allocation33_spill] sm:$0xff] %v4600_v54  ;;  %v1605_v0 = vpop.f32.mrf.mxu0  ;;  %v1669_v62 = vpop.f32.mrf.mxu1  ;;  %v4654_v36 = vmul.f32 %v4608_v24, %v4484_v51  ;;  %v4662_v54 = vpack.c.bf16 %v3935_v63, %v3934_v20  ;;  %v4672_v51 = vmul.f32 %v4628_v4, %v4538_v7  ;;  %8944 = vst [vmem:[#allocation47_spill] sm:$0xff] %v4676_v22 }
  0xd6   :  { %8929 = vst [vmem:[#allocation32_spill] sm:$0xff] %v4598_v56  ;;  %1943 = vrot.lane.b32.xlu0 %v4598_v56, %s4168_s15  ;;  %8939 = vst [vmem:[#allocation42_spill] sm:$0xff] %v4636_v2  ;;  %v4664_v58 = vrot.slane %v685_v1, %v680_v6  ;;  %v972_v6 = vadd.f32 %v4640_v32, %v4636_v2  ;;  %v970_v7 = vadd.f32 %v4643_v49, %v4620_v40 }
  0xd7   :  { %v3922_v19 = vpop.f32.mrf.mxu0  ;;  %v4616_v26 = vpop.f32.mrf.mxu1  ;;  %8942 = vst [vmem:[#allocation45_spill] sm:$0xff] %v4662_v54  ;;  %8943 = vst [vmem:[#allocation46_spill] sm:$0xff] %v4672_v51  ;;  %v971_v20 = vadd.f32 %v4646_v59, %v4624_v47  ;;  %v4725_v5 = vpack.c.bf16 %v1605_v0, %v4591_v13  ;;  %v4731_v49 = vmul.f32 %v4606_v17, %v4565_v16 }
  0xd8   :  { %v4630_v31 = vpop.permute.xlu1 %389  ;;  %1937 = vrot.lane.b32.xlu1 %v4612_v60, %s4168_s15  ;;  %v4684_v63 = vmul.f32 %v4664_v58, %v4553_v12  ;;  %v1034_v29 = vadd.f32 %v970_v7, %v4676_v22  ;;  %v4735_v7 = vmul.f32 %v4610_v34, %v4565_v16  ;;  %v4759_v59 = vmul.f32 %v4608_v24, %v4482_v50 }
  0xd9   :  { %8938 = vst [vmem:[#allocation41_spill] sm:$0xff] %v4630_v31  ;;  %v4648_v61 = vpop.f32.mrf.mxu0  ;;  %v4650_v33 = vpop.f32.mrf.mxu1  ;;  %v4660_v31 = vmul.f32 %v4610_v34, %v4561_v15 }
  0xda   :  { %8945 = vst [vmem:[#allocation48_spill] sm:$0xff] %v4684_v63  ;;  %8951 = vst [vmem:[#allocation54_spill] sm:$0xff] %v4759_v59 }
  0xdb   :  { %v3923_v23 = vpop.f32.mrf.mxu0  ;;  %v3939_v9 = vpop.f32.mrf.mxu1 }
  0xdc   :  { %v4678_v15 = vpack.c.bf16 %v3923_v23, %v3922_v19  ;;  %1959 = vrot.lane.b32.xlu1 %v4662_v54, %s4168_s15  ;;  %v973_v19 = vadd.f32 %v4660_v31, %v4654_v36  ;;  %v4696_v23 = vpack.c.bf16 %v1669_v62, %v1666_v11  ;;  %v4712_v62 = vmul.f32 %v4604_v52, %v4476_v48 }
  0xdd   :  { %v556_v1 = vpop.permute.xlu1 %555  ;;  %v4692_v60 = vpop.f32.mrf.mxu0  ;;  %v4716_v11 = vmul.f32 %v4608_v24, %v4476_v48 }
  0xde   :  { %8946 = vst [vmem:[#allocation49_spill] sm:$0xff] %v4696_v23  ;;  %v4699_v12 = vmul.f32 %v4656_v25, %v556_v1  ;;  %v4702_v46 = vmul.f32 %v4664_v58, %v556_v1  ;;  %v1685_v2 = vpop.f32.mrf.mxu1  ;;  %1947 = vrot.lane.b32.xlu0 %v4678_v15, %s4168_s15  ;;  %8947 = vst [vmem:[#allocation50_spill] sm:$0xff] %v4712_v62  ;;  %v354_v1 = vpop.permute.xlu0 %353 }
  0xdf   :  { %v3926_v40 = vpop.f32.mrf.mxu0 }
  0xe0   :  { %v1036_v3 = vadd.f32 %v972_v6, %v4699_v12  ;;  %v1037_v35 = vadd.f32 %v973_v19, %v4702_v46  ;;  %v3942_v28 = vpop.f32.mrf.mxu1  ;;  %1957 = vrot.lane.b32.xlu1 %v4696_v23, %s4168_s15  ;;  %v1035_v6 = vadd.f32 %v971_v20, %v4684_v63  ;;  %v4722_v19 = vmul.f32 %v4604_v52, %v4482_v50 }
  0xe1   :  { %v1634_v45 = vpop.f32.mrf.mxu0  ;;  %v974_v50 = vadd.f32 %v4731_v49, %v4712_v62 }
  0xe2   :  { %8948 = vst [vmem:[#allocation51_spill] sm:$0xff] %v4722_v19  ;;  %v1100_v44 = vadd.f32 %v1036_v3, %v4668_v38  ;;  %v1101_v43 = vadd.f32 %v1037_v35, %v4672_v51  ;;  %v1698_v23 = vpop.f32.mrf.mxu1  ;;  %v762_v48 = vpop.permute.xlu1 %761  ;;  %v4744_v3 = vmul.f32 %v4606_v17, %v354_v1  ;;  %v4747_v35 = vmul.f32 %v4610_v34, %v354_v1 }
  0xe3   :  { %v4738_v20 = vmul.f32 %v4626_v8, %v762_v48  ;;  %v4741_v13 = vmul.f32 %v4628_v4, %v762_v48  ;;  %v3927_v0 = vpop.f32.mrf.mxu0 }
  0xe4   :  { %4022 = vrcp.f32 %v1100_v44  ;;  %v4749_v22 = vpack.c.bf16 %v3927_v0, %v3926_v40  ;;  %v3943_v51 = vpop.f32.mrf.mxu1  ;;  %1941 = vrot.lane.b32.xlu1 %v4725_v5, %s4168_s15  ;;  %v4763_v44 = vmul.f32 %v4626_v8, %v4546_v10  ;;  %v4767_v40 = vmul.f32 %v4628_v4, %v4546_v10 }
  0xe5   :  { %4024 = vrcp.f32 %v1101_v43  ;;  %v1098_v16 = vadd.f32 %v1034_v29, %v4738_v20  ;;  %v1099_v48 = vadd.f32 %v1035_v6, %v4741_v13  ;;  %v4755_v63 = vpack.c.bf16 %v3943_v51, %v3942_v28  ;;  %v1637_v47 = vpop.f32.mrf.mxu0  ;;  %v4783_v51 = vld [vmem:[%s8503_s2 + $0x8] sm:$0xff] }
  0xe6   :  { %8949 = vst [vmem:[#allocation52_spill] sm:$0xff] %v4749_v22  ;;  %8952 = vst [vmem:[#allocation55_spill] sm:$0xff] %v4763_v44  ;;  %v4770_v43 = vpack.c.bf16 %v3939_v9, %v4616_v26  ;;  %1951 = vrot.lane.b32.xlu0 %v4749_v22, %s4168_s15  ;;  %v1701_v28 = vpop.f32.mrf.mxu1  ;;  %v4776_v29 = vmul.f32 %v4656_v25, %v4559_v14  ;;  %v976_v26 = vadd.f32 %v4744_v3, %v4722_v19 }
  0xe7   :  { %8950 = vst [vmem:[#allocation53_spill] sm:$0xff] %v4755_v63  ;;  %4026 = vrcp.f32 %v1098_v16  ;;  %3574 = vmatprep.subr.bf16.mxu0 %v4755_v63  ;;  %v564_v9 = vpop.permute.xlu1 %563  ;;  %v4786_v10 = vpack.c.bf16 %v1701_v28, %v1698_v23  ;;  %v4796_v6 = vpack.c.bf16 %v1637_v47, %v1634_v45  ;;  %v4800_v0 = vmul.f32 %v4664_v58, %v4559_v14 }
  0xe8   :  { %8953 = vst [vmem:[#allocation56_spill] sm:$0xff] %v4770_v43  ;;  %8954 = vst [vmem:[#allocation57_spill] sm:$0xff] %v4776_v29  ;;  %4028 = vrcp.f32 %v1099_v48  ;;  %v4791_v1 = vmul.f32 %v4656_v25, %v564_v9  ;;  %3575 = vmatpush3.bf16.msra.mxu0 %v4749_v22  ;;  %1963 = vrot.lane.b32.xlu1 %v4770_v43, %s4168_s15  ;;  %v975_v23 = vadd.f32 %v4735_v7, %v4716_v11 }
  0xe9   :  { %8955 = vst [vmem:[#allocation58_spill] sm:$0xff] %v4786_v10  ;;  %v977_v16 = vadd.f32 %v4747_v35, %v4759_v59  ;;  %v4807_v48 = vmul.f32 %v4664_v58, %v564_v9  ;;  %3576 = vmatprep.subr.bf16.mxu0 %v4786_v10  ;;  %v1260_v28 = vunpack.c.l.bf16 %v4783_v51  ;;  %v4812_v45 = vpack.c.bf16 %v1685_v2, %v4650_v33  ;;  %v4831_v2 = vld [vmem:[%s8503_s2] sm:$0xff] }
  0xea   :  { %v1040_v47 = vadd.f32 %v976_v26, %v4791_v1  ;;  %417 = vperm.xlu0 %3969, %v4392_v37   ;;  %v4818_v14 = vmul.f32 %v4604_v52, %v4490_v53  ;;  %v4822_v22 = vmul.f32 %v4608_v24, %v4490_v53  ;;  %v4826_v9 = vmul.f32 %v4606_v17, %v4570_v21 }
  0xeb   :  { %8956 = vst [vmem:[#allocation59_spill] sm:$0xff] %v4812_v45  ;;  %v1041_v33 = vadd.f32 %v977_v16, %v4807_v48  ;;  %v4836_v26 = vmul.f32 %v4610_v34, %v4570_v21  ;;  %v1261_v37 = vunpack.c.h.bf16 %v4783_v51  ;;  %v1038_v62 = vadd.f32 %v974_v50, %v4776_v29  ;;  %v4847_v16 = vld [vmem:[%s8503_s2 + $0x18] sm:$0xff] }
  0xec   :  { %8957 = vst [vmem:[#allocation60_spill] sm:$0xff] %v4818_v14  ;;  %8958 = vst [vmem:[#allocation61_spill] sm:$0xff] %v4822_v22  ;;  %v1104_v53 = vadd.f32 %v1040_v47, %v4763_v44  ;;  %3577 = vmatpush3.bf16.msra.mxu0 %v4796_v6  ;;  %1961 = vrot.lane.b32.xlu1 %v4812_v45, %s4168_s15  ;;  %v770_v19 = vpop.permute.xlu1 %769  ;;  %v1039_v47 = vadd.f32 %v975_v23, %v4800_v0  ;;  %v1258_v44 = vunpack.c.l.bf16 %v4831_v2 }
  0xed   :  { %8959 = vst [vmem:[#allocation62_spill] sm:$0xff] %v4826_v9  ;;  %8960 = vst [vmem:[#allocation63_spill] sm:$0xff] %v4836_v26  ;;  %v1105_v21 = vadd.f32 %v1041_v33, %v4767_v40  ;;  %v4851_v59 = vmul.f32 %v4626_v8, %v770_v19  ;;  %v4854_v51 = vmul.f32 %v4628_v4, %v770_v19  ;;  %3578 = vmatprep.subr.bf16.mxu0 %v4770_v43 }
  0xee   :  { %v4860_v50 = vpack.c.bf16 %v4692_v60, %v4648_v61  ;;  %v1259_v29 = vunpack.c.h.bf16 %v4831_v2  ;;  %4030 = vrcp.f32 %v1104_v53  ;;  %425 = vperm.xlu0 %3969, %v4404_v39   ;;  %v4867_v33 = vmul.f32 %v4656_v25, %v4567_v18 }
  0xef   :  { %4032 = vrcp.f32 %v1105_v21  ;;  %v1102_v19 = vadd.f32 %v1038_v62, %v4851_v59  ;;  %v1103_v23 = vadd.f32 %v1039_v47, %v4854_v51  ;;  %v4873_v60 = vmul.f32 %v4664_v58, %v4567_v18  ;;  %v4908_v21 = vld [vmem:[%s8503_s2 + $0x10] sm:$0xff] }
  0xf0   :  { %8961 = vst [vmem:[#allocation64_spill] sm:$0xff] %v4860_v50  ;;  %v978_v61 = vadd.f32 %v4826_v9, %v4818_v14  ;;  %v979_v2 = vadd.f32 %v4836_v26, %v4822_v22  ;;  %3579 = vmatpush3.bf16.msra.mxu0 %v4678_v15  ;;  %1945 = vrot.lane.b32.xlu1 %v4860_v50, %s4168_s15 }
  0xf1   :  { %v4023_v62 = vpop.eup %4022  ;;  %v4885_v53 = vmul.f32 %v4604_v52, %v4496_v55  ;;  %v4889_v18 = vmul.f32 %v4606_v17, %v4579_v30  ;;  %4034 = vrcp.f32 %v1102_v19  ;;  %3580 = vmatprep.subr.bf16.mxu0 %v4812_v45  ;;  %v4893_v47 = vpop.permute.xlu1 %571  ;;  %v4897_v43 = vmul.f32 %v4608_v24, %v4496_v55 }
  0xf2   :  { %8964 = vst [vmem:[#allocation67_spill] sm:$0xff] %v4893_v47  ;;  %v4025_v39 = vpop.eup %4024  ;;  %v4901_v9 = vmul.f32 %v4610_v34, %v4579_v30  ;;  %v4903_v14 = vmul.f32 %v4023_v62, %v1260_v28  ;;  %4036 = vrcp.f32 %v1103_v23  ;;  %433 = vperm.xlu0 %3969, %v4412_v41   ;;  %v4913_v19 = vmul.f32 %v4604_v52, %v4502_v57 }
  0xf3   :  { %8962 = vst [vmem:[#allocation65_spill] sm:$0xff] %v4885_v53  ;;  %8963 = vst [vmem:[#allocation66_spill] sm:$0xff] %v4889_v18  ;;  %v4917_v55 = vmul.f32 %v4656_v25, %v4573_v27  ;;  %v4921_v30 = vmul.f32 %v4664_v58, %v4573_v27  ;;  %v1325_v28 = vmul.f32 %v4025_v39, %v1261_v37 }
  0xf4   :  { %8965 = vst [vmem:[#allocation68_spill] sm:$0xff] %v4897_v43  ;;  %8966 = vst [vmem:[#allocation69_spill] sm:$0xff] %v4901_v9  ;;  %v4027_v62 = vpop.eup %4026  ;;  %v4925_v45 = vmul.f32 %v4903_v14, %v4699_v12  ;;  %v4929_v41 = vmul.f32 %v4903_v14, %v4668_v38  ;;  %3581 = vmatpush3.bf16.msra.mxu0 %v4860_v50  ;;  %v1042_v23 = vadd.f32 %v978_v61, %v4867_v33 }
  0xf5   :  { %8967 = vst [vmem:[#allocation70_spill] sm:$0xff] %v4917_v55  ;;  %8968 = vst [vmem:[#allocation71_spill] sm:$0xff] %v4921_v30  ;;  %v1043_v22 = vadd.f32 %v979_v2, %v4873_v60  ;;  %v4029_v26 = vpop.eup %4028  ;;  %v982_v27 = vadd.f32 %v4889_v18, %v4885_v53  ;;  %v4937_v37 = vmul.f32 %v1325_v28, %v4702_v46  ;;  %v1262_v12 = vunpack.c.l.bf16 %v4908_v21 }
  0xf6   :  { %8969 = vst [vmem:[#allocation72_spill] sm:$0xff] %v4925_v45  ;;  %8970 = vst [vmem:[#allocation73_spill] sm:$0xff] %v4929_v41  ;;  %v4939_v39 = vmul.f32 %v4027_v62, %v1258_v44  ;;  %1967 = vrot.lane.b32.xlu1 %v4755_v63, %s4168_s15  ;;  %3582 = vmatprep.subr.bf16.mxu0 %v4662_v54  ;;  %v983_v38 = vadd.f32 %v4901_v9, %v4897_v43  ;;  %v778_v2 = vpop.permute.xlu1 %777  ;;  %v8977_v9 = vld [vmem:[#allocation43_spill] sm:$0xff]  ;;  %v8979_v43 = vld [vmem:[#allocation49_spill] sm:$0xff] }
  0xf7   :  { %8971 = vst [vmem:[#allocation74_spill] sm:$0xff] %v4937_v37  ;;  %v1323_v61 = vmul.f32 %v4029_v26, %v1259_v29  ;;  %441 = vperm.xlu0 %3969, %v4419_v42   ;;  %v1828_v18 = vmul.f32 %v1325_v28, %v4660_v31  ;;  %v4951_v46 = vmul.f32 %v4903_v14, %v4640_v32  ;;  %v8975_v31 = vld [vmem:[#allocation44_spill] sm:$0xff]  ;;  %v8976_v26 = vld [vmem:[#allocation38_spill] sm:$0xff] }
  0xf8   :  { %v4955_v44 = vmul.f32 %v4939_v39, %v4738_v20  ;;  %v4958_v62 = vmul.f32 %v4626_v8, %v778_v2  ;;  %v4961_v54 = vmul.f32 %v4628_v4, %v778_v2  ;;  %v1732_v29 = vmul.f32 %v1325_v28, %v4654_v36  ;;  %3583 = vmatpush3.bf16.msra.mxu0 %v4598_v56  ;;  %v8984_v41 = vld [vmem:[#allocation46_spill] sm:$0xff] }
  0xf9   :  { %8972 = vst [vmem:[#allocation75_spill] sm:$0xff] %v4951_v46  ;;  %v4965_v42 = vmul.f32 %v1323_v61, %v4741_v13  ;;  %v1826_v32 = vmul.f32 %v1323_v61, %v8975_v31  ;;  %v1730_v63 = vmul.f32 %v1323_v61, %v8976_v26  ;;  %v4972_v20 = vmul.f32 %v4939_v39, %v8977_v9  ;;  %v8980_v31 = vld [vmem:[#allocation29_spill] sm:$0xff]  ;;  %v9008_v37 = vld [vmem:[#allocation42_spill] sm:$0xff] }
  0xfa   :  { %8973 = vst [vmem:[#allocation76_spill] sm:$0xff] %v4955_v44  ;;  %v1263_v2 = vunpack.c.h.bf16 %v4908_v21  ;;  %v1106_v36 = vadd.f32 %v1042_v23, %v4958_v62  ;;  %v1107_v13 = vadd.f32 %v1043_v22, %v4961_v54  ;;  %1965 = vrot.lane.b32.xlu1 %v4786_v10, %s4168_s15  ;;  %3584 = vmatprep.subr.bf16.mxu0 %v8979_v43  ;;  %v8981_v9 = vld [vmem:[#allocation5_spill] sm:$0xff]  ;;  %v8982_v22 = vld [vmem:[#allocation48_spill] sm:$0xff]  ;;  %v8986_v10 = vld [vmem:[#allocation47_spill] sm:$0xff] }
  0xfb   :  { %8974 = vst [vmem:[#allocation77_spill] sm:$0xff] %v4965_v42  ;;  %8978 = vst [vmem:[#allocation44_spill] sm:$0xff] %v4972_v20  ;;  %v4984_v26 = vmul.f32 %v4606_v17, %v8980_v31  ;;  %449 = vperm.xlu0 %3969, %v8981_v9   ;;  %v1890_v56 = vpack.c.bf16 %v1828_v18, %v1826_v32  ;;  %v1794_v50 = vpack.c.bf16 %v1732_v29, %v1730_v63  ;;  %v4031_v53 = vpop.eup %4030  ;;  %v4989_v23 = vpop.permute.xlu1 %579  ;;  %v8988_v18 = vld [vmem:[#allocation30_spill] sm:$0xff] }
  0xfc   :  { %4038 = vrcp.f32 %v1106_v36  ;;  %v4992_v44 = vmul.f32 %v1323_v61, %v8982_v22  ;;  %v4995_v43 = vmul.f32 %v1325_v28, %v8984_v41  ;;  %v4999_v47 = vmul.f32 %v4939_v39, %v8986_v10  ;;  %v4033_v9 = vpop.eup %4032  ;;  %3585 = vmatpush3.bf16.msra.mxu0 %v4725_v5  ;;  %v5024_v36 = vpop.permute.xlu0 %361  ;;  %v8995_v22 = vld [vmem:[#allocation6_spill] sm:$0xff] }
  0xfd   :  { %v5003_v63 = vmul.f32 %v4608_v24, %v4502_v57  ;;  %v5007_v29 = vmul.f32 %v4656_v25, %v8988_v18  ;;  %v8990_v32 = vunpack.c.l.bf16 %v4847_v16  ;;  %4040 = vrcp.f32 %v1107_v13  ;;  %2017 = vmatprep.mubr.bf16.mxu1 %v1890_v56  ;;  %2178 = vmatprep.mubr.bf16.mxu0 %v1794_v50  ;;  %v8994_v13 = vld [vmem:[#allocation28_spill] sm:$0xff] }
  0xfe   :  { %8983 = vst [vmem:[#allocation38_spill] sm:$0xff] %v4992_v44  ;;  %8985 = vst [vmem:[#allocation43_spill] sm:$0xff] %v4995_v43  ;;  %v5015_v10 = vmul.f32 %v4664_v58, %v8988_v18  ;;  %v8992_v28 = vunpack.c.h.bf16 %v4847_v16  ;;  %1949 = vrot.lane.b32.xlu1 %v4796_v6, %s4168_s15  ;;  %v5028_v56 = vmul.f32 %v4610_v34, %v8980_v31  ;;  %v5037_v16 = vld [vmem:[%s8503_s2 + $0x20] sm:$0xff]  ;;  %3586 = vmatprep.subr.bf16.mxu0 %v8994_v13 }
  0xff   :  { %8987 = vst [vmem:[#allocation29_spill] sm:$0xff] %v4999_v47  ;;  %8989 = vst [vmem:[#allocation5_spill] sm:$0xff] %v5007_v29  ;;  %v5011_v61 = vmul.f32 %v4031_v53, %v8990_v32  ;;  %v4035_v53 = vpop.eup %4034  ;;  %457 = vperm.xlu0 %3969, %v8995_v22   ;;  %v986_v31 = vadd.f32 %v4984_v26, %v4913_v19 }
 0x100   :  { %8991 = vst [vmem:[#allocation48_spill] sm:$0xff] %v5015_v10  ;;  %v1329_v41 = vmul.f32 %v4033_v9, %v8992_v28  ;;  %v1046_v9 = vadd.f32 %v982_v27, %v4917_v55  ;;  %v4037_v18 = vpop.eup %4036  ;;  %v1047_v28 = vadd.f32 %v983_v38, %v4921_v30  ;;  %v786_v21 = vpop.permute.xlu1 %785  ;;  %v9001_v38 = vld [vmem:[#allocation2_spill] sm:$0xff]  ;;  %v9005_v27 = vld [vmem:[#allocation37_spill] sm:$0xff] }
 0x101   :  { %v5032_v50 = vmul.f32 %v5011_v61, %v4791_v1  ;;  %v1326_v1 = vmul.f32 %v4035_v53, %v1262_v12  ;;  %v1327_v57 = vmul.f32 %v4037_v18, %v1263_v2  ;;  %v5053_v22 = vmul.f32 %v5011_v61, %v4744_v3  ;;  %v9000_v12 = vld [vmem:[#allocation27_spill] sm:$0xff] }
 0x102   :  { %v5045_v32 = vmul.f32 %v1329_v41, %v4807_v48  ;;  %v5049_v44 = vmul.f32 %v1329_v41, %v4747_v35  ;;  %v1266_v48 = vunpack.c.l.bf16 %v5037_v16  ;;  %3587 = vmatpush3.bf16.msra.mxu0 %v9000_v12  ;;  %829 = vperm.xlu1 %3981, %v9001_v38   ;;  %v5064_v2 = vmul.f32 %v4626_v8, %v786_v21  ;;  %v9003_v18 = vld [vmem:[#allocation31_spill] sm:$0xff] }
 0x103   :  { %8993 = vst [vmem:[#allocation46_spill] sm:$0xff] %v5032_v50  ;;  %8998 = vst [vmem:[#allocation6_spill] sm:$0xff] %v5053_v22  ;;  %v5058_v55 = vmul.f32 %v1326_v1, %v4851_v59  ;;  %v5067_v35 = vmul.f32 %v4628_v4, %v786_v21  ;;  %v5070_v3 = vmul.f32 %v1327_v57, %v4854_v51  ;;  %v1267_v53 = vunpack.c.h.bf16 %v5037_v16  ;;  %v9004_v59 = vld [vmem:[#allocation7_spill] sm:$0xff]  ;;  %v5086_v16 = vpop.permute.xlu0 %369  ;;  %v5300_v22 = vld [vmem:[%s8500_s0 + $0xb0] sm:$0xff] }
 0x104   :  { %8996 = vst [vmem:[#allocation47_spill] sm:$0xff] %v5045_v32  ;;  %8997 = vst [vmem:[#allocation30_spill] sm:$0xff] %v5049_v44  ;;  %3588 = vmatprep.subr.bf16.mxu0 %v9003_v18  ;;  %465 = vperm.xlu0 %3969, %v9004_v59   ;;  %v1729_v30 = vmul.f32 %v4939_v39, %v9005_v27  ;;  %v1734_v38 = vmul.f32 %v1327_v57, %v4716_v11  ;;  %v9009_v18 = vld [vmem:[#allocation54_spill] sm:$0xff]  ;;  %v4150_v11 = vld [vmem:[%s8500_s0 + $0x28] sm:$0xff] }
 0x105   :  { %8999 = vst [vmem:[#allocation78_spill] sm:$0xff] %v5058_v55  ;;  %9002 = vst [vmem:[#allocation2_spill] sm:$0xff] %v5070_v3  ;;  %v1110_v42 = vadd.f32 %v1046_v9, %v5064_v2  ;;  %v1111_v43 = vadd.f32 %v1047_v28, %v5067_v35  ;;  %v5081_v21 = vmul.f32 %v1327_v57, %v4735_v7  ;;  %v9011_v9 = vld [vmem:[#allocation36_spill] sm:$0xff]  ;;  %v9012_v7 = vmov 1  }
 0x106   :  { %v5084_v51 = vmul.f32 %v1326_v1, %v4731_v49  ;;  %v1731_v59 = vmul.f32 %v4903_v14, %v9008_v37  ;;  %v1736_v13 = vmul.f32 %v1329_v41, %v9009_v18  ;;  %v5094_v39 = vmul.f32 %v1327_v57, %v4800_v0  ;;  %3589 = vmatpush3.bf16.msra.mxu0 %v9011_v9  ;;  %v5098_v49 = vpop.permute.xlu1 %587 }
 0x107   :  { %9006 = vst [vmem:[#allocation7_spill] sm:$0xff] %v5081_v21  ;;  %4042 = vrcp.f32 %v1110_v42  ;;  %3982 = vset.pattern.permute.xlu1 %v9012_v7  ;;  %v5105_v37 = vmul.f32 %v1329_v41, %v4767_v40  ;;  %v987_v0 = vadd.f32 %v5028_v56, %v5003_v63  ;;  %v9014_v42 = vld [vmem:[#allocation4_spill] sm:$0xff]  ;;  %v9015_v57 = vmov 3   ;;  %v9016_v41 = vld [vmem:[#allocation57_spill] sm:$0xff] }
 0x108   :  { %9007 = vst [vmem:[#allocation37_spill] sm:$0xff] %v5084_v51  ;;  %9010 = vst [vmem:[#allocation42_spill] sm:$0xff] %v5094_v39  ;;  %4044 = vrcp.f32 %v1111_v43  ;;  %413 = vperm.xlu1 %3982, %v9014_v42   ;;  %4001 = vset.pattern.permute.xlu0 %v9015_v57  ;;  %v1793_v27 = vpack.c.bf16 %v1731_v59, %v1729_v30  ;;  %v1796_v14 = vpack.c.bf16 %v1736_v13, %v1734_v38  ;;  %v9018_v43 = vld [vmem:[#allocation55_spill] sm:$0xff]  ;;  %v5131_v38 = vpop.permute.xlu0 %377  ;;  %v9020_v40 = vmov 2  }
 0x109   :  { %9013 = vst [vmem:[#allocation54_spill] sm:$0xff] %v5105_v37  ;;  %781 = vperm.xlu0 %4001, %v4150_v11   ;;  %v5119_v28 = vmul.f32 %v1326_v1, %v9016_v41  ;;  %v5123_v47 = vmul.f32 %v5011_v61, %v9018_v43  ;;  %v4039_v30 = vpop.eup %4038  ;;  %v1050_v3 = vadd.f32 %v986_v31, %v5007_v29  ;;  %v4151_v31 = vld [vmem:[%s8500_s0 + $0x38] sm:$0xff]  ;;  %v9027_v29 = vld [vmem:[#allocation3_spill] sm:$0xff] }
 0x10a   :  { %2179 = vmatmul.mubr.bf16.vlgmr.msra.gmra.mxu0 %v1793_v27  ;;  %v4041_v59 = vpop.eup %4040  ;;  %v5125_v18 = vmul.f32 %v4039_v30, %v1266_v48  ;;  %v794_v43 = vpop.permute.xlu1 %793  ;;  %v1051_v27 = vadd.f32 %v987_v0, %v5015_v10  ;;  %v9021_v48 = vld [vmem:[#allocation50_spill] sm:$0xff]  ;;  %v9024_v0 = vld [vmem:[#allocation51_spill] sm:$0xff] }
 0x10b   :  { %9017 = vst [vmem:[#allocation4_spill] sm:$0xff] %v5119_v28  ;;  %9019 = vst [vmem:[#allocation57_spill] sm:$0xff] %v5123_v47  ;;  %2186 = vmatprep.mubr.bf16.mxu0 %v1796_v14  ;;  %v5133_v41 = vmul.f32 %v4041_v59, %v1267_v53  ;;  %v1733_v30 = vmul.f32 %v1326_v1, %v9021_v48  ;;  %v5145_v13 = vmul.f32 %v4626_v8, %v794_v43 }
 0x10c   :  { %3983 = vset.pattern.permute.xlu1 %v9020_v40  ;;  %v5141_v14 = vmul.f32 %v5125_v18, %v4958_v62  ;;  %v5148_v53 = vmul.f32 %v4628_v4, %v794_v43  ;;  %v1232_v62 = vld [vmem:[%s8503_s2 + $0x30] sm:$0xff] }
 0x10d   :  { %623 = vperm.xlu1 %3983, %v9014_v42   ;;  %789 = vperm.xlu0 %4001, %v4151_v31   ;;  %v5155_v1 = vmul.f32 %v5133_v41, %v4961_v54  ;;  %v1735_v42 = vmul.f32 %v5011_v61, %v9024_v0  ;;  %v1114_v59 = vadd.f32 %v1050_v3, %v5145_v13  ;;  %v1270_v11 = vunpack.c.l.bf16 %v1232_v62  ;;  %v4152_v61 = vld [vmem:[%s8500_s0 + $0x48] sm:$0xff]  ;;  %v386_v3 = vpop.permute.xlu0 %385 }
 0x10e   :  { %9022 = vst [vmem:[#allocation55_spill] sm:$0xff] %v5141_v14  ;;  %v1115_v43 = vadd.f32 %v1051_v27, %v5148_v53  ;;  %v5166_v48 = vmul.f32 %v5133_v41, %v4873_v60  ;;  %v5170_v54 = vmul.f32 %v5125_v18, %v4867_v33  ;;  %v1271_v27 = vunpack.c.h.bf16 %v1232_v62  ;;  %v9031_v62 = vld [vmem:[#allocation11_spill] sm:$0xff] }
 0x10f   :  { %9023 = vst [vmem:[#allocation50_spill] sm:$0xff] %v5155_v1  ;;  %v1795_v31 = vpack.c.bf16 %v1735_v42, %v1733_v30  ;;  %4046 = vrcp.f32 %v1114_v59  ;;  %v5173_v10 = vpop.permute.xlu1 %591  ;;  %v5179_v33 = vmul.f32 %v4606_v17, %v386_v3  ;;  %v5182_v0 = vmul.f32 %v4610_v34, %v386_v3 }
 0x110   :  { %9025 = vst [vmem:[#allocation51_spill] sm:$0xff] %v5166_v48  ;;  %9026 = vst [vmem:[#allocation79_spill] sm:$0xff] %v5170_v54  ;;  %4048 = vrcp.f32 %v1115_v43  ;;  %v5192_v43 = vmul.f32 %v4604_v52, %v9031_v62 }
 0x111   :  { %627 = vperm.xlu1 %3983, %v9027_v29   ;;  %797 = vperm.xlu0 %4001, %v4152_v61   ;;  %9028 = vst [vmem:[#allocation3_spill] sm:$0xff] %v5179_v33  ;;  %9029 = vst [vmem:[#allocation80_spill] sm:$0xff] %v5182_v0  ;;  %v4153_v61 = vld [vmem:[%s8500_s0 + $0x50] sm:$0xff] }
 0x112   :  { %2187 = vmatmul.mubr.bf16.gmra.mxu0 %v1795_v31 }
 0x113   :  { %v596_v59 = vpop.permute.xlu1 %595 }
 0x114   :  { %v4043_v60 = vpop.eup %4042 }
 0x115   :  { %v4045_v30 = vpop.eup %4044  ;;  %v5184_v42 = vmul.f32 %v4043_v60, %v1270_v11  ;;  %3984 = vset.pattern.permute.xlu1 %v9015_v57  ;;  %801 = vperm.xlu0 %4001, %v4153_v61   ;;  %v5199_v11 = vmul.f32 %v4608_v24, %v9031_v62  ;;  %v1234_v60 = vld [vmem:[%s8503_s2 + $0x40] sm:$0xff]  ;;  %v5209_v61 = vmul.f32 %v4656_v25, %v596_v59 }
 0x116   :  { %v5194_v31 = vmul.f32 %v4045_v30, %v1271_v27  ;;  %837 = vperm.xlu1 %3984, %v9027_v29   ;;  %v5212_v27 = vmul.f32 %v4664_v58, %v596_v59  ;;  %v5221_v30 = vld [vmem:[%s8500_s0 + $0xa0] sm:$0xff]  ;;  %v1274_v54 = vunpack.c.l.bf16 %v1234_v60  ;;  %v1275_v48 = vunpack.c.h.bf16 %v1234_v60 }
 0x117   :  { %9030 = vst [vmem:[#allocation81_spill] sm:$0xff] %v5184_v42  ;;  %9033 = vst [vmem:[#allocation82_spill] sm:$0xff] %v5199_v11  ;;  %v5203_v3 = vmul.f32 %v5184_v42, %v5064_v2  ;;  %v992_v2 = vadd.f32 %v5179_v33, %v5192_v43  ;;  %v993_v62 = vadd.f32 %v5182_v0, %v5199_v11  ;;  %v4154_v59 = vld [vmem:[%s8500_s0 + $0x60] sm:$0xff] }
 0x118   :  { %9032 = vst [vmem:[#allocation11_spill] sm:$0xff] %v5194_v31  ;;  %v5216_v29 = vmul.f32 %v5194_v31, %v5067_v35  ;;  %v806_v35 = vpop.permute.xlu1 %805 }
 0x119   :  { %9034 = vst [vmem:[#allocation83_spill] sm:$0xff] %v5203_v3  ;;  %809 = vperm.xlu0 %4001, %v4154_v59   ;;  %v1056_v55 = vadd.f32 %v992_v2, %v5209_v61  ;;  %v1057_v47 = vadd.f32 %v993_v62, %v5212_v27  ;;  %v928_v28 = vmul.f32 %v4626_v8, %v806_v35  ;;  %v4155_v59 = vld [vmem:[%s8500_s0 + $0x70] sm:$0xff]  ;;  %v394_v3 = vpop.permute.xlu0 %393 }
 0x11a   :  { %9035 = vst [vmem:[#allocation84_spill] sm:$0xff] %v5216_v29  ;;  %3985 = vset.pattern.permute.xlu1 %v9012_v7  ;;  %v929_v50 = vmul.f32 %v4628_v4, %v806_v35  ;;  %v4158_v35 = vld [vmem:[%s8500_s0 + $0x90] sm:$0xff] }
 0x11b   :  { %421 = vperm.xlu1 %3985, %v5221_v30   ;;  %v1120_v37 = vadd.f32 %v1056_v55, %v928_v28  ;;  %v4156_v55 = vld [vmem:[%s8500_s0 + $0x80] sm:$0xff] }
 0x11c   :  { %v1121_v39 = vadd.f32 %v1057_v47, %v929_v50  ;;  %v4047_v32 = vpop.eup %4046 }
 0x11d   :  { %817 = vperm.xlu0 %4001, %v4155_v59   ;;  %v4049_v45 = vpop.eup %4048  ;;  %v5239_v2 = vmul.f32 %v4047_v32, %v1274_v54  ;;  %4050 = vrcp.f32 %v1120_v37  ;;  %v5242_v62 = vpop.permute.xlu1 %599  ;;  %v5255_v32 = vmul.f32 %v4606_v17, %v394_v3  ;;  %v4157_v54 = vld [vmem:[%s8500_s0 + $0xa8] sm:$0xff] }
 0x11e   :  { %v5244_v29 = vmul.f32 %v4049_v45, %v1275_v48  ;;  %4052 = vrcp.f32 %v1121_v39  ;;  %v5262_v45 = vmul.f32 %v4610_v34, %v394_v3  ;;  %v9042_v48 = vld [vmem:[#allocation13_spill] sm:$0xff] }
 0x11f   :  { %9036 = vst [vmem:[#allocation85_spill] sm:$0xff] %v5239_v2  ;;  %3986 = vset.pattern.permute.xlu1 %v9020_v40  ;;  %v5249_v47 = vmul.f32 %v5239_v2, %v5145_v13  ;;  %9039 = vst [vmem:[#allocation88_spill] sm:$0xff] %v5255_v32  ;;  %v5266_v13 = vmul.f32 %v4604_v52, %v9042_v48 }
 0x120   :  { %9037 = vst [vmem:[#allocation86_spill] sm:$0xff] %v5244_v29  ;;  %631 = vperm.xlu1 %3986, %v5221_v30   ;;  %v5259_v37 = vmul.f32 %v5244_v29, %v5148_v53  ;;  %9041 = vst [vmem:[#allocation90_spill] sm:$0xff] %v5262_v45  ;;  %v5276_v53 = vmul.f32 %v4608_v24, %v9042_v48 }
 0x121   :  { %9038 = vst [vmem:[#allocation87_spill] sm:$0xff] %v5249_v47  ;;  %825 = vperm.xlu0 %4001, %v4156_v55   ;;  %v604_v39 = vpop.permute.xlu1 %603  ;;  %9043 = vst [vmem:[#allocation13_spill] sm:$0xff] %v5266_v13  ;;  %v996_v59 = vadd.f32 %v5255_v32, %v5266_v13  ;;  %v1237_v55 = vld [vmem:[%s8503_s2 + $0x58] sm:$0xff]  ;;  %v5373_v13 = vld [vmem:[%s8500_s0 + $0xf0] sm:$0xff] }
 0x122   :  { %9040 = vst [vmem:[#allocation89_spill] sm:$0xff] %v5259_v37  ;;  %v5272_v60 = vmul.f32 %v4656_v25, %v604_v39  ;;  %9044 = vst [vmem:[#allocation91_spill] sm:$0xff] %v5276_v53  ;;  %v5279_v3 = vmul.f32 %v4664_v58, %v604_v39  ;;  %v997_v47 = vadd.f32 %v5262_v45, %v5276_v53  ;;  %v1280_v37 = vunpack.c.l.bf16 %v1237_v55 }
 0x123   :  { %v1281_v51 = vunpack.c.h.bf16 %v1237_v55 }
 0x124   :  { %635 = vperm.xlu1 %3986, %v4157_v54   ;;  %v1060_v48 = vadd.f32 %v996_v59, %v5272_v60  ;;  %v1061_v14 = vadd.f32 %v997_v47, %v5279_v3 }
 0x125   :  { %833 = vperm.xlu0 %4001, %v4158_v35  }
 0x126   :  { %v814_v39 = vpop.permute.xlu1 %813 }
 0x127   :  { %v932_v35 = vmul.f32 %v4626_v8, %v814_v39  ;;  %v933_v1 = vmul.f32 %v4628_v4, %v814_v39  ;;  %v5350_v39 = vld [vmem:[%s8500_s0 + $0xe0] sm:$0xff] }
 0x128   :  { %3987 = vset.pattern.permute.xlu1 %v9015_v57 }
 0x129   :  { %845 = vperm.xlu1 %3987, %v4157_v54   ;;  %841 = vperm.xlu0 %4001, %v5221_v30   ;;  %v1124_v59 = vadd.f32 %v1060_v48, %v932_v35  ;;  %v1125_v21 = vadd.f32 %v1061_v14, %v933_v1  ;;  %v88_v14 = vld [vmem:[%s8500_s0 + $0xc0] sm:$0xff] }
 0x12a   :  { %v4051_v44 = vpop.eup %4050 }
 0x12b   :  { %v4053_v20 = vpop.eup %4052  ;;  %v5302_v46 = vmul.f32 %v4051_v44, %v1280_v37  ;;  %4054 = vrcp.f32 %v1124_v59  ;;  %v5305_v47 = vpop.permute.xlu1 %397  ;;  %v9052_v59 = vld [vmem:[#allocation15_spill] sm:$0xff] }
 0x12c   :  { %v5308_v54 = vmul.f32 %v4053_v20, %v1281_v51  ;;  %4056 = vrcp.f32 %v1125_v21  ;;  %v402_v21 = vpop.permute.xlu0 %401 }
 0x12d   :  { %3988 = vset.pattern.permute.xlu1 %v9012_v7  ;;  %849 = vperm.xlu0 %4001, %v5300_v22   ;;  %v5315_v55 = vmul.f32 %v5302_v46, %v928_v28  ;;  %v5326_v20 = vmul.f32 %v5302_v46, %v5209_v61  ;;  %v5334_v28 = vld [vmem:[%s8500_s0 + $0xd0] sm:$0xff]  ;;  %v5345_v61 = vmul.f32 %v4610_v34, %v402_v21 }
 0x12e   :  { %9045 = vst [vmem:[#allocation92_spill] sm:$0xff] %v5308_v54  ;;  %429 = vperm.xlu1 %3988, %v5300_v22   ;;  %v5318_v44 = vmul.f32 %v5308_v54, %v929_v50  ;;  %v5322_v37 = vmul.f32 %v5308_v54, %v5212_v27  ;;  %v1239_v50 = vld [vmem:[%s8503_s2 + $0x68] sm:$0xff]  ;;  %v5341_v27 = vmul.f32 %v4606_v17, %v402_v21  ;;  %v9125_v54 = vld [vmem:[#allocation25_spill] sm:$0xff] }
 0x12f   :  { %9046 = vst [vmem:[#allocation93_spill] sm:$0xff] %v5315_v55  ;;  %9049 = vst [vmem:[#allocation96_spill] sm:$0xff] %v5326_v20  ;;  %v5354_v20 = vmul.f32 %v4604_v52, %v9052_v59  ;;  %v4159_v55 = vld [vmem:[%s8500_s0 + $0xb8] sm:$0xff]  ;;  %v5362_v21 = vmul.f32 %v4608_v24, %v9052_v59  ;;  %v1285_v9 = vunpack.c.h.bf16 %v1239_v50 }
 0x130   :  { %9047 = vst [vmem:[#allocation94_spill] sm:$0xff] %v5318_v44  ;;  %9048 = vst [vmem:[#allocation95_spill] sm:$0xff] %v5322_v37  ;;  %v5329_v51 = vpop.permute.xlu1 %607  ;;  %v1284_v37 = vunpack.c.l.bf16 %v1239_v50 }
 0x131   :  { %857 = vperm.xlu0 %4001, %v88_v14   ;;  %9050 = vst [vmem:[#allocation97_spill] sm:$0xff] %v5341_v27  ;;  %9051 = vst [vmem:[#allocation98_spill] sm:$0xff] %v5345_v61  ;;  %v1000_v45 = vadd.f32 %v5341_v27, %v5354_v20  ;;  %v1001_v32 = vadd.f32 %v5345_v61, %v5362_v21 }
 0x132   :  { %3989 = vset.pattern.permute.xlu1 %v9020_v40  ;;  %9053 = vst [vmem:[#allocation15_spill] sm:$0xff] %v5354_v20  ;;  %9054 = vst [vmem:[#allocation99_spill] sm:$0xff] %v5362_v21 }
 0x133   :  { %639 = vperm.xlu1 %3989, %v5300_v22  }
 0x134   :  { %v612_v48 = vpop.permute.xlu1 %611 }
 0x135   :  { %865 = vperm.xlu0 %4001, %v5334_v28   ;;  %v726_v44 = vmul.f32 %v4656_v25, %v612_v48  ;;  %v727_v12 = vmul.f32 %v4664_v58, %v612_v48 }
 0x137   :  { %643 = vperm.xlu1 %3989, %v4159_v55   ;;  %v1064_v50 = vadd.f32 %v1000_v45, %v726_v44  ;;  %v1065_v27 = vadd.f32 %v1001_v32, %v727_v12 }
 0x138   :  { %v4055_v53 = vpop.eup %4054 }
 0x139   :  { %873 = vperm.xlu0 %4001, %v5350_v39   ;;  %v4057_v33 = vpop.eup %4056  ;;  %v5375_v59 = vmul.f32 %v4055_v53, %v1284_v37  ;;  %v822_v48 = vpop.permute.xlu1 %821 }
 0x13a   :  { %v5378_v0 = vmul.f32 %v4057_v33, %v1285_v9  ;;  %v936_v20 = vmul.f32 %v4626_v8, %v822_v48  ;;  %v937_v61 = vmul.f32 %v4628_v4, %v822_v48 }
 0x13b   :  { %9055 = vst [vmem:[#allocation100_spill] sm:$0xff] %v5375_v59  ;;  %3990 = vset.pattern.permute.xlu1 %v9015_v57  ;;  %v5383_v21 = vmul.f32 %v5375_v59, %v932_v35  ;;  %v5388_v53 = vmul.f32 %v5375_v59, %v5272_v60  ;;  %v1241_v60 = vld [vmem:[%s8503_s2 + $0x78] sm:$0xff] }
 0x13c   :  { %9056 = vst [vmem:[#allocation101_spill] sm:$0xff] %v5378_v0  ;;  %853 = vperm.xlu1 %3990, %v4159_v55   ;;  %v5391_v45 = vmul.f32 %v5378_v0, %v933_v1  ;;  %v1128_v9 = vadd.f32 %v1064_v50, %v936_v20  ;;  %v1129_v33 = vadd.f32 %v1065_v27, %v937_v61  ;;  %v9062_v55 = vmov 0   ;;  %v4160_v27 = vld [vmem:[%s8500_s0 + $0xc8] sm:$0xff] }
 0x13d   :  { %9057 = vst [vmem:[#allocation102_spill] sm:$0xff] %v5383_v21  ;;  %881 = vperm.xlu0 %4001, %v5373_v13   ;;  %9058 = vst [vmem:[#allocation103_spill] sm:$0xff] %v5388_v53  ;;  %v5395_v32 = vmul.f32 %v5378_v0, %v5279_v3  ;;  %v1288_v37 = vunpack.c.l.bf16 %v1241_v60 }
 0x13e   :  { %9059 = vst [vmem:[#allocation104_spill] sm:$0xff] %v5391_v45  ;;  %4058 = vrcp.f32 %v1128_v9  ;;  %v5398_v35 = vpop.permute.xlu1 %405 }
 0x13f   :  { %9060 = vst [vmem:[#allocation105_spill] sm:$0xff] %v5395_v32  ;;  %9061 = vst [vmem:[#allocation106_spill] sm:$0xff] %v5398_v35  ;;  %4060 = vrcp.f32 %v1129_v33 }
 0x140   :  { %3991 = vset.pattern.permute.xlu1 %v9012_v7 }
 0x141   :  { %437 = vperm.xlu1 %3991, %v88_v14   ;;  %4003 = vset.pattern.permute.xlu0 %v9062_v55  ;;  %v9089_v55 = vld [vmem:[#allocation12_spill] sm:$0xff] }
 0x142   :  { %199 = vperm.xlu0 %4003, %v5221_v30   ;;  %v1289_v30 = vunpack.c.h.bf16 %v1241_v60 }
 0x143   :  { %v5403_v1 = vpop.permute.xlu1 %615 }
 0x144   :  { %9063 = vst [vmem:[#allocation107_spill] sm:$0xff] %v5403_v1 }
 0x145   :  { %3992 = vset.pattern.permute.xlu1 %v9020_v40 }
 0x146   :  { %647 = vperm.xlu1 %3992, %v88_v14   ;;  %209 = vperm.xlu0 %4003, %v5300_v22  }
 0x147   :  { %v5409_v3 = vpop.permute.xlu1 %619 }
 0x148   :  { %9064 = vst [vmem:[#allocation108_spill] sm:$0xff] %v5409_v3 }
 0x14a   :  { %651 = vperm.xlu1 %3992, %v4160_v27   ;;  %219 = vperm.xlu0 %4003, %v88_v14   ;;  %v5428_v14 = vpop.permute.xlu0 %409 }
 0x14b   :  { %v4059_v50 = vpop.eup %4058  ;;  %v5414_v48 = vpop.permute.xlu1 %1955 }
 0x14c   :  { %9065 = vst [vmem:[#allocation109_spill] sm:$0xff] %v5414_v48  ;;  %v4061_v9 = vpop.eup %4060  ;;  %v5416_v33 = vmul.f32 %v4059_v50, %v1288_v37 }
 0x14d   :  { %v5420_v22 = vmul.f32 %v4061_v9, %v1289_v30  ;;  %v4161_v30 = vld [vmem:[%s8500_s0 + $0xd8] sm:$0xff] }
 0x14e   :  { %9066 = vst [vmem:[#allocation110_spill] sm:$0xff] %v5416_v33  ;;  %3993 = vset.pattern.permute.xlu1 %v9015_v57  ;;  %229 = vperm.xlu0 %4003, %v5334_v28   ;;  %v5423_v53 = vmul.f32 %v5416_v33, %v936_v20  ;;  %v5426_v32 = vmul.f32 %v5416_v33, %v726_v44  ;;  %v5441_v20 = vpop.permute.xlu0 %1939 }
 0x14f   :  { %9067 = vst [vmem:[#allocation111_spill] sm:$0xff] %v5420_v22  ;;  %861 = vperm.xlu1 %3993, %v4160_v27   ;;  %v5431_v60 = vmul.f32 %v5420_v22, %v937_v61  ;;  %v5433_v37 = vpop.permute.xlu1 %1953  ;;  %v5436_v50 = vmul.f32 %v5420_v22, %v727_v12  ;;  %9073 = vst [vmem:[#allocation117_spill] sm:$0xff] %v5441_v20  ;;  %v9077_v27 = vld [vmem:[#allocation52_spill] sm:$0xff]  ;;  %v5501_v22 = vmul.f32 %v4604_v52, %v9089_v55 }
 0x150   :  { %9068 = vst [vmem:[#allocation112_spill] sm:$0xff] %v5423_v53  ;;  %9069 = vst [vmem:[#allocation113_spill] sm:$0xff] %v5426_v32 }
 0x151   :  { %9070 = vst [vmem:[#allocation114_spill] sm:$0xff] %v5431_v60  ;;  %9071 = vst [vmem:[#allocation115_spill] sm:$0xff] %v5433_v37  ;;  %v9080_v60 = vld [vmem:[#allocation8_spill] sm:$0xff]  ;;  %v9086_v37 = vld [vmem:[#allocation10_spill] sm:$0xff] }
 0x152   :  { %9072 = vst [vmem:[#allocation116_spill] sm:$0xff] %v5436_v50  ;;  %239 = vperm.xlu0 %4003, %v5350_v39   ;;  %v5447_v61 = vpop.permute.xlu0 %1943  ;;  %v5474_v21 = vmul.f32 %v4604_v52, %v9080_v60  ;;  %v5478_v45 = vmul.f32 %v4608_v24, %v9080_v60  ;;  %v5493_v20 = vmul.f32 %v4604_v52, %v9086_v37  ;;  %9090 = vst [vmem:[#allocation12_spill] sm:$0xff] %v5501_v22 }
 0x153   :  { %3994 = vset.pattern.permute.xlu1 %v9012_v7  ;;  %v5443_v44 = vpop.permute.xlu1 %1937  ;;  %9075 = vst [vmem:[#allocation119_spill] sm:$0xff] %v5447_v61  ;;  %v5497_v60 = vmul.f32 %v4608_v24, %v9086_v37  ;;  %v9100_v61 = vld [vmem:[#allocation18_spill] sm:$0xff] }
 0x154   :  { %445 = vperm.xlu1 %3994, %v5334_v28   ;;  %9074 = vst [vmem:[#allocation118_spill] sm:$0xff] %v5443_v44  ;;  %9081 = vst [vmem:[#allocation8_spill] sm:$0xff] %v5474_v21  ;;  %v5542_v1 = vmul.f32 %v4608_v24, %v9100_v61 }
 0x155   :  { %9082 = vst [vmem:[#allocation122_spill] sm:$0xff] %v5478_v45  ;;  %9087 = vst [vmem:[#allocation10_spill] sm:$0xff] %v5493_v20 }
 0x156   :  { %249 = vperm.xlu0 %4003, %v5373_v13   ;;  %v5459_v32 = vpop.permute.xlu0 %1947  ;;  %9088 = vst [vmem:[#allocation124_spill] sm:$0xff] %v5497_v60  ;;  %9102 = vst [vmem:[#allocation18_spill] sm:$0xff] %v5542_v1 }
 0x157   :  { %v5450_v12 = vpop.permute.xlu1 %1959 }
 0x158   :  { %3995 = vset.pattern.permute.xlu1 %v9020_v40  ;;  %9076 = vst [vmem:[#allocation120_spill] sm:$0xff] %v5450_v12 }
 0x159   :  { %655 = vperm.xlu1 %3995, %v5334_v28  }
 0x15a   :  { %2417 = vrot.lane.b32.xlu0 %v9077_v27, %s4169_s17  ;;  %v5466_v50 = vpop.permute.xlu0 %1951 }
 0x15b   :  { %v5457_v9 = vpop.permute.xlu1 %1957 }
 0x15c   :  { %9078 = vst [vmem:[#allocation52_spill] sm:$0xff] %v5457_v9 }
 0x15d   :  { %659 = vperm.xlu1 %3995, %v4161_v30  }
 0x15e   :  { %2754 = vrot.lane.b32.xlu0 %v9077_v27, %s4170_s19  ;;  %v9083_v27 = vld [vmem:[#allocation9_spill] sm:$0xff] }
 0x15f   :  { %v5464_v28 = vpop.permute.xlu1 %1941  ;;  %v5482_v44 = vmul.f32 %v4604_v52, %v9083_v27 }
 0x160   :  { %9079 = vst [vmem:[#allocation121_spill] sm:$0xff] %v5464_v28  ;;  %v9096_v28 = vld [vmem:[#allocation16_spill] sm:$0xff] }
 0x161   :  { %3996 = vset.pattern.permute.xlu1 %v9015_v57  ;;  %9084 = vst [vmem:[#allocation9_spill] sm:$0xff] %v5482_v44  ;;  %v5520_v0 = vmul.f32 %v4604_v52, %v9096_v28  ;;  %v5524_v59 = vmul.f32 %v4608_v24, %v9096_v28  ;;  %v9103_v28 = vld [vmem:[#allocation19_spill] sm:$0xff] }
 0x162   :  { %869 = vperm.xlu1 %3996, %v4161_v30   ;;  %2415 = vrot.lane.b32.xlu0 %v4796_v6, %s4169_s17  ;;  %v5489_v30 = vmul.f32 %v4608_v24, %v9083_v27  ;;  %v9093_v27 = vld [vmem:[#allocation14_spill] sm:$0xff]  ;;  %v5546_v4 = vmul.f32 %v4604_v52, %v9103_v28  ;;  %v5550_v8 = vmul.f32 %v4608_v24, %v9103_v28 }
 0x163   :  { %v5470_v53 = vpop.permute.xlu1 %1963  ;;  %v5512_v48 = vmul.f32 %v4604_v52, %v9093_v27  ;;  %v5516_v37 = vmul.f32 %v4608_v24, %v9093_v27  ;;  %9097 = vst [vmem:[#allocation16_spill] sm:$0xff] %v5520_v0  ;;  %9098 = vst [vmem:[#allocation128_spill] sm:$0xff] %v5524_v59  ;;  %v5536_v27 = vmul.f32 %v4604_v52, %v9100_v61  ;;  %v9109_v61 = vld [vmem:[#allocation20_spill] sm:$0xff]  ;;  %v9112_v28 = vld [vmem:[#allocation22_spill] sm:$0xff] }
 0x164   :  { %9085 = vst [vmem:[#allocation123_spill] sm:$0xff] %v5489_v30  ;;  %9104 = vst [vmem:[#allocation19_spill] sm:$0xff] %v5546_v4  ;;  %v5564_v1 = vmul.f32 %v4604_v52, %v9109_v61  ;;  %v5568_v4 = vmul.f32 %v4608_v24, %v9109_v61  ;;  %v5587_v61 = vmul.f32 %v4610_v34, %v5024_v36 }
 0x165   :  { %v5504_v33 = vpop.permute.xlu0 %417  ;;  %9094 = vst [vmem:[#allocation14_spill] sm:$0xff] %v5512_v48  ;;  %9095 = vst [vmem:[#allocation127_spill] sm:$0xff] %v5516_v37 }
 0x166   :  { %3997 = vset.pattern.permute.xlu1 %v9012_v7  ;;  %2752 = vrot.lane.b32.xlu0 %v4796_v6, %s4170_s19  ;;  %9091 = vst [vmem:[#allocation125_spill] sm:$0xff] %v5504_v33  ;;  %v5508_v6 = vmul.f32 %v4608_v24, %v9089_v55  ;;  %v9099_v33 = vld [vmem:[#allocation17_spill] sm:$0xff]  ;;  %9105 = vst [vmem:[#allocation129_spill] sm:$0xff] %v5550_v8  ;;  %v5572_v8 = vmul.f32 %v4604_v52, %v9112_v28 }
 0x167   :  { %453 = vperm.xlu1 %3997, %v5350_v39   ;;  %v5528_v55 = vmul.f32 %v4604_v52, %v9099_v33  ;;  %v5532_v9 = vmul.f32 %v4608_v24, %v9099_v33  ;;  %9101 = vst [vmem:[#allocation17_spill] sm:$0xff] %v5536_v27  ;;  %v5538_v3 = vpop.permute.xlu1 %1961  ;;  %v9106_v33 = vld [vmem:[#allocation21_spill] sm:$0xff]  ;;  %9110 = vst [vmem:[#allocation20_spill] sm:$0xff] %v5564_v1 }
 0x168   :  { %9092 = vst [vmem:[#allocation126_spill] sm:$0xff] %v5508_v6  ;;  %v5554_v12 = vmul.f32 %v4604_v52, %v9106_v33  ;;  %v5560_v27 = vmul.f32 %v4608_v24, %v9106_v33  ;;  %9111 = vst [vmem:[#allocation131_spill] sm:$0xff] %v5568_v4  ;;  %v5579_v33 = vmul.f32 %v4608_v24, %v9112_v28 }
 0x169   :  { %9113 = vst [vmem:[#allocation22_spill] sm:$0xff] %v5572_v8  ;;  %9117 = vst [vmem:[#allocation135_spill] sm:$0xff] %v5587_v61  ;;  %v5591_v4 = vmul.f32 %v4606_v17, %v5086_v16  ;;  %v9119_v8 = vld [vmem:[#allocation23_spill] sm:$0xff] }
 0x16a   :  { %9107 = vst [vmem:[#allocation21_spill] sm:$0xff] %v5554_v12  ;;  %2413 = vrot.lane.b32.xlu0 %v4678_v15, %s4169_s17  ;;  %9108 = vst [vmem:[#allocation130_spill] sm:$0xff] %v5560_v27  ;;  %v5575_v12 = vpop.permute.xlu0 %425  ;;  %v5583_v27 = vmul.f32 %v4606_v17, %v5024_v36  ;;  %v5596_v1 = vmul.f32 %v4604_v52, %v9119_v8  ;;  %v5600_v28 = vmul.f32 %v4608_v24, %v9119_v8 }
 0x16b   :  { %3998 = vset.pattern.permute.xlu1 %v9020_v40  ;;  %9114 = vst [vmem:[#allocation132_spill] sm:$0xff] %v5575_v12  ;;  %9115 = vst [vmem:[#allocation133_spill] sm:$0xff] %v5579_v33  ;;  %v9122_v33 = vld [vmem:[#allocation24_spill] sm:$0xff]  ;;  %v5610_v35 = vpop.permute.xlu1 %1945  ;;  %v5622_v8 = vmul.f32 %v4610_v34, %v5086_v16  ;;  %v5644_v16 = vmul.f32 %v4606_v17, %v5131_v38 }
 0x16c   :  { %9116 = vst [vmem:[#allocation134_spill] sm:$0xff] %v5583_v27  ;;  %9118 = vst [vmem:[#allocation136_spill] sm:$0xff] %v5591_v4  ;;  %663 = vperm.xlu1 %3998, %v5350_v39   ;;  %v5604_v12 = vmul.f32 %v4604_v52, %v9122_v33  ;;  %v5608_v36 = vmul.f32 %v4608_v24, %v9122_v33  ;;  %v5614_v39 = vmul.f32 %v4604_v52, %v9125_v54  ;;  %v9131_v33 = vld [vmem:[#allocation26_spill] sm:$0xff] }
 0x16d   :  { %9120 = vst [vmem:[#allocation23_spill] sm:$0xff] %v5596_v1  ;;  %9121 = vst [vmem:[#allocation137_spill] sm:$0xff] %v5600_v28  ;;  %v5618_v1 = vmul.f32 %v4608_v24, %v9125_v54  ;;  %v9129_v28 = vld [vmem:[#allocation33_spill] sm:$0xff] }
 0x16e   :  { %9123 = vst [vmem:[#allocation24_spill] sm:$0xff] %v5604_v12  ;;  %9124 = vst [vmem:[#allocation138_spill] sm:$0xff] %v5608_v36  ;;  %v5626_v12 = vmul.f32 %v4606_v17, %v9129_v28  ;;  %2750 = vrot.lane.b32.xlu0 %v4678_v15, %s4170_s19  ;;  %v5632_v36 = vmul.f32 %v4604_v52, %v9131_v33  ;;  %v5640_v54 = vmul.f32 %v4610_v34, %v9129_v28  ;;  %v4162_v28 = vld [vmem:[%s8500_s0 + $0xe8] sm:$0xff] }
 0x16f   :  { %9126 = vst [vmem:[#allocation25_spill] sm:$0xff] %v5614_v39  ;;  %9127 = vst [vmem:[#allocation139_spill] sm:$0xff] %v5618_v1  ;;  %v5636_v39 = vmul.f32 %v4608_v24, %v9131_v33  ;;  %v5646_v1 = vpop.permute.xlu0 %433  ;;  %v980_v15 = vadd.f32 %v5583_v27, %v5474_v21  ;;  %v984_v33 = vadd.f32 %v5591_v4, %v5482_v44  ;;  %v9138_v24 = vld [vmem:[#allocation41_spill] sm:$0xff]  ;;  %v1968_v44 = vpop.permute.xlu1 %1967 }
 0x170   :  { %9128 = vst [vmem:[#allocation140_spill] sm:$0xff] %v5622_v8  ;;  %9130 = vst [vmem:[#allocation33_spill] sm:$0xff] %v5626_v12  ;;  %667 = vperm.xlu1 %3998, %v4162_v28   ;;  %v5663_v52 = vmul.f32 %v4606_v17, %v9138_v24  ;;  %v5667_v27 = vmul.f32 %v4610_v34, %v9138_v24  ;;  %v5671_v4 = vmul.f32 %v4606_v17, %v5428_v14  ;;  %v9144_v24 = vld [vmem:[#allocation64_spill] sm:$0xff] }
 0x171   :  { %9132 = vst [vmem:[#allocation26_spill] sm:$0xff] %v5632_v36  ;;  %9133 = vst [vmem:[#allocation141_spill] sm:$0xff] %v5636_v39  ;;  %v981_v36 = vadd.f32 %v5587_v61, %v5478_v45  ;;  %v5656_v39 = vmul.f32 %v4610_v34, %v5131_v38  ;;  %v5675_v38 = vmul.f32 %v4610_v34, %v5428_v14  ;;  %v9142_v61 = vld [vmem:[#allocation67_spill] sm:$0xff]  ;;  %3462 = vmatprep.subr.bf16.mxu1 %v1968_v44 }
 0x172   :  { %9134 = vst [vmem:[#allocation142_spill] sm:$0xff] %v5640_v54  ;;  %9135 = vst [vmem:[#allocation143_spill] sm:$0xff] %v5644_v16  ;;  %v985_v21 = vadd.f32 %v5622_v8, %v5489_v30  ;;  %v990_v45 = vadd.f32 %v5626_v12, %v5501_v22  ;;  %2411 = vrot.lane.b32.xlu0 %v9144_v24, %s4169_s17  ;;  %v991_v11 = vadd.f32 %v5640_v54, %v5508_v6 }
 0x173   :  { %9136 = vst [vmem:[#allocation144_spill] sm:$0xff] %v5646_v1  ;;  %9137 = vst [vmem:[#allocation145_spill] sm:$0xff] %v5656_v39  ;;  %v5683_v1 = vmul.f32 %v4656_v25, %v9142_v61  ;;  %v988_v14 = vadd.f32 %v5644_v16, %v5493_v20  ;;  %v5693_v8 = vmul.f32 %v4664_v58, %v9142_v61  ;;  %3463 = vmatpush3.bf16.msra.mxu1 %v5466_v50  ;;  %v5700_v44 = vpop.permute.xlu0 %441  ;;  %v5720_v50 = vld [vmem:[%s8503_s2 + $0x88] sm:$0xff] }
 0x174   :  { %9139 = vst [vmem:[#allocation41_spill] sm:$0xff] %v5663_v52  ;;  %9140 = vst [vmem:[#allocation146_spill] sm:$0xff] %v5667_v27  ;;  %v5697_v12 = vmul.f32 %v4656_v25, %v4989_v23  ;;  %v989_v22 = vadd.f32 %v5656_v39, %v5497_v60  ;;  %v5706_v54 = vmul.f32 %v4664_v58, %v4989_v23  ;;  %3999 = vset.pattern.permute.xlu1 %v9015_v57  ;;  %v1966_v39 = vpop.permute.xlu1 %1965 }
 0x175   :  { %9141 = vst [vmem:[#allocation147_spill] sm:$0xff] %v5671_v4  ;;  %9143 = vst [vmem:[#allocation67_spill] sm:$0xff] %v5683_v1  ;;  %v5710_v16 = vmul.f32 %v4656_v25, %v5098_v49  ;;  %v5714_v61 = vmul.f32 %v4664_v58, %v5098_v49  ;;  %v994_v6 = vadd.f32 %v5663_v52, %v5512_v48  ;;  %877 = vperm.xlu1 %3999, %v4162_v28  }
 0x176   :  { %9145 = vst [vmem:[#allocation64_spill] sm:$0xff] %v5693_v8  ;;  %9146 = vst [vmem:[#allocation148_spill] sm:$0xff] %v5697_v12  ;;  %v995_v23 = vadd.f32 %v5667_v27, %v5516_v37  ;;  %v5728_v20 = vadd.f32 %v5671_v4, %v5528_v55  ;;  %v5732_v49 = vadd.f32 %v5675_v38, %v5532_v9  ;;  %3464 = vmatprep.subr.bf16.mxu1 %v1966_v39  ;;  %v9157_v37 = vld [vmem:[#allocation62_spill] sm:$0xff] }
 0x177   :  { %9147 = vst [vmem:[#allocation149_spill] sm:$0xff] %v5706_v54  ;;  %9148 = vst [vmem:[#allocation150_spill] sm:$0xff] %v5710_v16  ;;  %v5735_v60 = vadd.f32 %v980_v15, %v5683_v1  ;;  %v5739_v30 = vmul.f32 %v4656_v25, %v5173_v10  ;;  %v5743_v52 = vmul.f32 %v4664_v58, %v5173_v10  ;;  %2748 = vrot.lane.b32.xlu0 %v9144_v24, %s4170_s19  ;;  %v5753_v15 = vpop.permute.xlu0 %449  ;;  %v5760_v10 = vld [vmem:[%s8503_s2 + $0x28] sm:$0xff] }
 0x178   :  { %9149 = vst [vmem:[#allocation151_spill] sm:$0xff] %v5714_v61  ;;  %v5748_v48 = vadd.f32 %v981_v36, %v5693_v8  ;;  %v5751_v28 = vadd.f32 %v984_v33, %v5697_v12  ;;  %v5763_v39 = vadd.f32 %v985_v21, %v5706_v54  ;;  %v5766_v36 = vadd.f32 %v988_v14, %v5710_v16  ;;  %v9152_v24 = vld [vmem:[#allocation63_spill] sm:$0xff]  ;;  %v1950_v21 = vpop.permute.xlu1 %1949 }
 0x179   :  { %9150 = vst [vmem:[#allocation152_spill] sm:$0xff] %v5739_v30  ;;  %9151 = vst [vmem:[#allocation153_spill] sm:$0xff] %v5743_v52  ;;  %v5769_v33 = vadd.f32 %v989_v22, %v5714_v61  ;;  %v5773_v12 = vmul.f32 %v5133_v41, %v9152_v24  ;;  %v5777_v27 = vmul.f32 %v4656_v25, %v5242_v62  ;;  %4000 = vset.pattern.permute.xlu1 %v9012_v7  ;;  %v5787_v22 = vld [vmem:[%s8503_s2 + $0x38] sm:$0xff]  ;;  %v5792_v14 = vld [vmem:[%s8503_s2 + $0x48] sm:$0xff] }
 0x17a   :  { %v5781_v1 = vmul.f32 %v4664_v58, %v5242_v62  ;;  %v9155_v24 = vld [vmem:[#allocation61_spill] sm:$0xff]  ;;  %v9156_v61 = vld [vmem:[#allocation60_spill] sm:$0xff]  ;;  %v5803_v7 = vadd.f32 %v990_v45, %v5739_v30  ;;  %v5806_v54 = vadd.f32 %v991_v11, %v5743_v52  ;;  %461 = vperm.xlu1 %4000, %v5373_v13   ;;  %3465 = vmatpush3.bf16.msra.mxu1 %v1950_v21  ;;  %v9161_v30 = vld [vmem:[#allocation66_spill] sm:$0xff] }
 0x17b   :  { %9153 = vst [vmem:[#allocation63_spill] sm:$0xff] %v5777_v27  ;;  %v5796_v16 = vmul.f32 %v5133_v41, %v9155_v24  ;;  %v5800_v62 = vmul.f32 %v5125_v18, %v9156_v61  ;;  %v5812_v4 = vmul.f32 %v5125_v18, %v9157_v37  ;;  %v9158_v41 = vld [vmem:[#allocation32_spill] sm:$0xff]  ;;  %3466 = vmatprep.subr.bf16.mxu1 %v5470_v53  ;;  %v5817_v61 = vpop.permute.xlu0 %457  ;;  %v9160_v21 = vld [vmem:[#allocation65_spill] sm:$0xff]  ;;  %v5858_v52 = vld [vmem:[%s8503_s2 + $0x60] sm:$0xff] }
 0x17c   :  { %9154 = vst [vmem:[#allocation154_spill] sm:$0xff] %v5781_v1  ;;  %2409 = vrot.lane.b32.xlu0 %v9158_v41, %s4169_s17  ;;  %v9159_v11 = vld [vmem:[#allocation68_spill] sm:$0xff]  ;;  %v5826_v8 = vmul.f32 %v5184_v42, %v9160_v21  ;;  %v5830_v18 = vmul.f32 %v5184_v42, %v9161_v30  ;;  %v5838_v45 = vld [vmem:[%s8503_s2 + $0x98] sm:$0xff]  ;;  %v5850_v37 = vadd.f32 %v994_v6, %v5777_v27  ;;  %9165 = vst [vmem:[#allocation62_spill] sm:$0xff] %v5858_v52 }
 0x17d   :  { %v5822_v24 = vmul.f32 %v5194_v31, %v9159_v11  ;;  %9163 = vst [vmem:[#allocation60_spill] sm:$0xff] %v5838_v45  ;;  %v5843_v11 = vld [vmem:[%s8503_s2 + $0x50] sm:$0xff]  ;;  %v9164_v21 = vld [vmem:[#allocation69_spill] sm:$0xff]  ;;  %v5853_v53 = vadd.f32 %v995_v23, %v5781_v1  ;;  %v5862_v42 = vmul.f32 %v5239_v2, %v4913_v19  ;;  %v5870_v6 = vmul.f32 %v4606_v17, %v5305_v47  ;;  %v5889_v27 = vld [vmem:[%s8503_s2 + $0x80] sm:$0xff] }
 0x17e   :  { %9162 = vst [vmem:[#allocation61_spill] sm:$0xff] %v5830_v18  ;;  %v5847_v30 = vmul.f32 %v5194_v31, %v9164_v21  ;;  %v5866_v18 = vmul.f32 %v5239_v2, %v4984_v26  ;;  %v5874_v23 = vmul.f32 %v4610_v34, %v5305_v47  ;;  %4002 = vset.pattern.permute.xlu1 %v9020_v40  ;;  %v5877_v21 = vpop.permute.xlu1 %829  ;;  %v5884_v26 = vld [vmem:[%s8503_s2 + $0x70] sm:$0xff]  ;;  %9171 = vst [vmem:[#allocation155_spill] sm:$0xff] %v5889_v27  ;;  %v9180_v19 = vld [vmem:[#allocation82_spill] sm:$0xff] }
 0x17f   :  { %9166 = vst [vmem:[#allocation32_spill] sm:$0xff] %v5862_v42  ;;  %9168 = vst [vmem:[#allocation65_spill] sm:$0xff] %v5870_v6  ;;  %3467 = vmatpush3.bf16.msra.mxu1 %v5459_v32  ;;  %v5893_v47 = vmul.f32 %v5244_v29, %v5003_v63  ;;  %671 = vperm.xlu1 %4002, %v5373_v13   ;;  %v5898_v40 = vpop.permute.xlu0 %465  ;;  %v5905_v2 = vmul.f32 %v5244_v29, %v5028_v56  ;;  %v5921_v32 = vld [vmem:[%s8503_s2 + $0x90] sm:$0xff]  ;;  %v5936_v56 = vld [vmem:[%s8503_s2 + $0xa8] sm:$0xff] }
 0x180   :  { %9167 = vst [vmem:[#allocation68_spill] sm:$0xff] %v5866_v18  ;;  %9169 = vst [vmem:[#allocation66_spill] sm:$0xff] %v5874_v23  ;;  %2746 = vrot.lane.b32.xlu0 %v9158_v41, %s4170_s19  ;;  %v5909_v63 = vmul.f32 %v4656_v25, %v5329_v51  ;;  %v5913_v13 = vmul.f32 %v4664_v58, %v5329_v51  ;;  %3468 = vmatprep.subr.bf16.mxu1 %v5538_v3  ;;  %v4163_v29 = vld [vmem:[%s8500_s0 + $0xf8] sm:$0xff]  ;;  %v9181_v31 = vld [vmem:[#allocation92_spill] sm:$0xff] }
 0x181   :  { %9170 = vst [vmem:[#allocation69_spill] sm:$0xff] %v5884_v26  ;;  %9172 = vst [vmem:[#allocation156_spill] sm:$0xff] %v5893_v47  ;;  %v998_v3 = vadd.f32 %v5870_v6, %v5520_v0  ;;  %v999_v41 = vadd.f32 %v5874_v23, %v5524_v59  ;;  %v5940_v1 = vmul.f32 %v5302_v46, %v5192_v43  ;;  %v9183_v6 = vld [vmem:[#allocation80_spill] sm:$0xff]  ;;  %v9185_v0 = vld [vmem:[#allocation3_spill] sm:$0xff] }
 0x182   :  { %9173 = vst [vmem:[#allocation157_spill] sm:$0xff] %v5898_v40  ;;  %9174 = vst [vmem:[#allocation158_spill] sm:$0xff] %v5905_v2  ;;  %v5952_v40 = vmul.f32 %v9181_v31, %v9180_v19  ;;  %v5956_v43 = vmul.f32 %v9181_v31, %v9183_v6  ;;  %v5960_v23 = vmul.f32 %v5302_v46, %v9185_v0  ;;  %v9189_v19 = vld [vmem:[#allocation120_spill] sm:$0xff]  ;;  %v5977_v46 = vld [vmem:[%s8503_s2 + $0xb8] sm:$0xff] }
 0x183   :  { %9175 = vst [vmem:[#allocation159_spill] sm:$0xff] %v5909_v63  ;;  %9176 = vst [vmem:[#allocation160_spill] sm:$0xff] %v5913_v13  ;;  %3469 = vmatpush3.bf16.msra.mxu1 %v5610_v35  ;;  %675 = vperm.xlu1 %4002, %v4163_v29   ;;  %v5945_v51 = vpop.permute.xlu1 %413  ;;  %v5963_v59 = vadd.f32 %v998_v3, %v5909_v63  ;;  %v5966_v26 = vadd.f32 %v999_v41, %v5913_v13  ;;  %v9192_v6 = vld [vmem:[#allocation39_spill] sm:$0xff]  ;;  %v9193_v3 = vld [vmem:[#allocation40_spill] sm:$0xff] }
 0x184   :  { %9177 = vst [vmem:[#allocation161_spill] sm:$0xff] %v5921_v32  ;;  %9178 = vst [vmem:[#allocation162_spill] sm:$0xff] %v5936_v56  ;;  %2407 = vrot.lane.b32.xlu0 %v4725_v5, %s4169_s17  ;;  %3470 = vmatprep.subr.bf16.mxu1 %v9189_v19  ;;  %v782_v18 = vpop.permute.xlu0 %781  ;;  %v9195_v13 = vld [vmem:[#allocation107_spill] sm:$0xff] }
 0x185   :  { %9179 = vst [vmem:[#allocation163_spill] sm:$0xff] %v5940_v1  ;;  %9182 = vst [vmem:[#allocation82_spill] sm:$0xff] %v5952_v40  ;;  %v9187_v1 = vld [vmem:[#allocation106_spill] sm:$0xff]  ;;  %v5984_v41 = vmul.f32 %v9192_v6, %v782_v18  ;;  %v5987_v63 = vmul.f32 %v9193_v3, %v782_v18  ;;  %v5992_v31 = vmul.f32 %v4656_v25, %v9195_v13  ;;  %v9200_v40 = vld [vmem:[#allocation119_spill] sm:$0xff] }
 0x186   :  { %9184 = vst [vmem:[#allocation92_spill] sm:$0xff] %v5956_v43  ;;  %9186 = vst [vmem:[#allocation80_spill] sm:$0xff] %v5960_v23  ;;  %v5970_v35 = vmul.f32 %v4606_v17, %v9187_v1  ;;  %v5981_v0 = vmul.f32 %v4610_v34, %v9187_v1  ;;  %v5996_v23 = vmul.f32 %v4664_v58, %v9195_v13  ;;  %v9198_v43 = vld [vmem:[#allocation108_spill] sm:$0xff] }
 0x187   :  { %9190 = vst [vmem:[#allocation106_spill] sm:$0xff] %v5977_v46  ;;  %9194 = vst [vmem:[#allocation40_spill] sm:$0xff] %v5987_v63  ;;  %v6000_v1 = vmul.f32 %v4656_v25, %v9198_v43  ;;  %3471 = vmatpush3.bf16.msra.mxu1 %v9200_v40  ;;  %v6006_v18 = vmul.f32 %v4664_v58, %v9198_v43  ;;  %v1108_v19 = vadd.f32 %v5735_v60, %v5984_v41  ;;  %v9202_v40 = vld [vmem:[#allocation17_spill] sm:$0xff]  ;;  %v9203_v43 = vld [vmem:[#allocation52_spill] sm:$0xff] }
 0x188   :  { %9188 = vst [vmem:[#allocation3_spill] sm:$0xff] %v5970_v35  ;;  %9191 = vst [vmem:[#allocation120_spill] sm:$0xff] %v5981_v0  ;;  %v1109_v52 = vadd.f32 %v5748_v48, %v5987_v63  ;;  %4004 = vset.pattern.permute.xlu1 %v9015_v57  ;;  %2744 = vrot.lane.b32.xlu0 %v4725_v5, %s4170_s19  ;;  %v1002_v32 = vadd.f32 %v5970_v35, %v9202_v40  ;;  %v6018_v56 = vpop.permute.xlu1 %623  ;;  %v790_v42 = vpop.permute.xlu0 %789  ;;  %v6025_v57 = vld [vmem:[%s8503_s2 + $0xa0] sm:$0xff]  ;;  %v9205_v48 = vld [vmem:[#allocation13_spill] sm:$0xff] }
 0x189   :  { %9196 = vst [vmem:[#allocation107_spill] sm:$0xff] %v5992_v31  ;;  %9197 = vst [vmem:[#allocation164_spill] sm:$0xff] %v5996_v23  ;;  %885 = vperm.xlu1 %4004, %v4163_v29   ;;  %3472 = vmatprep.subr.bf16.mxu1 %v9203_v43  ;;  %v9206_v5 = vld [vmem:[#allocation100_spill] sm:$0xff]  ;;  %v9210_v29 = vld [vmem:[#allocation18_spill] sm:$0xff]  ;;  %4062 = vrcp.f32 %v1108_v19  ;;  %v6038_v43 = vmul.f32 %v9192_v6, %v790_v42 }
 0x18a   :  { %9199 = vst [vmem:[#allocation108_spill] sm:$0xff] %v6000_v1  ;;  %9201 = vst [vmem:[#allocation119_spill] sm:$0xff] %v6006_v18  ;;  %v6029_v63 = vmul.f32 %v9206_v5, %v9205_v48  ;;  %v9208_v13 = vld [vmem:[#allocation88_spill] sm:$0xff]  ;;  %v1003_v40 = vadd.f32 %v5981_v0, %v9210_v29  ;;  %v9212_v60 = vld [vmem:[#allocation91_spill] sm:$0xff]  ;;  %v6045_v45 = vadd.f32 %v1002_v32, %v5992_v31  ;;  %4064 = vrcp.f32 %v1109_v52 }
 0x18b   :  { %9204 = vst [vmem:[#allocation52_spill] sm:$0xff] %v6025_v57  ;;  %v6033_v35 = vmul.f32 %v9206_v5, %v9208_v13  ;;  %9211 = vst [vmem:[#allocation88_spill] sm:$0xff] %v6038_v43  ;;  %v9213_v46 = vld [vmem:[#allocation101_spill] sm:$0xff]  ;;  %v6048_v48 = vmul.f32 %v9193_v3, %v790_v42  ;;  %v9217_v5 = vld [vmem:[#allocation90_spill] sm:$0xff]  ;;  %v1069_v32 = vadd.f32 %v5732_v49, %v6006_v18 }
 0x18c   :  { %9207 = vst [vmem:[#allocation13_spill] sm:$0xff] %v6029_v63  ;;  %v6042_v2 = vmul.f32 %v9213_v46, %v9212_v60  ;;  %v9216_v13 = vld [vmem:[#allocation121_spill] sm:$0xff]  ;;  %v6053_v0 = vmul.f32 %v9213_v46, %v9217_v5  ;;  %v6056_v19 = vadd.f32 %v1003_v40, %v5996_v23  ;;  %v1068_v60 = vadd.f32 %v5728_v20, %v6000_v1  ;;  %v9219_v52 = vld [vmem:[#allocation27_spill] sm:$0xff]  ;;  %v6069_v46 = vld [vmem:[%s8503_s2 + $0xb0] sm:$0xff]  ;;  %v6079_v5 = vpop.permute.xlu1 %627 }
 0x18d   :  { %9209 = vst [vmem:[#allocation100_spill] sm:$0xff] %v6033_v35  ;;  %9215 = vst [vmem:[#allocation101_spill] sm:$0xff] %v6048_v48  ;;  %3473 = vmatpush3.bf16.msra.mxu1 %v9216_v13  ;;  %2405 = vrot.lane.b32.xlu0 %v9219_v52, %s4169_s17  ;;  %v9220_v42 = vld [vmem:[#allocation109_spill] sm:$0xff]  ;;  %v6073_v40 = vmul.f32 %v9192_v6, %v5877_v21  ;;  %v1113_v20 = vadd.f32 %v5763_v39, %v6048_v48  ;;  %v6085_v1 = vld [vmem:[%s8503_s2 + $0xc0] sm:$0xff] }
 0x18e   :  { %9214 = vst [vmem:[#allocation91_spill] sm:$0xff] %v6042_v2  ;;  %9218 = vst [vmem:[#allocation121_spill] sm:$0xff] %v6053_v0  ;;  %3474 = vmatprep.subr.bf16.mxu1 %v9220_v42  ;;  %v9222_v49 = vld [vmem:[#allocation53_spill] sm:$0xff]  ;;  %v798_v42 = vpop.permute.xlu0 %797  ;;  %v9224_v31 = vld [vmem:[#allocation15_spill] sm:$0xff]  ;;  %v6093_v39 = vmul.f32 %v9193_v3, %v5877_v21  ;;  %v1112_v48 = vadd.f32 %v5751_v28, %v6038_v43 }
 0x18f   :  { %9221 = vst [vmem:[#allocation90_spill] sm:$0xff] %v6069_v46  ;;  %2433 = vrot.lane.b32.xlu1 %v9222_v49, %s4169_s17  ;;  %9223 = vst [vmem:[#allocation27_spill] sm:$0xff] %v6085_v1  ;;  %v9225_v18 = vld [vmem:[#allocation110_spill] sm:$0xff]  ;;  %v9228_v35 = vld [vmem:[#allocation99_spill] sm:$0xff]  ;;  %4066 = vrcp.f32 %v1113_v20  ;;  %v6149_v43 = vmul.f32 %v9192_v6, %v798_v42  ;;  %v6191_v1 = vmul.f32 %v4656_v25, %v6079_v5 }
 0x190   :  { %v6089_v23 = vmul.f32 %v9225_v18, %v9224_v31  ;;  %9227 = vst [vmem:[#allocation53_spill] sm:$0xff] %v6093_v39  ;;  %v9229_v63 = vld [vmem:[#allocation111_spill] sm:$0xff]  ;;  %v9232_v57 = vld [vmem:[#allocation97_spill] sm:$0xff]  ;;  %v1133_v20 = vadd.f32 %v1069_v32, %v6093_v39  ;;  %4068 = vrcp.f32 %v1112_v48  ;;  %v9251_v32 = vld [vmem:[#allocation118_spill] sm:$0xff]  ;;  %v6185_v48 = vmul.f32 %v4610_v34, %v5700_v44 }
 0x191   :  { %v6099_v29 = vmul.f32 %v9229_v63, %v9228_v35  ;;  %v6104_v13 = vld [vmem:[%s8503_s2 + $0xc8] sm:$0xff]  ;;  %v6108_v31 = vmul.f32 %v9225_v18, %v9232_v57  ;;  %v9235_v21 = vld [vmem:[#allocation117_spill] sm:$0xff]  ;;  %v9236_v35 = vld [vmem:[#allocation98_spill] sm:$0xff]  ;;  %2742 = vrot.lane.b32.xlu0 %v9219_v52, %s4170_s19  ;;  %v838_v46 = vpop.permute.xlu1 %837 }
 0x192   :  { %9226 = vst [vmem:[#allocation109_spill] sm:$0xff] %v6089_v23  ;;  %9231 = vst [vmem:[#allocation110_spill] sm:$0xff] %v6104_v13  ;;  %v9234_v23 = vmov 0   ;;  %3475 = vmatpush3.bf16.msra.mxu1 %v9235_v21  ;;  %v9238_v0 = vld [vmem:[#allocation125_spill] sm:$0xff]  ;;  %v9242_v57 = vld [vmem:[#allocation115_spill] sm:$0xff]  ;;  %v802_v28 = vpop.permute.xlu0 %801 }
 0x193   :  { %9230 = vst [vmem:[#allocation15_spill] sm:$0xff] %v6099_v29  ;;  %9233 = vst [vmem:[#allocation99_spill] sm:$0xff] %v6108_v31  ;;  %4005 = vset.pattern.permute.xlu1 %v9234_v23  ;;  %v6116_v29 = vmul.f32 %v9229_v63, %v9236_v35  ;;  %v6120_v2 = vmul.f32 %v4606_v17, %v9238_v0  ;;  %v6124_v18 = vmul.f32 %v4610_v34, %v9238_v0  ;;  %v6136_v63 = vld [vmem:[%s8503_s2 + $0xd0] sm:$0xff]  ;;  %v9253_v31 = vld [vmem:[#allocation129_spill] sm:$0xff] }
 0x194   :  { %v6127_v23 = vmul.f32 %v9193_v3, %v798_v42  ;;  %3476 = vmatprep.subr.bf16.mxu1 %v9242_v57  ;;  %9243 = vst [vmem:[#allocation125_spill] sm:$0xff] %v6136_v63  ;;  %v9244_v21 = vld [vmem:[#allocation132_spill] sm:$0xff]  ;;  %v1132_v0 = vadd.f32 %v1068_v60, %v6073_v40  ;;  %2770 = vrot.lane.b32.xlu1 %v9222_v49, %s4170_s19  ;;  %v9252_v42 = vld [vmem:[#allocation19_spill] sm:$0xff]  ;;  %9258 = vst [vmem:[#allocation167_spill] sm:$0xff] %v6185_v48 }
 0x195   :  { %9237 = vst [vmem:[#allocation111_spill] sm:$0xff] %v6116_v29  ;;  %9239 = vst [vmem:[#allocation97_spill] sm:$0xff] %v6120_v2  ;;  %v6140_v35 = vmul.f32 %v4606_v17, %v9244_v21  ;;  %v6154_v60 = vmul.f32 %v4610_v34, %v9244_v21  ;;  %v9248_v29 = vld [vmem:[#allocation144_spill] sm:$0xff]  ;;  %v1008_v57 = vadd.f32 %v6120_v2, %v9252_v42 }
 0x196   :  { %9240 = vst [vmem:[#allocation117_spill] sm:$0xff] %v6124_v18  ;;  %9241 = vst [vmem:[#allocation98_spill] sm:$0xff] %v6127_v23  ;;  %v6158_v49 = vmul.f32 %v4606_v17, %v9248_v29  ;;  %v6162_v52 = vmul.f32 %v4610_v34, %v9248_v29  ;;  %3477 = vmatpush3.bf16.msra.mxu1 %v9251_v32  ;;  %v1009_v39 = vadd.f32 %v6124_v18, %v9253_v31  ;;  %v9254_v13 = vld [vmem:[#allocation36_spill] sm:$0xff]  ;;  %v810_v2 = vpop.permute.xlu0 %809  ;;  %v9265_v18 = vld [vmem:[#allocation131_spill] sm:$0xff] }
 0x197   :  { %9245 = vst [vmem:[#allocation115_spill] sm:$0xff] %v6140_v35  ;;  %9246 = vst [vmem:[#allocation132_spill] sm:$0xff] %v6149_v43  ;;  %v1117_v21 = vadd.f32 %v5769_v33, %v6127_v23  ;;  %2403 = vrot.lane.b32.xlu0 %v9254_v13, %s4169_s17  ;;  %v9255_v29 = vld [vmem:[#allocation20_spill] sm:$0xff]  ;;  %v6181_v32 = vmul.f32 %v4606_v17, %v5700_v44  ;;  %4070 = vrcp.f32 %v1132_v0  ;;  %v9259_v33 = vld [vmem:[#allocation58_spill] sm:$0xff]  ;;  %v4063_v0 = vpop.eup %4062 }
 0x198   :  { %9247 = vst [vmem:[#allocation165_spill] sm:$0xff] %v6154_v60  ;;  %9249 = vst [vmem:[#allocation144_spill] sm:$0xff] %v6158_v49  ;;  %v6177_v27 = vadd.f32 %v6140_v35, %v9255_v29  ;;  %2431 = vrot.lane.b32.xlu1 %v9259_v33, %s4169_s17  ;;  %4072 = vrcp.f32 %v1133_v20  ;;  %v1116_v63 = vadd.f32 %v5766_v36, %v6149_v43  ;;  %v9262_v29 = vld [vmem:[#allocation75_spill] sm:$0xff]  ;;  %v9263_v42 = vld [vmem:[#allocation44_spill] sm:$0xff]  ;;  %v6217_v43 = vpop.permute.xlu1 %421 }
 0x199   :  { %9250 = vst [vmem:[#allocation166_spill] sm:$0xff] %v6162_v52  ;;  %9257 = vst [vmem:[#allocation36_spill] sm:$0xff] %v6181_v32  ;;  %v6196_v35 = vmul.f32 %v9193_v3, %v802_v28  ;;  %v9264_v44 = vpack.c.bf16 %v9262_v29, %v9263_v42  ;;  %v6203_v23 = vadd.f32 %v6154_v60, %v9265_v18  ;;  %v9266_v20 = vld [vmem:[#allocation22_spill] sm:$0xff]  ;;  %v9271_v29 = vld [vmem:[#allocation7_spill] sm:$0xff]  ;;  %v4065_v60 = vpop.eup %4064  ;;  %4074 = vrcp.f32 %v1117_v21 }
 0x19a   :  { %9256 = vst [vmem:[#allocation118_spill] sm:$0xff] %v6177_v27  ;;  %9260 = vst [vmem:[#allocation58_spill] sm:$0xff] %v6191_v1  ;;  %v6207_v31 = vadd.f32 %v6158_v49, %v9266_v20  ;;  %v9267_v27 = vld [vmem:[#allocation133_spill] sm:$0xff]  ;;  %v6215_v36 = vmul.f32 %v4606_v17, %v5753_v15  ;;  %v9270_v42 = vld [vmem:[#allocation30_spill] sm:$0xff]  ;;  %v6224_v18 = vmul.f32 %v4610_v34, %v5753_v15  ;;  %v9274_v49 = vunpack.c.l.bf16 %v5760_v10 }
 0x19b   :  { %9261 = vst [vmem:[#allocation168_spill] sm:$0xff] %v6196_v35  ;;  %2018 = vmatmul.mubr.bf16.vlgmr.msra.gmra.mxu1 %v9264_v44  ;;  %v6211_v47 = vadd.f32 %v6162_v52, %v9267_v27  ;;  %v9272_v44 = vpack.c.bf16 %v9270_v42, %v9271_v29  ;;  %v6231_v52 = vmul.f32 %v9192_v6, %v802_v28  ;;  %v9277_v27 = vld [vmem:[#allocation23_spill] sm:$0xff]  ;;  %v9278_v29 = vld [vmem:[#allocation137_spill] sm:$0xff]  ;;  %v9280_v15 = vunpack.c.h.bf16 %v5760_v10  ;;  %v818_v28 = vpop.permute.xlu0 %817 }
 0x19c   :  { %9269 = vst [vmem:[#allocation44_spill] sm:$0xff] %v6215_v36  ;;  %9273 = vst [vmem:[#allocation30_spill] sm:$0xff] %v6224_v18  ;;  %v6228_v20 = vmul.f32 %v4063_v0, %v9274_v49  ;;  %2740 = vrot.lane.b32.xlu0 %v9254_v13, %s4170_s19  ;;  %v6237_v42 = vadd.f32 %v6181_v32, %v9277_v27  ;;  %v6248_v49 = vmul.f32 %v9192_v6, %v838_v46  ;;  %v3114_v13 = vld [vmem:[%s8504_s3 + $0x8] sm:$0xff]  ;;  %v9285_v32 = vld [vmem:[#allocation122_spill] sm:$0xff] }
 0x19d   :  { %9268 = vst [vmem:[#allocation75_spill] sm:$0xff] %v6211_v47  ;;  %2025 = vmatprep.mubr.bf16.mxu1 %v9272_v44  ;;  %9276 = vst [vmem:[#allocation169_spill] sm:$0xff] %v6231_v52  ;;  %v6241_v44 = vadd.f32 %v6185_v48, %v9278_v29  ;;  %v6245_v47 = vmul.f32 %v4065_v60, %v9280_v15  ;;  %2768 = vrot.lane.b32.xlu1 %v9259_v33, %s4170_s19  ;;  %4076 = vrcp.f32 %v1116_v63  ;;  %v9284_v15 = vld [vmem:[#allocation135_spill] sm:$0xff]  ;;  %v9286_v48 = vld [vmem:[#allocation8_spill] sm:$0xff] }
 0x19e   :  { %9275 = vst [vmem:[#allocation7_spill] sm:$0xff] %v6228_v20  ;;  %v6257_v21 = vmul.f32 %v4664_v58, %v6079_v5  ;;  %v1072_v0 = vadd.f32 %v1008_v57, %v6191_v1  ;;  %v1119_v10 = vadd.f32 %v5806_v54, %v6196_v35  ;;  %v6263_v60 = vmul.f32 %v9193_v3, %v810_v2  ;;  %v4067_v5 = vpop.eup %4066  ;;  %v9289_v63 = vld [vmem:[#allocation138_spill] sm:$0xff] }
 0x19f   :  { %9279 = vst [vmem:[#allocation170_spill] sm:$0xff] %v6241_v44  ;;  %9281 = vst [vmem:[#allocation171_spill] sm:$0xff] %v6245_v47  ;;  %v1836_v33 = vmul.f32 %v6245_v47, %v9284_v15  ;;  %v1740_v27 = vmul.f32 %v6245_v47, %v9285_v32  ;;  %v1739_v29 = vmul.f32 %v6228_v20, %v9286_v48  ;;  %v9287_v44 = vld [vmem:[#allocation24_spill] sm:$0xff]  ;;  %v6285_v32 = vpop.permute.xlu1 %631  ;;  %v9292_v48 = vunpack.c.h.bf16 %v5787_v22 }
 0x1a0   :  { %9282 = vst [vmem:[#allocation172_spill] sm:$0xff] %v6257_v21  ;;  %9283 = vst [vmem:[#allocation173_spill] sm:$0xff] %v6263_v60  ;;  %v6273_v57 = vadd.f32 %v6215_v36, %v9287_v44  ;;  %v6277_v54 = vadd.f32 %v6224_v18, %v9289_v63  ;;  %v6281_v1 = vmul.f32 %v4606_v17, %v5945_v51  ;;  %3152 = vperm.xlu0 %4003, %v3114_v13   ;;  %v9295_v18 = vld [vmem:[#allocation56_spill] sm:$0xff]  ;;  %v826_v63 = vpop.permute.xlu0 %825 }
 0x1a1   :  { %v1118_v15 = vadd.f32 %v5803_v7, %v6231_v52  ;;  %v6289_v35 = vmul.f32 %v4067_v5, %v9292_v48  ;;  %v6292_v36 = vmul.f32 %v9193_v3, %v838_v46  ;;  %v1136_v44 = vadd.f32 %v1072_v0, %v6248_v49  ;;  %2429 = vrot.lane.b32.xlu1 %v9295_v18, %s4169_s17  ;;  %v3117_v7 = vld [vmem:[%s8504_s3 + $0x20] sm:$0xff]  ;;  %v9298_v48 = vld [vmem:[#allocation37_spill] sm:$0xff]  ;;  %v4069_v52 = vpop.eup %4068 }
 0x1a2   :  { %9288 = vst [vmem:[#allocation135_spill] sm:$0xff] %v6273_v57  ;;  %9290 = vst [vmem:[#allocation122_spill] sm:$0xff] %v6277_v54  ;;  %v1894_v54 = vpack.c.bf16 %v1836_v33, %v5773_v12  ;;  %v6303_v13 = vmul.f32 %v4656_v25, %v6018_v56  ;;  %v1073_v5 = vadd.f32 %v1009_v39, %v6257_v21  ;;  %4078 = vrcp.f32 %v1119_v10  ;;  %v9297_v46 = vld [vmem:[#allocation6_spill] sm:$0xff]  ;;  %v9301_v10 = vld [vmem:[#allocation21_spill] sm:$0xff] }
 0x1a3   :  { %9291 = vst [vmem:[#allocation8_spill] sm:$0xff] %v6281_v1  ;;  %9293 = vst [vmem:[#allocation174_spill] sm:$0xff] %v6289_v35  ;;  %v9299_v0 = vpack.c.bf16 %v9297_v46, %v9298_v48  ;;  %v6310_v57 = vmul.f32 %v9192_v6, %v826_v63  ;;  %v6313_v12 = vmul.f32 %v9192_v6, %v810_v2  ;;  %4080 = vrcp.f32 %v1118_v15  ;;  %v6323_v48 = vpop.permute.xlu1 %635  ;;  %v9302_v2 = vld [vmem:[#allocation123_spill] sm:$0xff] }
 0x1a4   :  { %9294 = vst [vmem:[#allocation175_spill] sm:$0xff] %v6292_v36  ;;  %9296 = vst [vmem:[#allocation56_spill] sm:$0xff] %v6303_v13  ;;  %v1123_v33 = vadd.f32 %v5853_v53, %v6263_v60  ;;  %v1798_v47 = vpack.c.bf16 %v1740_v27, %v5796_v16  ;;  %v1797_v39 = vpack.c.bf16 %v1739_v29, %v5800_v62  ;;  %3167 = vperm.xlu0 %4003, %v3117_v7   ;;  %v834_v62 = vpop.permute.xlu0 %833  ;;  %v4071_v29 = vpop.eup %4070  ;;  %v9322_v60 = vld [vmem:[#allocation130_spill] sm:$0xff] }
 0x1a5   :  { %2026 = vmatmul.mubr.bf16.gmra.mxu1 %v9299_v0  ;;  %9300 = vst [vmem:[#allocation6_spill] sm:$0xff] %v6313_v12  ;;  %v1006_v21 = vadd.f32 %v6281_v1, %v9301_v10  ;;  %v1130_v46 = vadd.f32 %v6045_v45, %v6310_v57  ;;  %v1744_v0 = vmul.f32 %v6289_v35, %v9302_v2  ;;  %4082 = vrcp.f32 %v1136_v44  ;;  %v3119_v45 = vld [vmem:[%s8504_s3 + $0x30] sm:$0xff] }
 0x1a6   :  { %2033 = vmatprep.mubr.bf16.mxu1 %v1894_v54  ;;  %v6329_v53 = vmul.f32 %v4606_v17, %v5817_v61  ;;  %v6333_v27 = vmul.f32 %v4610_v34, %v5817_v61  ;;  %v1137_v16 = vadd.f32 %v1073_v5, %v6292_v36  ;;  %2194 = vmatprep.mubr.bf16.mxu0 %v1798_v47  ;;  %v9305_v15 = vunpack.c.l.bf16 %v5787_v22  ;;  %v4073_v47 = vpop.eup %4072  ;;  %v9416_v10 = vld [vmem:[#allocation16_spill] sm:$0xff] }
 0x1a7   :  { %2766 = vrot.lane.b32.xlu1 %v9295_v18, %s4170_s19  ;;  %v1070_v54 = vadd.f32 %v1006_v21, %v6303_v13  ;;  %4084 = vrcp.f32 %v1130_v46  ;;  %2195 = vmatmul.mubr.bf16.gmra.mxu0 %v1797_v39  ;;  %v6347_v61 = vmul.f32 %v9192_v6, %v834_v62  ;;  %v6351_v18 = vmul.f32 %v4610_v34, %v5945_v51  ;;  %v4075_v51 = vpop.eup %4074  ;;  %v6376_v2 = vpop.permute.xlu1 %845 }
 0x1a8   :  { %9303 = vst [vmem:[#allocation37_spill] sm:$0xff] %v6329_v53  ;;  %9304 = vst [vmem:[#allocation123_spill] sm:$0xff] %v6333_v27  ;;  %v6344_v7 = vmul.f32 %v4069_v52, %v9305_v15  ;;  %v1122_v44 = vadd.f32 %v5850_v37, %v6313_v12  ;;  %4086 = vrcp.f32 %v1123_v33  ;;  %v6356_v21 = vmul.f32 %v9193_v3, %v818_v28  ;;  %v6380_v15 = vpop.permute.xlu0 %841 }
 0x1a9   :  { %9307 = vst [vmem:[#allocation177_spill] sm:$0xff] %v6351_v18  ;;  %v6360_v22 = vmul.f32 %v4664_v58, %v6018_v56  ;;  %v6363_v52 = vmul.f32 %v9192_v6, %v818_v28  ;;  %v1134_v5 = vadd.f32 %v1070_v54, %v6347_v61  ;;  %v1800_v39 = vpack.c.bf16 %v1744_v0, %v5822_v24  ;;  %v9314_v56 = vld [vmem:[#allocation59_spill] sm:$0xff]  ;;  %v9315_v28 = vld [vmem:[#allocation134_spill] sm:$0xff] }
 0x1aa   :  { %9306 = vst [vmem:[#allocation176_spill] sm:$0xff] %v6344_v7  ;;  %9308 = vst [vmem:[#allocation178_spill] sm:$0xff] %v6356_v21  ;;  %3177 = vperm.xlu0 %4003, %v3119_v45   ;;  %v9311_v46 = vunpack.c.l.bf16 %v5720_v50  ;;  %4088 = vrcp.f32 %v1137_v16  ;;  %v6372_v33 = vmul.f32 %v9193_v3, %v826_v63  ;;  %v1835_v54 = vmul.f32 %v6228_v20, %v9315_v28  ;;  %v3121_v24 = vld [vmem:[%s8504_s3 + $0x40] sm:$0xff]  ;;  %v9318_v63 = vld [vmem:[#allocation140_spill] sm:$0xff]  ;;  %v4077_v13 = vpop.eup %4076 }
 0x1ab   :  { %9309 = vst [vmem:[#allocation179_spill] sm:$0xff] %v6360_v22  ;;  %9310 = vst [vmem:[#allocation180_spill] sm:$0xff] %v6363_v52  ;;  %2427 = vrot.lane.b32.xlu1 %v9314_v56, %s4169_s17  ;;  %v9316_v0 = vunpack.c.h.bf16 %v5720_v50  ;;  %4090 = vrcp.f32 %v1134_v5  ;;  %2202 = vmatprep.mubr.bf16.mxu0 %v1800_v39  ;;  %v1840_v45 = vmul.f32 %v6289_v35, %v9318_v63  ;;  %v9320_v28 = vld [vmem:[#allocation25_spill] sm:$0xff]  ;;  %v9325_v39 = vunpack.c.h.bf16 %v5792_v14 }
 0x1ac   :  { %v6369_v37 = vmul.f32 %v4071_v29, %v9311_v46  ;;  %9313 = vst [vmem:[#allocation182_spill] sm:$0xff] %v6372_v33  ;;  %v9319_v29 = vld [vmem:[#allocation9_spill] sm:$0xff]  ;;  %v6395_v36 = vadd.f32 %v6329_v53, %v9320_v28  ;;  %v1007_v12 = vadd.f32 %v6351_v18, %v9322_v60  ;;  %4092 = vrcp.f32 %v1122_v44 }
 0x1ad   :  { %v6387_v16 = vmul.f32 %v4073_v47, %v9316_v0  ;;  %v1743_v46 = vmul.f32 %v6344_v7, %v9319_v29  ;;  %v1127_v50 = vadd.f32 %v5966_v26, %v6356_v21  ;;  %v9323_v47 = vld [vmem:[#allocation139_spill] sm:$0xff]  ;;  %v6407_v0 = vmul.f32 %v4075_v51, %v9325_v39  ;;  %v6421_v51 = vpop.permute.xlu0 %849  ;;  %v9417_v18 = vld [vmem:[#allocation121_spill] sm:$0xff] }
 0x1ae   :  { %9312 = vst [vmem:[#allocation181_spill] sm:$0xff] %v6369_v37  ;;  %9321 = vst [vmem:[#allocation134_spill] sm:$0xff] %v6395_v36  ;;  %v6403_v5 = vadd.f32 %v6333_v27, %v9323_v47  ;;  %v1126_v63 = vadd.f32 %v5963_v59, %v6363_v52  ;;  %v1893_v29 = vpack.c.bf16 %v1835_v54, %v5812_v4  ;;  %3187 = vperm.xlu0 %4003, %v3121_v24   ;;  %v6432_v54 = vpop.permute.xlu1 %429  ;;  %v9353_v36 = vld [vmem:[#allocation61_spill] sm:$0xff]  ;;  %v9354_v52 = vld [vmem:[#allocation60_spill] sm:$0xff] }
 0x1af   :  { %9317 = vst [vmem:[#allocation59_spill] sm:$0xff] %v6387_v16  ;;  %9326 = vst [vmem:[#allocation9_spill] sm:$0xff] %v6407_v0  ;;  %v6414_v44 = vmul.f32 %v6369_v37, %v6073_v40  ;;  %v1071_v26 = vadd.f32 %v1007_v12, %v6360_v22  ;;  %v1131_v47 = vadd.f32 %v6056_v19, %v6372_v33  ;;  %2764 = vrot.lane.b32.xlu1 %v9314_v56, %s4170_s19  ;;  %v3123_v19 = vld [vmem:[%s8504_s3 + $0x50] sm:$0xff] }
 0x1b0   :  { %9324 = vst [vmem:[#allocation140_spill] sm:$0xff] %v6403_v5  ;;  %v6425_v59 = vmul.f32 %v6369_v37, %v5528_v55  ;;  %v6428_v4 = vmul.f32 %v9193_v3, %v834_v62  ;;  %2034 = vmatmul.mubr.bf16.gmra.mxu1 %v1893_v29  ;;  %v1896_v40 = vpack.c.bf16 %v1840_v45, %v5847_v30  ;;  %v4079_v55 = vpop.eup %4078  ;;  %v9329_v24 = vunpack.c.l.bf16 %v5792_v14  ;;  %v9334_v14 = vld [vmem:[#allocation124_spill] sm:$0xff]  ;;  %v9337_v29 = vld [vmem:[#allocation45_spill] sm:$0xff] }
 0x1b1   :  { %9327 = vst [vmem:[#allocation130_spill] sm:$0xff] %v6414_v44  ;;  %v1799_v12 = vpack.c.bf16 %v1743_v46, %v5826_v8  ;;  %v6439_v56 = vmul.f32 %v6387_v16, %v5532_v9  ;;  %4094 = vrcp.f32 %v1127_v50  ;;  %v6447_v30 = vmul.f32 %v6387_v16, %v5675_v38  ;;  %v9331_v8 = vld [vmem:[#allocation147_spill] sm:$0xff]  ;;  %v4081_v38 = vpop.eup %4080 }
 0x1b2   :  { %9328 = vst [vmem:[#allocation183_spill] sm:$0xff] %v6428_v4  ;;  %v6443_v62 = vmul.f32 %v4077_v13, %v9329_v24  ;;  %v6451_v45 = vmul.f32 %v6369_v37, %v9331_v8  ;;  %v6455_v46 = vmul.f32 %v4606_v17, %v6217_v43  ;;  %4096 = vrcp.f32 %v1126_v63  ;;  %2041 = vmatprep.mubr.bf16.mxu1 %v1896_v40  ;;  %v6477_v40 = vpop.permute.xlu0 %857  ;;  %v9341_v37 = vld [vmem:[#allocation136_spill] sm:$0xff]  ;;  %v9349_v16 = vld [vmem:[#allocation155_spill] sm:$0xff] }
 0x1b3   :  { %v6459_v9 = vmul.f32 %v4656_v25, %v6323_v48  ;;  %2203 = vmatmul.mubr.bf16.gmra.mxu0 %v1799_v12  ;;  %v1748_v13 = vmul.f32 %v6407_v0, %v9334_v14  ;;  %v6465_v50 = vmul.f32 %v6228_v20, %v5984_v41  ;;  %v6469_v39 = vmul.f32 %v4610_v34, %v6217_v43  ;;  %v4083_v12 = vpop.eup %4082  ;;  %v9340_v43 = vld [vmem:[#allocation156_spill] sm:$0xff] }
 0x1b4   :  { %9330 = vst [vmem:[#allocation184_spill] sm:$0xff] %v6443_v62  ;;  %9332 = vst [vmem:[#allocation147_spill] sm:$0xff] %v6451_v45  ;;  %v6473_v63 = vmul.f32 %v4656_v25, %v6285_v32  ;;  %4098 = vrcp.f32 %v1131_v47  ;;  %2425 = vrot.lane.b32.xlu1 %v9337_v29, %s4169_s17  ;;  %3197 = vperm.xlu0 %4003, %v3123_v19   ;;  %v9338_v24 = vunpack.c.h.bf16 %v5843_v11  ;;  %v3125_v47 = vld [vmem:[%s8504_s3 + $0x60] sm:$0xff]  ;;  %v6493_v19 = vld [vmem:[%s8503_s2 + $0xd8] sm:$0xff]  ;;  %v4085_v20 = vpop.eup %4084  ;;  %v9347_v53 = vunpack.c.l.bf16 %v5843_v11 }
 0x1b5   :  { %9333 = vst [vmem:[#allocation185_spill] sm:$0xff] %v6459_v9  ;;  %9335 = vst [vmem:[#allocation124_spill] sm:$0xff] %v6465_v50  ;;  %v1135_v8 = vadd.f32 %v1071_v26, %v6428_v4  ;;  %v1802_v14 = vpack.c.bf16 %v1748_v13, %v9340_v43  ;;  %v1839_v22 = vmul.f32 %v6344_v7, %v9341_v37  ;;  %v6503_v13 = vpop.permute.xlu1 %639  ;;  %v9345_v37 = vld [vmem:[#allocation145_spill] sm:$0xff]  ;;  %v9346_v43 = vld [vmem:[#allocation10_spill] sm:$0xff]  ;;  %v4087_v28 = vpop.eup %4086 }
 0x1b6   :  { %9336 = vst [vmem:[#allocation186_spill] sm:$0xff] %v6473_v63  ;;  %v6481_v41 = vmul.f32 %v4079_v55, %v9338_v24  ;;  %9342 = vst [vmem:[#allocation156_spill] sm:$0xff] %v6493_v19  ;;  %v6497_v55 = vmul.f32 %v4664_v58, %v6285_v32  ;;  %v6501_v26 = vmul.f32 %v4664_v58, %v6323_v48  ;;  %v9350_v32 = vunpack.c.l.bf16 %v9349_v16  ;;  %v9352_v48 = vld [vmem:[#allocation118_spill] sm:$0xff]  ;;  %v9376_v45 = vld [vmem:[#allocation49_spill] sm:$0xff] }
 0x1b7   :  { %v1844_v24 = vmul.f32 %v6407_v0, %v9345_v37  ;;  %v1747_v27 = vmul.f32 %v6443_v62, %v9346_v43  ;;  %v6511_v4 = vmul.f32 %v4081_v38, %v9347_v53  ;;  %v1076_v5 = vadd.f32 %v9352_v48, %v6459_v9  ;;  %2210 = vmatprep.mubr.bf16.mxu0 %v1802_v14  ;;  %v9358_v11 = vld [vmem:[#allocation158_spill] sm:$0xff]  ;;  %v4089_v14 = vpop.eup %4088  ;;  %v9368_v9 = vld [vmem:[#allocation161_spill] sm:$0xff] }
 0x1b8   :  { %9339 = vst [vmem:[#allocation45_spill] sm:$0xff] %v6481_v41  ;;  %9343 = vst [vmem:[#allocation136_spill] sm:$0xff] %v6497_v55  ;;  %v6515_v33 = vmul.f32 %v4085_v20, %v9350_v32  ;;  %v1895_v21 = vpack.c.bf16 %v1839_v22, %v9353_v36  ;;  %v9355_v37 = vunpack.c.l.bf16 %v9354_v52  ;;  %v6526_v43 = vmul.f32 %v9192_v6, %v6376_v2  ;;  %v6531_v20 = vpop.permute.xlu0 %865  ;;  %v9361_v22 = vld [vmem:[#allocation32_spill] sm:$0xff]  ;;  %v9362_v32 = vld [vmem:[#allocation126_spill] sm:$0xff] }
 0x1b9   :  { %9344 = vst [vmem:[#allocation187_spill] sm:$0xff] %v6501_v26  ;;  %9348 = vst [vmem:[#allocation145_spill] sm:$0xff] %v6511_v4  ;;  %v1898_v53 = vpack.c.bf16 %v1844_v24, %v9358_v11  ;;  %2762 = vrot.lane.b32.xlu1 %v9337_v29, %s4170_s19  ;;  %3207 = vperm.xlu0 %4003, %v3125_v47   ;;  %4100 = vrcp.f32 %v1135_v8  ;;  %v1750_v24 = vmul.f32 %v6481_v41, %v9362_v32  ;;  %v3127_v29 = vld [vmem:[%s8504_s3 + $0x70] sm:$0xff]  ;;  %v4091_v47 = vpop.eup %4090  ;;  %v9363_v48 = vld [vmem:[#allocation62_spill] sm:$0xff] }
 0x1ba   :  { %9351 = vst [vmem:[#allocation10_spill] sm:$0xff] %v6515_v33  ;;  %v6522_v50 = vmul.f32 %v4083_v12, %v9355_v37  ;;  %9357 = vst [vmem:[#allocation118_spill] sm:$0xff] %v6526_v43  ;;  %v6536_v36 = vmul.f32 %v6515_v33, %v6310_v57  ;;  %2042 = vmatmul.mubr.bf16.gmra.mxu1 %v1895_v21  ;;  %v1801_v12 = vpack.c.bf16 %v1747_v27, %v9361_v22  ;;  %v644_v27 = vpop.permute.xlu1 %643  ;;  %v9367_v8 = vld [vmem:[#allocation143_spill] sm:$0xff]  ;;  %v4093_v32 = vpop.eup %4092 }
 0x1bb   :  { %9359 = vst [vmem:[#allocation61_spill] sm:$0xff] %v6531_v20  ;;  %v9364_v37 = vunpack.c.h.bf16 %v9363_v48  ;;  %v1077_v57 = vadd.f32 %v6203_v23, %v6501_v26  ;;  %v6552_v21 = vmul.f32 %v9193_v3, %v6376_v2  ;;  %2049 = vmatprep.mubr.bf16.mxu1 %v1898_v53  ;;  %v1843_v22 = vmul.f32 %v6443_v62, %v9367_v8 }
 0x1bc   :  { %9356 = vst [vmem:[#allocation155_spill] sm:$0xff] %v6522_v50  ;;  %9360 = vst [vmem:[#allocation60_spill] sm:$0xff] %v6536_v36  ;;  %v9369_v1 = vunpack.c.l.bf16 %v9368_v9  ;;  %2211 = vmatmul.mubr.bf16.gmra.mxu0 %v1801_v12  ;;  %v6564_v26 = vmul.f32 %v4656_v25, %v644_v27  ;;  %v9373_v2 = vunpack.c.h.bf16 %v9354_v52  ;;  %v6571_v8 = vmul.f32 %v4664_v58, %v644_v27  ;;  %v6575_v38 = vpop.permute.xlu0 %873  ;;  %v9381_v27 = vld [vmem:[#allocation12_spill] sm:$0xff] }
 0x1bd   :  { %v6546_v11 = vmul.f32 %v4087_v28, %v9364_v37  ;;  %9366 = vst [vmem:[#allocation32_spill] sm:$0xff] %v6552_v21  ;;  %v9371_v37 = vld [vmem:[#allocation82_spill] sm:$0xff]  ;;  %2423 = vrot.lane.b32.xlu1 %v9376_v45, %s4169_s17  ;;  %3217 = vperm.xlu0 %4003, %v3127_v29  }
 0x1be   :  { %v6560_v28 = vmul.f32 %v4091_v47, %v9369_v1  ;;  %v1804_v23 = vpack.c.bf16 %v9371_v37, %v1750_v24  ;;  %9372 = vst [vmem:[#allocation62_spill] sm:$0xff] %v6564_v26  ;;  %v6568_v53 = vmul.f32 %v4089_v14, %v9373_v2  ;;  %9375 = vst [vmem:[#allocation161_spill] sm:$0xff] %v6571_v8  ;;  %v9378_v1 = vld [vmem:[#allocation142_spill] sm:$0xff]  ;;  %v9383_v2 = vunpack.c.l.bf16 %v9363_v48  ;;  %v4095_v36 = vpop.eup %4094  ;;  %v9387_v48 = vld [vmem:[#allocation75_spill] sm:$0xff] }
 0x1bf   :  { %9365 = vst [vmem:[#allocation158_spill] sm:$0xff] %v6546_v11  ;;  %9377 = vst [vmem:[#allocation82_spill] sm:$0xff] %v6575_v38  ;;  %v1846_v12 = vmul.f32 %v6481_v41, %v9378_v1  ;;  %v6582_v47 = vmul.f32 %v6522_v50, %v6248_v49  ;;  %v6589_v14 = vadd.f32 %v1076_v5, %v6526_v43  ;;  %v3129_v29 = vld [vmem:[%s8504_s3 + $0x80] sm:$0xff]  ;;  %v9386_v1 = vld [vmem:[#allocation68_spill] sm:$0xff] }
 0x1c0   :  { %9370 = vst [vmem:[#allocation126_spill] sm:$0xff] %v6560_v28  ;;  %9374 = vst [vmem:[#allocation143_spill] sm:$0xff] %v6568_v53  ;;  %v6586_v52 = vmul.f32 %v6560_v28, %v6347_v61  ;;  %2218 = vmatprep.mubr.bf16.mxu0 %v1804_v23  ;;  %v1749_v37 = vmul.f32 %v6511_v4, %v9381_v27  ;;  %v6599_v49 = vld [vmem:[%s8503_s2 + $0xe0] sm:$0xff]  ;;  %v6603_v61 = vmul.f32 %v4093_v32, %v9383_v2  ;;  %v854_v2 = vpop.permute.xlu1 %853  ;;  %v9388_v43 = vld [vmem:[#allocation127_spill] sm:$0xff] }
 0x1c1   :  { %9379 = vst [vmem:[#allocation49_spill] sm:$0xff] %v6582_v47  ;;  %9382 = vst [vmem:[#allocation12_spill] sm:$0xff] %v6599_v49  ;;  %v6606_v5 = vadd.f32 %v1077_v57, %v6552_v21  ;;  %v6610_v23 = vmul.f32 %v9192_v6, %v6380_v15  ;;  %v1897_v24 = vpack.c.bf16 %v1843_v22, %v9386_v1  ;;  %v4097_v21 = vpop.eup %4096  ;;  %v9389_v1 = vld [vmem:[#allocation92_spill] sm:$0xff]  ;;  %2760 = vrot.lane.b32.xlu1 %v9376_v45, %s4170_s19  ;;  %v9392_v45 = vld [vmem:[#allocation163_spill] sm:$0xff] }
 0x1c2   :  { %9380 = vst [vmem:[#allocation142_spill] sm:$0xff] %v6586_v52  ;;  %9384 = vst [vmem:[#allocation188_spill] sm:$0xff] %v6603_v61  ;;  %v1080_v44 = vadd.f32 %v6207_v31, %v6564_v26  ;;  %v1081_v32 = vadd.f32 %v9387_v48, %v6571_v8  ;;  %v1754_v57 = vmul.f32 %v6546_v11, %v9388_v43  ;;  %3227 = vperm.xlu0 %4003, %v3129_v29   ;;  %v6630_v31 = vpop.permute.xlu0 %881  ;;  %v4099_v27 = vpop.eup %4098  ;;  %v9396_v26 = vld [vmem:[#allocation91_spill] sm:$0xff]  ;;  %v9414_v50 = vld [vmem:[#allocation41_spill] sm:$0xff] }
 0x1c3   :  { %9385 = vst [vmem:[#allocation189_spill] sm:$0xff] %v6610_v23  ;;  %v6622_v19 = vmul.f32 %v9192_v6, %v854_v2  ;;  %v6625_v22 = vmul.f32 %v9193_v3, %v854_v2  ;;  %v1900_v38 = vpack.c.bf16 %v9389_v1, %v1846_v12  ;;  %9390 = vst [vmem:[#allocation68_spill] sm:$0xff] %v6630_v31  ;;  %2050 = vmatmul.mubr.bf16.gmra.mxu1 %v1897_v24  ;;  %v9393_v2 = vld [vmem:[#allocation69_spill] sm:$0xff]  ;;  %v3131_v31 = vld [vmem:[%s8504_s3 + $0x90] sm:$0xff] }
 0x1c4   :  { %v6635_v43 = vmul.f32 %v9193_v3, %v6380_v15  ;;  %v6639_v52 = vmul.f32 %v4606_v17, %v6432_v54  ;;  %v6643_v12 = vmul.f32 %v4610_v34, %v6432_v54  ;;  %v1803_v29 = vpack.c.bf16 %v9392_v45, %v1749_v37  ;;  %v438_v45 = vpop.permute.xlu1 %437 }
 0x1c5   :  { %v9394_v1 = vunpack.c.h.bf16 %v9393_v2  ;;  %v1144_v48 = vadd.f32 %v1080_v44, %v6622_v19  ;;  %v1145_v15 = vadd.f32 %v1081_v32, %v6625_v22  ;;  %2057 = vmatprep.mubr.bf16.mxu1 %v1900_v38  ;;  %v1806_v8 = vpack.c.bf16 %v9396_v26, %v1754_v57  ;;  %v9401_v38 = vld [vmem:[#allocation33_spill] sm:$0xff]  ;;  %v9404_v57 = vld [vmem:[#allocation28_spill] sm:$0xff] }
 0x1c6   :  { %9391 = vst [vmem:[#allocation75_spill] sm:$0xff] %v6635_v43  ;;  %v9397_v54 = vunpack.c.l.bf16 %v9393_v2  ;;  %v6662_v37 = vmul.f32 %v9192_v6, %v6421_v51  ;;  %v6666_v44 = vmul.f32 %v9193_v3, %v6421_v51  ;;  %2219 = vmatmul.mubr.bf16.gmra.mxu0 %v1803_v29  ;;  %v1845_v26 = vmul.f32 %v6511_v4, %v9401_v38  ;;  %v9405_v51 = vld [vmem:[#allocation146_spill] sm:$0xff] }
 0x1c7   :  { %v6648_v47 = vmul.f32 %v4095_v36, %v9394_v1  ;;  %v9402_v36 = vunpack.c.h.bf16 %v9349_v16  ;;  %4102 = vrcp.f32 %v1144_v48  ;;  %2226 = vmatprep.mubr.bf16.mxu0 %v1806_v8  ;;  %2421 = vrot.lane.b32.xlu1 %v9404_v57, %s4169_s17  ;;  %v1850_v29 = vmul.f32 %v6546_v11, %v9405_v51  ;;  %v9408_v48 = vld [vmem:[#allocation14_spill] sm:$0xff]  ;;  %v4101_v1 = vpop.eup %4100  ;;  %v9411_v51 = vld [vmem:[#allocation35_spill] sm:$0xff]  ;;  %v9413_v11 = vld [vmem:[#allocation80_spill] sm:$0xff] }
 0x1c8   :  { %v6658_v24 = vmul.f32 %v4097_v21, %v9397_v54  ;;  %9399 = vst [vmem:[#allocation163_spill] sm:$0xff] %v6662_v37  ;;  %9400 = vst [vmem:[#allocation69_spill] sm:$0xff] %v6666_v44  ;;  %v6676_v21 = vmul.f32 %v9192_v6, %v6477_v40  ;;  %v6684_v2 = vmul.f32 %v4656_v25, %v6503_v13  ;;  %4104 = vrcp.f32 %v1145_v15  ;;  %v9410_v38 = vld [vmem:[#allocation34_spill] sm:$0xff] }
 0x1c9   :  { %9395 = vst [vmem:[#allocation127_spill] sm:$0xff] %v6648_v47  ;;  %v6672_v32 = vmul.f32 %v4099_v27, %v9402_v36  ;;  %v6688_v16 = vmul.f32 %v9193_v3, %v6477_v40  ;;  %3237 = vperm.xlu0 %4003, %v3131_v31   ;;  %v200_v27 = vpop.permute.xlu0 %199  ;;  %v1753_v8 = vmul.f32 %v6603_v61, %v9408_v48  ;;  %v3133_v40 = vld [vmem:[%s8504_s3 + $0xa0] sm:$0xff]  ;;  %v9412_v31 = vld [vmem:[#allocation128_spill] sm:$0xff]  ;;  %4106 = vrcp.f32 %v6606_v5 }
 0x1ca   :  { %9398 = vst [vmem:[#allocation92_spill] sm:$0xff] %v6658_v24  ;;  %9406 = vst [vmem:[#allocation33_spill] sm:$0xff] %v6684_v2  ;;  %v6694_v54 = vmul.f32 %v4664_v58, %v6503_v13  ;;  %v6697_v36 = vmul.f32 %v9410_v38, %v200_v27  ;;  %v6700_v49 = vmul.f32 %v9411_v51, %v200_v27  ;;  %v9415_v13 = vld [vmem:[#allocation66_spill] sm:$0xff]  ;;  %v3135_v5 = vld [vmem:[%s8504_s3 + $0xb0] sm:$0xff]  ;;  %4108 = vrcp.f32 %v6589_v14 }
 0x1cb   :  { %9403 = vst [vmem:[#allocation91_spill] sm:$0xff] %v6672_v32  ;;  %9407 = vst [vmem:[#allocation28_spill] sm:$0xff] %v6688_v16  ;;  %v1758_v15 = vmul.f32 %v6648_v47, %v9412_v31  ;;  %v1899_v48 = vpack.c.bf16 %v9413_v11, %v1845_v26  ;;  %v1849_v20 = vmul.f32 %v6603_v61, %v9414_v50  ;;  %2758 = vrot.lane.b32.xlu1 %v9404_v57, %s4170_s19  ;;  %v9418_v50 = vld [vmem:[#allocation18_spill] sm:$0xff] }
 0x1cc   :  { %9409 = vst [vmem:[#allocation146_spill] sm:$0xff] %v6694_v54  ;;  %v6712_v28 = vmul.f32 %v6648_v47, %v9415_v13  ;;  %v6716_v27 = vmul.f32 %v6658_v24, %v9416_v10  ;;  %v1902_v41 = vpack.c.bf16 %v9417_v18, %v1850_v29  ;;  %v1010_v4 = vadd.f32 %v6455_v46, %v6697_v36  ;;  %v9422_v18 = vld [vmem:[#allocation13_spill] sm:$0xff]  ;;  %v648_v47 = vpop.permute.xlu1 %647 }
 0x1cd   :  { %v1011_v31 = vadd.f32 %v6469_v39, %v6700_v49  ;;  %v6727_v11 = vmul.f32 %v6672_v32, %v9418_v50  ;;  %v9419_v26 = vunpack.c.h.bf16 %v9368_v9  ;;  %v6735_v10 = vmul.f32 %v4606_v17, %v438_v45  ;;  %2058 = vmatmul.mubr.bf16.gmra.mxu1 %v1899_v48  ;;  %3247 = vperm.xlu0 %4003, %v3133_v40   ;;  %v210_v61 = vpop.permute.xlu0 %209 }
 0x1ce   :  { %v1805_v29 = vpack.c.bf16 %v9422_v18, %v1753_v8  ;;  %v6739_v57 = vmul.f32 %v4610_v34, %v438_v45  ;;  %2065 = vmatprep.mubr.bf16.mxu1 %v1902_v41  ;;  %v1074_v50 = vadd.f32 %v1010_v4, %v6473_v63  ;;  %v6748_v40 = vmul.f32 %v9410_v38, %v210_v61  ;;  %v9424_v45 = vld [vmem:[#allocation100_spill] sm:$0xff]  ;;  %v9425_v41 = vld [vmem:[#allocation111_spill] sm:$0xff]  ;;  %v9427_v18 = vld [vmem:[#allocation109_spill] sm:$0xff] }
 0x1cf   :  { %v6731_v13 = vmul.f32 %v4101_v1, %v9419_v26  ;;  %9421 = vst [vmem:[#allocation34_spill] sm:$0xff] %v6735_v10  ;;  %v1075_v9 = vadd.f32 %v1011_v31, %v6497_v55  ;;  %v9423_v1 = vld [vmem:[#allocation15_spill] sm:$0xff]  ;;  %v6751_v8 = vmul.f32 %v9411_v51, %v210_v61  ;;  %v1901_v48 = vpack.c.bf16 %v9424_v45, %v1849_v20 }
 0x1d0   :  { %v1808_v26 = vpack.c.bf16 %v9423_v1, %v1758_v15  ;;  %2227 = vmatmul.mubr.bf16.gmra.mxu0 %v1805_v29  ;;  %v1904_v4 = vpack.c.bf16 %v9425_v41, %v6712_v28  ;;  %v9426_v31 = vld [vmem:[#allocation31_spill] sm:$0xff]  ;;  %v1807_v29 = vpack.c.bf16 %v9427_v18, %v6716_v27  ;;  %v1810_v61 = vpack.c.bf16 %v6439_v56, %v6727_v11  ;;  %v652_v14 = vpop.permute.xlu1 %651 }
 0x1d1   :  { %9420 = vst [vmem:[#allocation14_spill] sm:$0xff] %v6731_v13  ;;  %v1139_v15 = vadd.f32 %v1075_v9, %v6635_v43  ;;  %2419 = vrot.lane.b32.xlu1 %v9426_v31, %s4169_s17  ;;  %v1138_v1 = vadd.f32 %v1074_v50, %v6610_v23  ;;  %v1014_v20 = vadd.f32 %v6639_v52, %v6748_v40  ;;  %v220_v9 = vpop.permute.xlu0 %219  ;;  %v3137_v50 = vld [vmem:[%s8504_s3 + $0xc0] sm:$0xff] }
 0x1d2   :  { %2234 = vmatprep.mubr.bf16.mxu0 %v1808_v26  ;;  %v1015_v28 = vadd.f32 %v6643_v12, %v6751_v8  ;;  %3257 = vperm.xlu0 %4003, %v3135_v5   ;;  %v9428_v26 = vld [vmem:[#allocation65_spill] sm:$0xff]  ;;  %v6774_v27 = vmul.f32 %v4656_v25, %v652_v14  ;;  %v6777_v56 = vmul.f32 %v4664_v58, %v652_v14  ;;  %v9431_v5 = vld [vmem:[#allocation120_spill] sm:$0xff] }
 0x1d3   :  { %v6771_v45 = vmul.f32 %v6658_v24, %v9428_v26  ;;  %v6780_v11 = vmul.f32 %v9410_v38, %v220_v9  ;;  %v6787_v41 = vmul.f32 %v6672_v32, %v9431_v5  ;;  %4110 = vrcp.f32 %v1139_v15  ;;  %v9434_v15 = vld [vmem:[#allocation17_spill] sm:$0xff] }
 0x1d4   :  { %9429 = vst [vmem:[#allocation35_spill] sm:$0xff] %v6774_v27  ;;  %9430 = vst [vmem:[#allocation128_spill] sm:$0xff] %v6777_v56  ;;  %v1078_v18 = vadd.f32 %v1014_v20, %v6684_v2  ;;  %v1079_v26 = vadd.f32 %v1015_v28, %v6694_v54  ;;  %v6792_v63 = vmul.f32 %v9411_v51, %v220_v9  ;;  %v4103_v28 = vpop.eup %4102  ;;  %4112 = vrcp.f32 %v1138_v1  ;;  %v9435_v54 = vld [vmem:[#allocation106_spill] sm:$0xff] }
 0x1d5   :  { %v6795_v14 = vmul.f32 %v4656_v25, %v648_v47  ;;  %v6798_v23 = vmul.f32 %v4664_v58, %v648_v47  ;;  %v1018_v43 = vadd.f32 %v6735_v10, %v6780_v11  ;;  %2756 = vrot.lane.b32.xlu1 %v9426_v31, %s4170_s19  ;;  %v6806_v20 = vmul.f32 %v6515_v33, %v9434_v15  ;;  %v4105_v2 = vpop.eup %4104  ;;  %v9437_v15 = vld [vmem:[#allocation170_spill] sm:$0xff] }
 0x1d6   :  { %v1142_v9 = vadd.f32 %v1078_v18, %v6662_v37  ;;  %v1143_v5 = vadd.f32 %v1079_v26, %v6666_v44  ;;  %2066 = vmatmul.mubr.bf16.gmra.mxu1 %v1901_v48  ;;  %v1019_v47 = vadd.f32 %v6739_v57, %v6792_v63  ;;  %3267 = vperm.xlu0 %4003, %v3137_v50   ;;  %v9436_v55 = vunpack.c.l.bf16 %v9435_v54  ;;  %v862_v26 = vpop.permute.xlu1 %861  ;;  %v3590_v48 = vpop.f32.mrf.mxu0  ;;  %v3139_v50 = vld [vmem:[%s8504_s3 + $0xd0] sm:$0xff] }
 0x1d7   :  { %9432 = vst [vmem:[#allocation80_spill] sm:$0xff] %v6795_v14  ;;  %9433 = vst [vmem:[#allocation41_spill] sm:$0xff] %v6798_v23  ;;  %v1084_v31 = vadd.f32 %v6237_v42, %v6774_v27  ;;  %v1085_v1 = vadd.f32 %v9437_v15, %v6777_v56  ;;  %2073 = vmatprep.mubr.bf16.mxu1 %v1904_v4  ;;  %v1082_v18 = vadd.f32 %v1018_v43, %v6795_v14  ;;  %v3141_v15 = vld [vmem:[%s8504_s3 + $0xe0] sm:$0xff]  ;;  %v9474_v14 = vld [vmem:[#allocation52_spill] sm:$0xff] }
 0x1d8   :  { %v6814_v32 = vmul.f32 %v4103_v28, %v9436_v55  ;;  %v9438_v37 = vunpack.c.h.bf16 %v9435_v54  ;;  %4114 = vrcp.f32 %v1142_v9  ;;  %v1083_v55 = vadd.f32 %v1019_v47, %v6798_v23  ;;  %2235 = vmatmul.mubr.bf16.gmra.mxu0 %v1807_v29  ;;  %v9478_v56 = vld [vmem:[#allocation61_spill] sm:$0xff] }
 0x1d9   :  { %v6830_v42 = vmul.f32 %v9192_v6, %v862_v26  ;;  %4116 = vrcp.f32 %v1143_v5  ;;  %v1146_v4 = vadd.f32 %v1082_v18, %v6676_v21  ;;  %2242 = vmatprep.mubr.bf16.mxu0 %v1810_v61  ;;  %v6838_v28 = vmul.f32 %v9193_v3, %v862_v26  ;;  %v230_v61 = vpop.permute.xlu0 %229  ;;  %v9443_v18 = vld [vmem:[#allocation129_spill] sm:$0xff] }
 0x1da   :  { %v6826_v44 = vmul.f32 %v4105_v2, %v9438_v37  ;;  %v6834_v43 = vmul.f32 %v6814_v32, %v6622_v19  ;;  %v3591_v37 = vpop.f32.mrf.mxu0  ;;  %v1147_v54 = vadd.f32 %v1083_v55, %v6688_v16  ;;  %3277 = vperm.xlu0 %4003, %v3139_v50   ;;  %v4107_v19 = vpop.eup %4106  ;;  %v6859_v26 = vmul.f32 %v9410_v38, %v230_v61  ;;  %v9481_v23 = vld [vmem:[#allocation117_spill] sm:$0xff] }
 0x1db   :  { %v1148_v29 = vadd.f32 %v1084_v31, %v6830_v42  ;;  %v6846_v9 = vadd.f32 %v3591_v37, %v3590_v48  ;;  %4118 = vrcp.f32 %v1146_v4  ;;  %v1149_v5 = vadd.f32 %v1085_v1, %v6838_v28  ;;  %v9445_v48 = vld [vmem:[#allocation99_spill] sm:$0xff]  ;;  %v446_v50 = vpop.permute.xlu1 %445 }
 0x1dc   :  { %9439 = vst [vmem:[#allocation66_spill] sm:$0xff] %v6834_v43  ;;  %v6842_v2 = vmul.f32 %v6826_v44, %v6625_v22  ;;  %v6849_v47 = vpop.f32.mrf.mxu0  ;;  %v1766_v22 = vmul.f32 %v6731_v13, %v9322_v60  ;;  %v1768_v31 = vmul.f32 %v6568_v53, %v9443_v18  ;;  %4120 = vrcp.f32 %v1147_v54  ;;  %9444 = vst [vmem:[#allocation13_spill] sm:$0xff] %v6859_v26  ;;  %v4109_v18 = vpop.eup %4108 }
 0x1dd   :  { %9441 = vst [vmem:[#allocation121_spill] sm:$0xff] %v6846_v9  ;;  %9442 = vst [vmem:[#allocation18_spill] sm:$0xff] %v6849_v47  ;;  %v1903_v1 = vpack.c.bf16 %v9445_v48, %v6771_v45  ;;  %v1906_v55 = vpack.c.bf16 %v6447_v30, %v6787_v41  ;;  %4122 = vrcp.f32 %v1148_v29  ;;  %v6866_v4 = vmul.f32 %v9411_v51, %v230_v61  ;;  %v9450_v47 = vld [vmem:[#allocation40_spill] sm:$0xff]  ;;  %v9451_v9 = vld [vmem:[#allocation171_spill] sm:$0xff] }
 0x1de   :  { %9440 = vst [vmem:[#allocation16_spill] sm:$0xff] %v6842_v2  ;;  %v6869_v60 = vmul.f32 %v4606_v17, %v446_v50  ;;  %v6872_v37 = vmul.f32 %v4610_v34, %v446_v50  ;;  %v6874_v54 = vpop.f32.mrf.mxu0  ;;  %v6878_v45 = vmul.f32 %v9451_v9, %v9450_v47  ;;  %v9453_v48 = vld [vmem:[#allocation88_spill] sm:$0xff]  ;;  %4124 = vrcp.f32 %v1149_v5  ;;  %3287 = vperm.xlu0 %4003, %v3141_v15   ;;  %v9455_v29 = vld [vmem:[#allocation101_spill] sm:$0xff] }
 0x1df   :  { %9446 = vst [vmem:[#allocation15_spill] sm:$0xff] %v6866_v4  ;;  %9449 = vst [vmem:[#allocation31_spill] sm:$0xff] %v6874_v54  ;;  %v6882_v30 = vmul.f32 %v6344_v7, %v9453_v48  ;;  %2074 = vmatmul.mubr.bf16.gmra.mxu1 %v1903_v1  ;;  %v1809_v41 = vpack.c.bf16 %v6425_v59, %v6806_v20  ;;  %v6888_v61 = vmul.f32 %v6289_v35, %v9455_v29  ;;  %v9457_v50 = vld [vmem:[#allocation132_spill] sm:$0xff]  ;;  %v9459_v1 = vld [vmem:[#allocation3_spill] sm:$0xff] }
 0x1e0   :  { %9447 = vst [vmem:[#allocation100_spill] sm:$0xff] %v6869_v60  ;;  %9448 = vst [vmem:[#allocation111_spill] sm:$0xff] %v6872_v37  ;;  %v6892_v54 = vmul.f32 %v6443_v62, %v9457_v50  ;;  %2081 = vmatprep.mubr.bf16.mxu1 %v1906_v55  ;;  %v1812_v47 = vpack.c.bf16 %v1768_v31, %v1766_v22  ;;  %v3596_v9 = vpop.f32.mrf.mxu0  ;;  %v3143_v5 = vld [vmem:[%s8504_s3 + $0xf0] sm:$0xff]  ;;  %v1857_v15 = vmul.f32 %v6515_v33, %v9459_v1  ;;  %v9460_v48 = vld [vmem:[#allocation98_spill] sm:$0xff]  ;;  %v4111_v43 = vpop.eup %4110 }
 0x1e1   :  { %9452 = vst [vmem:[#allocation109_spill] sm:$0xff] %v6878_v45  ;;  %9454 = vst [vmem:[#allocation65_spill] sm:$0xff] %v6882_v30  ;;  %v6901_v59 = vmul.f32 %v6407_v0, %v9460_v48  ;;  %v9462_v20 = vld [vmem:[#allocation169_spill] sm:$0xff]  ;;  %v9465_v50 = vld [vmem:[#allocation168_spill] sm:$0xff]  ;;  %2243 = vmatmul.mubr.bf16.gmra.mxu0 %v1809_v41  ;;  %v1022_v1 = vadd.f32 %v6869_v60, %v6859_v26  ;;  %v1023_v48 = vadd.f32 %v6872_v37, %v6866_v4  ;;  %v656_v33 = vpop.permute.xlu1 %655 }
 0x1e2   :  { %9456 = vst [vmem:[#allocation120_spill] sm:$0xff] %v6888_v61  ;;  %9458 = vst [vmem:[#allocation17_spill] sm:$0xff] %v6892_v54  ;;  %v9463_v29 = vld [vmem:[#allocation145_spill] sm:$0xff]  ;;  %v9468_v22 = vld [vmem:[#allocation162_spill] sm:$0xff]  ;;  %2250 = vmatprep.mubr.bf16.mxu0 %v1812_v47  ;;  %v6928_v41 = vmul.f32 %v4656_v25, %v656_v33  ;;  %v6931_v16 = vmul.f32 %v4664_v58, %v656_v33  ;;  %3297 = vperm.xlu0 %4003, %v3143_v5   ;;  %v4113_v47 = vpop.eup %4112 }
 0x1e3   :  { %9461 = vst [vmem:[#allocation106_spill] sm:$0xff] %v6901_v59  ;;  %v6905_v7 = vmul.f32 %v9463_v29, %v9462_v20  ;;  %v9466_v62 = vld [vmem:[#allocation45_spill] sm:$0xff]  ;;  %v9469_v31 = vunpack.c.h.bf16 %v9468_v22  ;;  %v3597_v20 = vpop.f32.mrf.mxu0  ;;  %v1864_v60 = vmul.f32 %v6568_v53, %v9481_v23  ;;  %v9484_v37 = vunpack.c.l.bf16 %v9468_v22  ;;  %v9486_v4 = vld [vmem:[#allocation82_spill] sm:$0xff]  ;;  %v9487_v53 = vld [vmem:[#allocation131_spill] sm:$0xff] }
 0x1e4   :  { %v6909_v55 = vmul.f32 %v9466_v62, %v9465_v50  ;;  %v9471_v29 = vld [vmem:[#allocation177_spill] sm:$0xff]  ;;  %v9473_v62 = vld [vmem:[#allocation126_spill] sm:$0xff]  ;;  %v6933_v2 = vadd.f32 %v3597_v20, %v3596_v9  ;;  %v1086_v9 = vadd.f32 %v1022_v1, %v6928_v41  ;;  %v1087_v5 = vadd.f32 %v1023_v48, %v6931_v16  ;;  %v9482_v20 = vld [vmem:[#allocation19_spill] sm:$0xff] }
 0x1e5   :  { %9464 = vst [vmem:[#allocation170_spill] sm:$0xff] %v6905_v7  ;;  %v6913_v35 = vmul.f32 %v4107_v19, %v9469_v31  ;;  %v1862_v0 = vmul.f32 %v6731_v13, %v9471_v29  ;;  %v9472_v50 = vld [vmem:[#allocation21_spill] sm:$0xff]  ;;  %v9475_v19 = vunpack.c.h.bf16 %v9474_v14  ;;  %v6937_v29 = vmul.f32 %v9192_v6, %v9478_v56  ;;  %v4115_v26 = vpop.eup %4114  ;;  %v9534_v59 = vld [vmem:[#allocation180_spill] sm:$0xff]  ;;  %v9556_v45 = vld [vmem:[#allocation182_spill] sm:$0xff] }
 0x1e6   :  { %9467 = vst [vmem:[#allocation129_spill] sm:$0xff] %v6909_v55  ;;  %v1765_v27 = vmul.f32 %v9473_v62, %v9472_v50  ;;  %9477 = vst [vmem:[#allocation88_spill] sm:$0xff] %v6933_v2  ;;  %v6941_v50 = vmul.f32 %v9193_v3, %v9478_v56  ;;  %v9483_v2 = vld [vmem:[#allocation155_spill] sm:$0xff]  ;;  %v6954_v56 = vmul.f32 %v4109_v18, %v9484_v37  ;;  %v4117_v1 = vpop.eup %4116  ;;  %v9488_v48 = vunpack.c.l.bf16 %v9474_v14  ;;  %v9489_v18 = vld [vmem:[#allocation90_spill] sm:$0xff] }
 0x1e7   :  { %9470 = vst [vmem:[#allocation99_spill] sm:$0xff] %v6913_v35  ;;  %v6925_v31 = vmul.f32 %v4111_v43, %v9475_v19  ;;  %v9480_v43 = vld [vmem:[#allocation147_spill] sm:$0xff]  ;;  %v1767_v13 = vmul.f32 %v9483_v2, %v9482_v20  ;;  %v1908_v23 = vpack.c.bf16 %v1864_v60, %v1862_v0  ;;  %v1150_v20 = vadd.f32 %v1086_v9, %v6937_v29  ;;  %v9492_v60 = vld [vmem:[#allocation8_spill] sm:$0xff] }
 0x1e8   :  { %9479 = vst [vmem:[#allocation101_spill] sm:$0xff] %v6941_v50  ;;  %v1905_v19 = vpack.c.bf16 %v9480_v43, %v1857_v15  ;;  %9485 = vst [vmem:[#allocation132_spill] sm:$0xff] %v6954_v56  ;;  %v6958_v15 = vmul.f32 %v9192_v6, %v9486_v4  ;;  %v660_v43 = vpop.permute.xlu1 %659  ;;  %v6964_v10 = vmul.f32 %v4113_v47, %v9488_v48  ;;  %v9490_v7 = vunpack.c.h.bf16 %v9489_v18  ;;  %v4119_v47 = vpop.eup %4118 }
 0x1e9   :  { %9476 = vst [vmem:[#allocation40_spill] sm:$0xff] %v6925_v31  ;;  %v1770_v33 = vmul.f32 %v6925_v31, %v6700_v49  ;;  %v1772_v49 = vmul.f32 %v6913_v35, %v9487_v53  ;;  %v1151_v22 = vadd.f32 %v1087_v5, %v6941_v50  ;;  %v1811_v37 = vpack.c.bf16 %v1767_v13, %v1765_v27  ;;  %v9494_v27 = vld [vmem:[#allocation165_spill] sm:$0xff]  ;;  %v4121_v5 = vpop.eup %4120 }
 0x1ea   :  { %2082 = vmatmul.mubr.bf16.gmra.mxu1 %v1905_v19  ;;  %v6970_v55 = vmul.f32 %v4117_v1, %v9490_v7  ;;  %v6973_v0 = vmul.f32 %v4656_v25, %v660_v43  ;;  %v1861_v14 = vmul.f32 %v9473_v62, %v9492_v60  ;;  %4126 = vrcp.f32 %v1150_v20  ;;  %v9493_v19 = vld [vmem:[#allocation97_spill] sm:$0xff]  ;;  %v4123_v48 = vpop.eup %4122 }
 0x1eb   :  { %2089 = vmatprep.mubr.bf16.mxu1 %v1908_v23  ;;  %v1814_v53 = vpack.c.bf16 %v1772_v49, %v1770_v33  ;;  %v6978_v9 = vmul.f32 %v4664_v58, %v660_v43  ;;  %2251 = vmatmul.mubr.bf16.gmra.mxu0 %v1811_v37  ;;  %v1863_v13 = vmul.f32 %v9483_v2, %v9493_v19  ;;  %v9495_v33 = vld [vmem:[#allocation27_spill] sm:$0xff]  ;;  %4128 = vrcp.f32 %v1151_v22  ;;  %v9499_v2 = vld [vmem:[#allocation133_spill] sm:$0xff]  ;;  %v4125_v22 = vpop.eup %4124 }
 0x1ec   :  { %9491 = vst [vmem:[#allocation3_spill] sm:$0xff] %v6973_v0  ;;  %v1868_v7 = vmul.f32 %v6913_v35, %v9494_v27  ;;  %v1774_v23 = vmul.f32 %v6970_v55, %v6751_v8  ;;  %v9496_v49 = vunpack.c.l.bf16 %v9495_v33  ;;  %v1866_v43 = vmul.f32 %v6925_v31, %v6469_v39  ;;  %v870_v19 = vpop.permute.xlu1 %869  ;;  %v9498_v27 = vld [vmem:[#allocation20_spill] sm:$0xff] }
 0x1ed   :  { %2258 = vmatprep.mubr.bf16.mxu0 %v1814_v53  ;;  %v1769_v20 = vmul.f32 %v6964_v10, %v6697_v36  ;;  %v9497_v37 = vunpack.c.l.bf16 %v9489_v18  ;;  %v1771_v8 = vmul.f32 %v6954_v56, %v9498_v27  ;;  %v9500_v53 = vld [vmem:[#allocation110_spill] sm:$0xff]  ;;  %v240_v36 = vpop.permute.xlu0 %239 }
 0x1ee   :  { %v6988_v1 = vmul.f32 %v4119_v47, %v9496_v49  ;;  %v1776_v47 = vmul.f32 %v6826_v44, %v9499_v2  ;;  %v9501_v49 = vunpack.c.l.bf16 %v9500_v53  ;;  %v9504_v27 = vunpack.c.h.bf16 %v9500_v53  ;;  %v9505_v2 = vld [vmem:[#allocation122_spill] sm:$0xff] }
 0x1ef   :  { %v6996_v60 = vmul.f32 %v4115_v26, %v9497_v37  ;;  %v9503_v26 = vld [vmem:[#allocation135_spill] sm:$0xff]  ;;  %v7013_v37 = vmul.f32 %v9192_v6, %v870_v19  ;;  %v1089_v35 = vadd.f32 %v9505_v2, %v6978_v9  ;;  %v9507_v6 = vunpack.c.h.bf16 %v9495_v33 }
 0x1f0   :  { %v7004_v62 = vmul.f32 %v4123_v48, %v9501_v49  ;;  %v7008_v39 = vmul.f32 %v6988_v1, %v6676_v21  ;;  %v1088_v18 = vadd.f32 %v9503_v26, %v6973_v0  ;;  %v7017_v50 = vmul.f32 %v4125_v22, %v9504_v27 }
 0x1f1   :  { %v7022_v48 = vmul.f32 %v9193_v3, %v870_v19  ;;  %v1907_v49 = vpack.c.bf16 %v1863_v13, %v1861_v14  ;;  %v1910_v0 = vpack.c.bf16 %v1868_v7, %v1866_v43  ;;  %v1816_v31 = vpack.c.bf16 %v1776_v47, %v1774_v23  ;;  %v454_v7 = vpop.permute.xlu1 %453  ;;  %v9509_v43 = vld [vmem:[#allocation22_spill] sm:$0xff] }
 0x1f2   :  { %9502 = vst [vmem:[#allocation98_spill] sm:$0xff] %v7008_v39  ;;  %v7026_v21 = vmul.f32 %v7004_v62, %v6830_v42  ;;  %v1152_v26 = vadd.f32 %v1088_v18, %v7013_v37  ;;  %v7031_v53 = vmul.f32 %v4121_v5, %v9507_v6  ;;  %v7035_v22 = vmul.f32 %v7017_v50, %v6838_v28  ;;  %v9510_v47 = vld [vmem:[#allocation166_spill] sm:$0xff] }
 0x1f3   :  { %v1153_v19 = vadd.f32 %v1089_v35, %v7022_v48  ;;  %2090 = vmatmul.mubr.bf16.gmra.mxu1 %v1907_v49  ;;  %v1813_v14 = vpack.c.bf16 %v1771_v8, %v1769_v20  ;;  %v1773_v42 = vmul.f32 %v6996_v60, %v6748_v40  ;;  %v1865_v6 = vmul.f32 %v6964_v10, %v6455_v46  ;;  %v7052_v40 = vpop.permute.xlu0 %249  ;;  %v9508_v46 = vld [vmem:[#allocation115_spill] sm:$0xff]  ;;  %v9531_v39 = vld [vmem:[#allocation158_spill] sm:$0xff] }
 0x1f4   :  { %9506 = vst [vmem:[#allocation169_spill] sm:$0xff] %v7026_v21  ;;  %4130 = vrcp.f32 %v1152_v26  ;;  %2097 = vmatprep.mubr.bf16.mxu1 %v1910_v0  ;;  %v7045_v5 = vmul.f32 %v9410_v38, %v240_v36  ;;  %v7048_v28 = vmul.f32 %v9411_v51, %v240_v36  ;;  %v1870_v35 = vmul.f32 %v6970_v55, %v6643_v12  ;;  %v9511_v36 = vld [vmem:[#allocation137_spill] sm:$0xff] }
 0x1f5   :  { %4132 = vrcp.f32 %v1153_v19  ;;  %2259 = vmatmul.mubr.bf16.gmra.mxu0 %v1813_v14  ;;  %v7055_v0 = vmul.f32 %v4606_v17, %v454_v7  ;;  %v7058_v23 = vmul.f32 %v4610_v34, %v454_v7  ;;  %v1867_v33 = vmul.f32 %v6954_v56, %v9508_v46  ;;  %v664_v46 = vpop.permute.xlu1 %663  ;;  %v9537_v7 = vld [vmem:[#allocation127_spill] sm:$0xff] }
 0x1f6   :  { %2266 = vmatprep.mubr.bf16.mxu0 %v1816_v31  ;;  %v1775_v20 = vmul.f32 %v6814_v32, %v9509_v43  ;;  %v1778_v8 = vmul.f32 %v7031_v53, %v6792_v63  ;;  %v1872_v12 = vmul.f32 %v6826_v44, %v9510_v47  ;;  %v1780_v31 = vmul.f32 %v7017_v50, %v9511_v36 }
 0x1f7   :  { %v7074_v2 = vmul.f32 %v9193_v3, %v9486_v4  ;;  %v1909_v49 = vpack.c.bf16 %v1867_v33, %v1865_v6  ;;  %v7080_v63 = vmul.f32 %v6988_v1, %v6780_v11  ;;  %v1869_v47 = vmul.f32 %v6996_v60, %v6639_v52  ;;  %v4127_v27 = vpop.eup %4126  ;;  %v9517_v33 = vld [vmem:[#allocation125_spill] sm:$0xff]  ;;  %v7108_v61 = vpop.permute.xlu0 %2417 }
 0x1f8   :  { %v1815_v26 = vpack.c.bf16 %v1775_v20, %v1773_v42  ;;  %v1912_v43 = vpack.c.bf16 %v1872_v12, %v1870_v35  ;;  %v1026_v4 = vadd.f32 %v7055_v0, %v7045_v5  ;;  %v1027_v42 = vadd.f32 %v7058_v23, %v7048_v28  ;;  %v4129_v35 = vpop.eup %4128 }
 0x1f9   :  { %9513 = vst [vmem:[#allocation168_spill] sm:$0xff] %v7074_v2  ;;  %v7091_v6 = vmul.f32 %v4656_v25, %v664_v46  ;;  %v7094_v11 = vmul.f32 %v4664_v58, %v664_v46  ;;  %v9518_v20 = vunpack.c.l.bf16 %v9517_v33  ;;  %v1818_v12 = vpack.c.bf16 %v1780_v31, %v1778_v8 }
 0x1fa   :  { %v1874_v13 = vmul.f32 %v7031_v53, %v6739_v57  ;;  %v9520_v21 = vunpack.c.h.bf16 %v9517_v33 }
 0x1fb   :  { %v7098_v52 = vmul.f32 %v4127_v27, %v9518_v20  ;;  %2098 = vmatmul.mubr.bf16.gmra.mxu1 %v1909_v49  ;;  %v1090_v46 = vadd.f32 %v1026_v4, %v7091_v6  ;;  %v1091_v19 = vadd.f32 %v1027_v42, %v7094_v11  ;;  %v9524_v49 = vld [vmem:[#allocation167_spill] sm:$0xff]  ;;  %v9528_v20 = vld [vmem:[#allocation188_spill] sm:$0xff] }
 0x1fc   :  { %v7106_v36 = vmul.f32 %v4129_v35, %v9520_v21  ;;  %2105 = vmatprep.mubr.bf16.mxu1 %v1912_v43  ;;  %v668_v21 = vpop.permute.xlu1 %667  ;;  %v1876_v35 = vmul.f32 %v7017_v50, %v9524_v49  ;;  %v9525_v4 = vld [vmem:[#allocation23_spill] sm:$0xff]  ;;  %v9530_v49 = vld [vmem:[#allocation173_spill] sm:$0xff] }
 0x1fd   :  { %v7116_v57 = vmul.f32 %v7098_v52, %v6928_v41  ;;  %v7120_v31 = vmul.f32 %v7098_v52, %v6937_v29  ;;  %2267 = vmatmul.mubr.bf16.gmra.mxu0 %v1815_v26  ;;  %v1779_v42 = vmul.f32 %v7004_v62, %v9525_v4  ;;  %v1154_v33 = vadd.f32 %v1090_v46, %v6958_v15  ;;  %v9527_v26 = vld [vmem:[#allocation6_spill] sm:$0xff] }
 0x1fe   :  { %v7128_v43 = vmul.f32 %v7106_v36, %v6931_v16  ;;  %v1155_v41 = vadd.f32 %v1091_v19, %v7074_v2  ;;  %2274 = vmatprep.mubr.bf16.mxu0 %v1818_v12  ;;  %v7133_v29 = vmul.f32 %v4656_v25, %v668_v21  ;;  %v7137_v8 = vmul.f32 %v9528_v20, %v9527_v26  ;;  %v9533_v16 = vld [vmem:[#allocation144_spill] sm:$0xff]  ;;  %v9536_v12 = vld [vmem:[#allocation178_spill] sm:$0xff]  ;;  %v7160_v2 = vpop.permute.xlu0 %2754 }
 0x1ff   :  { %9522 = vst [vmem:[#allocation162_spill] sm:$0xff] %v7116_v57  ;;  %9523 = vst [vmem:[#allocation177_spill] sm:$0xff] %v7120_v31  ;;  %v7141_v27 = vmul.f32 %v9531_v39, %v9530_v49  ;;  %v7144_v4 = vmul.f32 %v4664_v58, %v668_v21  ;;  %v1871_v46 = vmul.f32 %v6814_v32, %v9533_v16  ;;  %4134 = vrcp.f32 %v1154_v33  ;;  %v9563_v31 = vld [vmem:[#allocation13_spill] sm:$0xff] }
 0x200   :  { %9526 = vst [vmem:[#allocation21_spill] sm:$0xff] %v7133_v29  ;;  %9529 = vst [vmem:[#allocation52_spill] sm:$0xff] %v7137_v8  ;;  %v7150_v19 = vmul.f32 %v6658_v24, %v9534_v59  ;;  %v7154_v30 = vmul.f32 %v9537_v7, %v9536_v12  ;;  %4136 = vrcp.f32 %v1155_v41  ;;  %v1914_v21 = vpack.c.bf16 %v1876_v35, %v1874_v13  ;;  %v9542_v59 = vld [vmem:[#allocation156_spill] sm:$0xff]  ;;  %v9544_v12 = vld [vmem:[#allocation134_spill] sm:$0xff]  ;;  %v878_v26 = vpop.permute.xlu1 %877 }
 0x201   :  { %9532 = vst [vmem:[#allocation61_spill] sm:$0xff] %v7141_v27  ;;  %v4131_v49 = vpop.eup %4130  ;;  %v1911_v39 = vpack.c.bf16 %v1871_v46, %v1869_v47  ;;  %v9543_v24 = vunpack.c.l.bf16 %v9542_v59  ;;  %v1092_v33 = vadd.f32 %v9544_v12, %v7133_v29  ;;  %v9545_v7 = vld [vmem:[#allocation140_spill] sm:$0xff]  ;;  %v1817_v47 = vpack.c.bf16 %v1779_v42, %v7080_v63  ;;  %v9547_v41 = vld [vmem:[#allocation39_spill] sm:$0xff]  ;;  %v9551_v63 = vld [vmem:[#allocation34_spill] sm:$0xff] }
 0x202   :  { %9535 = vst [vmem:[#allocation147_spill] sm:$0xff] %v7150_v19  ;;  %9538 = vst [vmem:[#allocation117_spill] sm:$0xff] %v7154_v30  ;;  %v4133_v16 = vpop.eup %4132  ;;  %v1093_v20 = vadd.f32 %v9545_v7, %v7144_v4  ;;  %v9546_v13 = vunpack.c.h.bf16 %v9542_v59  ;;  %v7176_v46 = vmul.f32 %v9547_v41, %v878_v26  ;;  %v1873_v42 = vmul.f32 %v6988_v1, %v9551_v63  ;;  %v9553_v59 = vld [vmem:[#allocation15_spill] sm:$0xff]  ;;  %v9579_v8 = vld [vmem:[#allocation44_spill] sm:$0xff] }
 0x203   :  { %v7164_v57 = vmul.f32 %v4131_v49, %v9543_v24  ;;  %2106 = vmatmul.mubr.bf16.gmra.mxu1 %v1911_v39  ;;  %v7179_v24 = vmul.f32 %v9193_v3, %v878_v26  ;;  %v9557_v63 = vld [vmem:[#allocation91_spill] sm:$0xff] }
 0x204   :  { %v7173_v35 = vmul.f32 %v4133_v16, %v9546_v13  ;;  %2113 = vmatprep.mubr.bf16.mxu1 %v1914_v21  ;;  %v9552_v16 = vld [vmem:[#allocation36_spill] sm:$0xff]  ;;  %v1782_v13 = vmul.f32 %v7106_v36, %v9553_v59  ;;  %v1156_v12 = vadd.f32 %v1092_v33, %v7176_v46  ;;  %v7203_v14 = vmul.f32 %v9557_v63, %v9556_v45  ;;  %v9559_v59 = vld [vmem:[#allocation111_spill] sm:$0xff]  ;;  %v462_v33 = vpop.permute.xlu1 %461  ;;  %v7215_v45 = vpop.permute.xlu0 %2415 }
 0x205   :  { %v7185_v7 = vmul.f32 %v7164_v57, %v7013_v37  ;;  %v1875_v39 = vmul.f32 %v7004_v62, %v9552_v16  ;;  %v1157_v49 = vadd.f32 %v1093_v20, %v7179_v24  ;;  %2275 = vmatmul.mubr.bf16.gmra.mxu0 %v1817_v47  ;;  %v9555_v37 = vld [vmem:[#allocation138_spill] sm:$0xff]  ;;  %v1878_v18 = vmul.f32 %v7106_v36, %v9559_v59  ;;  %v9561_v47 = vld [vmem:[#allocation24_spill] sm:$0xff] }
 0x206   :  { %v7195_v26 = vmul.f32 %v7173_v35, %v7022_v48  ;;  %v1784_v21 = vmul.f32 %v7173_v35, %v9555_v37  ;;  %9558 = vst [vmem:[#allocation131_spill] sm:$0xff] %v7203_v14  ;;  %v9560_v48 = vld [vmem:[#allocation30_spill] sm:$0xff]  ;;  %4138 = vrcp.f32 %v1156_v12  ;;  %v1783_v29 = vmul.f32 %v7164_v57, %v9561_v47  ;;  %v9582_v14 = vld [vmem:[#allocation100_spill] sm:$0xff] }
 0x207   :  { %9550 = vst [vmem:[#allocation19_spill] sm:$0xff] %v7185_v7  ;;  %v1880_v54 = vmul.f32 %v7173_v35, %v9560_v48  ;;  %4140 = vrcp.f32 %v1157_v49  ;;  %v1913_v63 = vpack.c.bf16 %v1875_v39, %v1873_v42  ;;  %v1781_v59 = vmul.f32 %v7098_v52, %v9563_v31  ;;  %v9567_v49 = vld [vmem:[#allocation59_spill] sm:$0xff]  ;;  %v9571_v39 = vld [vmem:[#allocation14_spill] sm:$0xff] }
 0x208   :  { %9554 = vst [vmem:[#allocation82_spill] sm:$0xff] %v7195_v26  ;;  %v1820_v20 = vpack.c.bf16 %v1784_v21, %v1782_v13  ;;  %v7220_v7 = vmul.f32 %v4606_v17, %v462_v33  ;;  %v7223_v12 = vmul.f32 %v4610_v34, %v462_v33  ;;  %v9566_v26 = vld [vmem:[#allocation53_spill] sm:$0xff]  ;;  %v9570_v31 = vld [vmem:[#allocation183_spill] sm:$0xff]  ;;  %v9573_v33 = vld [vmem:[#allocation12_spill] sm:$0xff]  ;;  %v7244_v21 = vmul.f32 %v9410_v38, %v7052_v40  ;;  %v672_v38 = vpop.permute.xlu1 %671 }
 0x209   :  { %v1916_v16 = vpack.c.bf16 %v1880_v54, %v1878_v18  ;;  %v7231_v42 = vmul.f32 %v9567_v49, %v9566_v26  ;;  %v9569_v54 = vld [vmem:[#allocation157_spill] sm:$0xff]  ;;  %v7239_v27 = vmul.f32 %v9571_v39, %v9570_v31  ;;  %v7248_v47 = vmul.f32 %v9411_v51, %v7052_v40  ;;  %v9576_v31 = vld [vmem:[#allocation175_spill] sm:$0xff]  ;;  %v7281_v51 = vpop.permute.xlu0 %2752 }
 0x20a   :  { %2282 = vmatprep.mubr.bf16.mxu0 %v1820_v20  ;;  %v7235_v18 = vmul.f32 %v4606_v17, %v9569_v54  ;;  %v1315_v20 = vunpack.c.h.bf16 %v9573_v33  ;;  %9574 = vst [vmem:[#allocation97_spill] sm:$0xff] %v7244_v21  ;;  %v1819_v26 = vpack.c.bf16 %v1783_v29, %v1781_v59  ;;  %v7254_v30 = vmul.f32 %v4610_v34, %v9569_v54  ;;  %v9577_v39 = vld [vmem:[#allocation143_spill] sm:$0xff]  ;;  %v9580_v54 = vld [vmem:[#allocation68_spill] sm:$0xff] }
 0x20b   :  { %9568 = vst [vmem:[#allocation90_spill] sm:$0xff] %v7231_v42  ;;  %9572 = vst [vmem:[#allocation8_spill] sm:$0xff] %v7239_v27  ;;  %2114 = vmatmul.mubr.bf16.gmra.mxu1 %v1913_v63  ;;  %v7258_v48 = vmul.f32 %v9577_v39, %v9576_v31  ;;  %v1879_v13 = vmul.f32 %v7164_v57, %v9579_v8  ;;  %v1255_v29 = vld [vmem:[%s8503_s2 + $0xe8] sm:$0xff]  ;;  %v1030_v34 = vadd.f32 %v7220_v7, %v7244_v21 }
 0x20c   :  { %2121 = vmatprep.mubr.bf16.mxu1 %v1916_v16  ;;  %v4135_v40 = vpop.eup %4134  ;;  %v1031_v63 = vadd.f32 %v7223_v12, %v7248_v47  ;;  %v7272_v16 = vmul.f32 %v4656_v25, %v672_v38  ;;  %v7275_v8 = vmul.f32 %v4664_v58, %v672_v38  ;;  %v7279_v31 = vmul.f32 %v9547_v41, %v9580_v54 }
 0x20d   :  { %9578 = vst [vmem:[#allocation165_spill] sm:$0xff] %v7258_v48  ;;  %2283 = vmatmul.mubr.bf16.gmra.mxu0 %v1819_v26  ;;  %v4137_v59 = vpop.eup %4136  ;;  %v9581_v17 = vunpack.c.l.bf16 %v9573_v33  ;;  %v1877_v42 = vmul.f32 %v7098_v52, %v9582_v14  ;;  %v7291_v38 = vmul.f32 %v9193_v3, %v9580_v54  ;;  %v1316_v33 = vunpack.c.l.bf16 %v1255_v29  ;;  %v676_v14 = vpop.permute.xlu1 %675  ;;  %v9585_v26 = vld [vmem:[#allocation141_spill] sm:$0xff]  ;;  %v9590_v48 = vld [vmem:[#allocation32_spill] sm:$0xff] }
 0x20e   :  { %v7293_v19 = vmul.f32 %v4137_v59, %v1315_v20  ;;  %v1094_v49 = vadd.f32 %v1030_v34, %v7272_v16  ;;  %v1095_v37 = vadd.f32 %v1031_v63, %v7275_v8  ;;  %v7310_v34 = vmul.f32 %v4656_v25, %v676_v14  ;;  %v9584_v63 = vld [vmem:[#allocation26_spill] sm:$0xff] }
 0x20f   :  { %v1378_v39 = vmul.f32 %v4135_v40, %v9581_v17  ;;  %v1915_v52 = vpack.c.bf16 %v1879_v13, %v1877_v42  ;;  %v1317_v54 = vunpack.c.h.bf16 %v1255_v29  ;;  %v1033_v13 = vadd.f32 %v7254_v30, %v9585_v26  ;;  %v9586_v42 = vld [vmem:[#allocation118_spill] sm:$0xff]  ;;  %v9592_v26 = vld [vmem:[#allocation75_spill] sm:$0xff] }
 0x210   :  { %v7305_v40 = vmul.f32 %v7293_v19, %v7094_v11  ;;  %v1158_v20 = vadd.f32 %v1094_v49, %v7279_v31  ;;  %v1159_v59 = vadd.f32 %v1095_v37, %v7291_v38  ;;  %v7321_v11 = vmul.f32 %v6954_v56, %v9586_v42  ;;  %v9587_v37 = vld [vmem:[#allocation136_spill] sm:$0xff] }
 0x211   :  { %v7298_v21 = vmul.f32 %v1378_v39, %v7091_v6  ;;  %v7301_v17 = vmul.f32 %v1378_v39, %v6958_v15  ;;  %v1032_v6 = vadd.f32 %v7235_v18, %v9584_v63  ;;  %v7315_v15 = vmul.f32 %v4664_v58, %v676_v14  ;;  %v9588_v49 = vld [vmem:[#allocation40_spill] sm:$0xff]  ;;  %v9591_v63 = vld [vmem:[#allocation99_spill] sm:$0xff]  ;;  %v7331_v58 = vpop.permute.xlu0 %2413  ;;  %v886_v56 = vpop.permute.xlu1 %885 }
 0x212   :  { %4142 = vrcp.f32 %v1158_v20  ;;  %v7325_v25 = vmul.f32 %v9588_v49, %v9587_v37  ;;  %v7329_v29 = vmul.f32 %v9591_v63, %v9590_v48  ;;  %v1881_v14 = vmul.f32 %v1378_v39, %v7055_v0 }
 0x213   :  { %9583 = vst [vmem:[#allocation27_spill] sm:$0xff] %v7301_v17  ;;  %2122 = vmatmul.mubr.bf16.gmra.mxu1 %v1915_v52  ;;  %v4139_v27 = vpop.eup %4138  ;;  %4144 = vrcp.f32 %v1159_v59  ;;  %v7336_v42 = vmul.f32 %v9588_v49, %v9592_v26  ;;  %v1096_v37 = vadd.f32 %v1032_v6, %v7310_v34  ;;  %v1785_v48 = vmul.f32 %v1378_v39, %v7045_v5 }
 0x214   :  { %9589 = vst [vmem:[#allocation20_spill] sm:$0xff] %v7325_v25  ;;  %v4141_v20 = vpop.eup %4140  ;;  %v7338_v52 = vmul.f32 %v4139_v27, %v1316_v33  ;;  %v1882_v25 = vmul.f32 %v7293_v19, %v7058_v23  ;;  %v1097_v59 = vadd.f32 %v1033_v13, %v7315_v15  ;;  %v7348_v0 = vmul.f32 %v9547_v41, %v886_v56  ;;  %v9595_v33 = vld [vmem:[#allocation37_spill] sm:$0xff] }
 0x215   :  { %9593 = vst [vmem:[#allocation133_spill] sm:$0xff] %v7336_v42  ;;  %v7344_v63 = vmul.f32 %v4141_v20, %v1317_v54  ;;  %v7351_v26 = vmul.f32 %v9193_v3, %v886_v56  ;;  %v9596_v23 = vld [vmem:[#allocation25_spill] sm:$0xff]  ;;  %v9597_v54 = vld [vmem:[#allocation123_spill] sm:$0xff]  ;;  %v2434_v49 = vpop.permute.xlu1 %2433  ;;  %v1786_v20 = vmul.f32 %v7293_v19, %v7048_v28  ;;  %v9599_v42 = vld [vmem:[#allocation146_spill] sm:$0xff] }
 0x216   :  { %v7355_v27 = vmul.f32 %v7338_v52, %v7176_v46  ;;  %v1883_v6 = vmul.f32 %v7338_v52, %v9595_v33  ;;  %v1787_v5 = vmul.f32 %v7338_v52, %v9596_v23  ;;  %v1160_v3 = vadd.f32 %v1096_v37, %v7348_v0  ;;  %v9598_v33 = vld [vmem:[#allocation139_spill] sm:$0xff]  ;;  %v1256_v37 = vld [vmem:[%s8503_s2 + $0xf0] sm:$0xff]  ;;  %3686 = vmatprep.subr.bf16.mxu1 %v2434_v49 }
 0x217   :  { %v7365_v41 = vmul.f32 %v7344_v63, %v7179_v24  ;;  %v1161_v56 = vadd.f32 %v1097_v59, %v7351_v26  ;;  %v1884_v46 = vmul.f32 %v7344_v63, %v9597_v54  ;;  %v1788_v23 = vmul.f32 %v7344_v63, %v9598_v33  ;;  %v7377_v24 = vpop.permute.xlu0 %2750  ;;  %3687 = vmatpush3.bf16.msra.mxu1 %v7108_v61  ;;  %v9600_v33 = vld [vmem:[#allocation161_spill] sm:$0xff] }
 0x218   :  { %9594 = vst [vmem:[#allocation110_spill] sm:$0xff] %v7355_v27  ;;  %v1917_v39 = vpack.c.bf16 %v1883_v6, %v1881_v14  ;;  %4146 = vrcp.f32 %v1160_v3  ;;  %v1821_v54 = vpack.c.bf16 %v1787_v5, %v1785_v48  ;;  %v7384_v13 = vmul.f32 %v6970_v55, %v9599_v42  ;;  %v9601_v6 = vld [vmem:[#allocation189_spill] sm:$0xff]  ;;  %v9604_v5 = vld [vmem:[#allocation62_spill] sm:$0xff] }
 0x219   :  { %v1918_v59 = vpack.c.bf16 %v1884_v46, %v1882_v25  ;;  %4148 = vrcp.f32 %v1161_v56  ;;  %v1822_v28 = vpack.c.bf16 %v1788_v23, %v1786_v20  ;;  %v7389_v14 = vmul.f32 %v6826_v44, %v9600_v33  ;;  %v9602_v3 = vld [vmem:[#allocation69_spill] sm:$0xff]  ;;  %v2771_v49 = vpop.permute.xlu1 %2770  ;;  %v9606_v23 = vld [vmem:[#allocation128_spill] sm:$0xff] }
 0x21a   :  { %v7393_v17 = vmul.f32 %v6964_v10, %v9601_v6  ;;  %v7397_v25 = vmul.f32 %v6970_v55, %v9602_v3  ;;  %v9603_v48 = vld [vmem:[#allocation33_spill] sm:$0xff]  ;;  %v7405_v61 = vmul.f32 %v6814_v32, %v9604_v5  ;;  %v1318_v46 = vunpack.c.l.bf16 %v1256_v37  ;;  %3798 = vmatprep.subr.bf16.mxu0 %v2771_v49  ;;  %v9607_v33 = vld [vmem:[#allocation16_spill] sm:$0xff] }
 0x21b   :  { %2129 = vmatprep.mubr.bf16.mxu1 %v1918_v59  ;;  %v7401_v42 = vmul.f32 %v6996_v60, %v9603_v48  ;;  %v9605_v56 = vld [vmem:[#allocation41_spill] sm:$0xff]  ;;  %2290 = vmatprep.mubr.bf16.mxu0 %v1822_v28  ;;  %v7417_v59 = vmul.f32 %v7017_v50, %v9606_v23  ;;  %v1319_v32 = vunpack.c.h.bf16 %v1256_v37  ;;  %v9608_v28 = vld [vmem:[#allocation163_spill] sm:$0xff]  ;;  %v9609_v50 = vld [vmem:[#allocation28_spill] sm:$0xff]  ;;  %v7448_v48 = vmul.f32 %v7173_v35, %v6978_v9 }
 0x21c   :  { %v7409_v44 = vmul.f32 %v7031_v53, %v9605_v56  ;;  %2130 = vmatmul.mubr.bf16.gmra.mxu1 %v1917_v39  ;;  %2291 = vmatmul.mubr.bf16.gmra.mxu0 %v1821_v54  ;;  %v7425_v3 = vmul.f32 %v6996_v60, %v9608_v28  ;;  %v7432_v37 = vmul.f32 %v7031_v53, %v9609_v50  ;;  %v9610_v54 = vld [vmem:[#allocation80_spill] sm:$0xff]  ;;  %v9611_v56 = vld [vmem:[#allocation35_spill] sm:$0xff]  ;;  %v7442_v60 = vpop.permute.xlu0 %2411  ;;  %v9613_v53 = vld [vmem:[#allocation101_spill] sm:$0xff] }
 0x21d   :  { %3799 = vmatpush3.bf16.msra.mxu0 %v7160_v2  ;;  %v7436_v5 = vmul.f32 %v6988_v1, %v9610_v54  ;;  %v7440_v49 = vmul.f32 %v7004_v62, %v9611_v56  ;;  %v9612_v2 = vld [vmem:[#allocation66_spill] sm:$0xff]  ;;  %v7452_v50 = vmul.f32 %v7106_v36, %v9613_v53  ;;  %v9614_v1 = vld [vmem:[#allocation3_spill] sm:$0xff]  ;;  %v1257_v39 = vld [vmem:[%s8503_s2 + $0xf8] sm:$0xff]  ;;  %v2432_v6 = vpop.permute.xlu1 %2431  ;;  %v7467_v36 = vmul.f32 %v7344_v63, %v7144_v4 }
 0x21e   :  { %v7456_v54 = vmul.f32 %v7164_v57, %v9614_v1  ;;  %3688 = vmatprep.subr.bf16.mxu1 %v2432_v6  ;;  %v9616_v53 = vld [vmem:[#allocation162_spill] sm:$0xff]  ;;  %v1320_v63 = vunpack.c.l.bf16 %v1257_v39  ;;  %v1321_v6 = vunpack.c.h.bf16 %v1257_v39 }
 0x21f   :  { %v4143_v23 = vpop.eup %4142  ;;  %3689 = vmatpush3.bf16.msra.mxu1 %v7215_v45 }
 0x220   :  { %v4145_v62 = vpop.eup %4144  ;;  %v1382_v56 = vmul.f32 %v4143_v23, %v1318_v46  ;;  %v9615_v46 = vld [vmem:[#allocation82_spill] sm:$0xff]  ;;  %v9617_v23 = vld [vmem:[#allocation168_spill] sm:$0xff]  ;;  %v2749_v45 = vpop.permute.xlu0 %2748 }
 0x221   :  { %v1383_v35 = vmul.f32 %v4145_v62, %v1319_v32  ;;  %v2769_v62 = vpop.permute.xlu1 %2768  ;;  %v7489_v1 = vmul.f32 %v7293_v19, %v9617_v23 }
 0x222   :  { %v7476_v28 = vmul.f32 %v1382_v56, %v7272_v16  ;;  %v7479_v9 = vmul.f32 %v1382_v56, %v7279_v31  ;;  %v9619_v16 = vld [vmem:[#allocation21_spill] sm:$0xff]  ;;  %3800 = vmatprep.subr.bf16.mxu0 %v2769_v62  ;;  %v1885_v20 = vmul.f32 %v1382_v56, %v7220_v7 }
 0x223   :  { %v7483_v4 = vmul.f32 %v1383_v35, %v7275_v8  ;;  %9618 = vst [vmem:[#allocation135_spill] sm:$0xff] %v7489_v1  ;;  %v7493_v57 = vmul.f32 %v7338_v52, %v9619_v16  ;;  %v7496_v31 = vmul.f32 %v1383_v35, %v7291_v38  ;;  %3801 = vmatpush3.bf16.msra.mxu0 %v7281_v51  ;;  %v9620_v62 = vld [vmem:[#allocation97_spill] sm:$0xff]  ;;  %v9621_v1 = vld [vmem:[#allocation26_spill] sm:$0xff] }
 0x224   :  { %v1886_v38 = vmul.f32 %v1383_v35, %v7223_v12  ;;  %v1790_v55 = vmul.f32 %v1383_v35, %v7248_v47  ;;  %v1789_v27 = vmul.f32 %v1382_v56, %v9620_v62  ;;  %v9622_v47 = vld [vmem:[#allocation141_spill] sm:$0xff]  ;;  %v2410_v35 = vpop.permute.xlu0 %2409 }
 0x225   :  { %v4147_v8 = vpop.eup %4146  ;;  %v2430_v16 = vpop.permute.xlu1 %2429 }
 0x226   :  { %v4149_v19 = vpop.eup %4148  ;;  %v1384_v23 = vmul.f32 %v4147_v8, %v1320_v63  ;;  %3690 = vmatprep.subr.bf16.mxu1 %v2430_v16  ;;  %v3113_v16 = vld [vmem:[%s8504_s3] sm:$0xff] }
 0x227   :  { %v1385_v52 = vmul.f32 %v4149_v19, %v1321_v6  ;;  %3691 = vmatpush3.bf16.msra.mxu1 %v7331_v58  ;;  %3147 = vperm.xlu1 %4005, %v3113_v16   ;;  %v9632_v16 = vld [vmem:[#allocation47_spill] sm:$0xff] }
 0x228   :  { %v7508_v51 = vmul.f32 %v1384_v23, %v7348_v0  ;;  %v1887_v39 = vmul.f32 %v1384_v23, %v7235_v18  ;;  %v1791_v32 = vmul.f32 %v1384_v23, %v9621_v1  ;;  %v7513_v63 = vmul.f32 %v1384_v23, %v7310_v34  ;;  %v9627_v23 = vld [vmem:[#allocation77_spill] sm:$0xff] }
 0x229   :  { %v7516_v7 = vmul.f32 %v1385_v52, %v7351_v26  ;;  %v1888_v12 = vmul.f32 %v1385_v52, %v7254_v30  ;;  %v1792_v56 = vmul.f32 %v1385_v52, %v9622_v47  ;;  %v7522_v0 = vmul.f32 %v1385_v52, %v7315_v15  ;;  %v2767_v26 = vpop.permute.xlu1 %2766  ;;  %v9623_v15 = vld [vmem:[#allocation74_spill] sm:$0xff]  ;;  %v9683_v18 = vld [vmem:[#allocation65_spill] sm:$0xff]  ;;  %v9710_v30 = vld [vmem:[#allocation160_spill] sm:$0xff] }
 0x22a   :  { %v1919_v1 = vpack.c.bf16 %v1887_v39, %v1885_v20  ;;  %v1823_v6 = vpack.c.bf16 %v1791_v32, %v1789_v27  ;;  %3802 = vmatprep.subr.bf16.mxu0 %v2767_v26  ;;  %v9624_v27 = vld [vmem:[#allocation38_spill] sm:$0xff]  ;;  %v2747_v39 = vpop.permute.xlu0 %2746 }
 0x22b   :  { %v1920_v8 = vpack.c.bf16 %v1888_v12, %v1886_v38  ;;  %v1824_v19 = vpack.c.bf16 %v1792_v56, %v1790_v55  ;;  %3803 = vmatpush3.bf16.msra.mxu0 %v7377_v24  ;;  %v9625_v20 = vpack.c.bf16 %v9623_v15, %v9624_v27  ;;  %v9626_v55 = vld [vmem:[#allocation43_spill] sm:$0xff]  ;;  %v3115_v12 = vld [vmem:[%s8504_s3 + $0x10] sm:$0xff]  ;;  %v3120_v27 = vld [vmem:[%s8504_s3 + $0x38] sm:$0xff] }
 0x22c   :  { %v9628_v52 = vpack.c.bf16 %v9626_v55, %v9627_v23  ;;  %3157 = vperm.xlu1 %4005, %v3115_v12   ;;  %v9629_v55 = vld [vmem:[#allocation72_spill] sm:$0xff]  ;;  %v9630_v23 = vld [vmem:[#allocation29_spill] sm:$0xff] }
 0x22d   :  { %2137 = vmatprep.mubr.bf16.mxu1 %v1920_v8  ;;  %2298 = vmatprep.mubr.bf16.mxu0 %v1824_v19  ;;  %v2428_v32 = vpop.permute.xlu1 %2427  ;;  %v9635_v12 = vld [vmem:[#allocation64_spill] sm:$0xff] }
 0x22e   :  { %2138 = vmatmul.mubr.bf16.gmra.mxu1 %v1919_v1  ;;  %2299 = vmatmul.mubr.bf16.gmra.mxu0 %v1823_v6  ;;  %v2408_v24 = vpop.permute.xlu0 %2407 }
 0x22f   :  { %2483 = vmatprep.mubr.bf16.mxu1 %v9625_v20  ;;  %2820 = vmatprep.mubr.bf16.mxu0 %v9628_v52  ;;  %v9631_v52 = vpack.c.bf16 %v9629_v55, %v9630_v23  ;;  %v9648_v55 = vld [vmem:[#allocation7_spill] sm:$0xff] }
 0x230   :  { %3692 = vmatprep.subr.bf16.mxu1 %v2428_v32 }
 0x231   :  { %3693 = vmatpush3.bf16.msra.mxu1 %v7442_v60  ;;  %v2765_v38 = vpop.permute.xlu1 %2764  ;;  %v3116_v60 = vld [vmem:[%s8504_s3 + $0x18] sm:$0xff] }
 0x232   :  { %3804 = vmatprep.subr.bf16.mxu0 %v2765_v38  ;;  %v2745_v56 = vpop.permute.xlu0 %2744  ;;  %3162 = vperm.xlu1 %4005, %v3116_v60   ;;  %v9633_v38 = vld [vmem:[#allocation42_spill] sm:$0xff]  ;;  %v9637_v60 = vld [vmem:[#allocation73_spill] sm:$0xff] }
 0x233   :  { %3805 = vmatpush3.bf16.msra.mxu0 %v2749_v45 }
 0x235   :  { %v2426_v62 = vpop.permute.xlu1 %2425 }
 0x236   :  { %3694 = vmatprep.subr.bf16.mxu1 %v2426_v62  ;;  %v2406_v45 = vpop.permute.xlu0 %2405  ;;  %v3122_v62 = vld [vmem:[%s8504_s3 + $0x48] sm:$0xff] }
 0x237   :  { %3695 = vmatpush3.bf16.msra.mxu1 %v2410_v35  ;;  %v3118_v35 = vld [vmem:[%s8504_s3 + $0x28] sm:$0xff] }
 0x238   :  { %3172 = vperm.xlu1 %4005, %v3118_v35   ;;  %v9641_v35 = vld [vmem:[#allocation2_spill] sm:$0xff] }
 0x239   :  { %v2763_v47 = vpop.permute.xlu1 %2762 }
 0x23a   :  { %3806 = vmatprep.subr.bf16.mxu0 %v2763_v47  ;;  %v2743_v8 = vpop.permute.xlu0 %2742  ;;  %v9636_v47 = vld [vmem:[#allocation171_spill] sm:$0xff] }
 0x23b   :  { %3807 = vmatpush3.bf16.msra.mxu0 %v2747_v39 }
 0x23c   :  { %3182 = vperm.xlu1 %4005, %v3120_v27   ;;  %v9644_v27 = vld [vmem:[#allocation46_spill] sm:$0xff] }
 0x23d   :  { %v2424_v1 = vpop.permute.xlu1 %2423 }
 0x23e   :  { %3696 = vmatprep.subr.bf16.mxu1 %v2424_v1  ;;  %v2404_v15 = vpop.permute.xlu0 %2403  ;;  %v9638_v1 = vld [vmem:[#allocation76_spill] sm:$0xff] }
 0x23f   :  { %3697 = vmatpush3.bf16.msra.mxu1 %v2408_v24  ;;  %v9634_v24 = vpack.c.bf16 %v9632_v16, %v9633_v38  ;;  %v9650_v16 = vld [vmem:[#allocation174_spill] sm:$0xff] }
 0x240   :  { %3192 = vperm.xlu1 %4005, %v3122_v62   ;;  %v9652_v62 = vld [vmem:[#allocation78_spill] sm:$0xff] }
 0x241   :  { %v2761_v6 = vpop.permute.xlu1 %2760 }
 0x242   :  { %3808 = vmatprep.subr.bf16.mxu0 %v2761_v6  ;;  %v2741_v39 = vpop.permute.xlu0 %2740  ;;  %v9640_v6 = vld [vmem:[#allocation54_spill] sm:$0xff] }
 0x243   :  { %3809 = vmatpush3.bf16.msra.mxu0 %v2745_v56  ;;  %v2318_v56 = vmul.f32 %v9636_v47, %v9635_v12  ;;  %v9654_v47 = vld [vmem:[#allocation109_spill] sm:$0xff] }
 0x245   :  { %v2422_v26 = vpop.permute.xlu1 %2421 }
 0x246   :  { %3698 = vmatprep.subr.bf16.mxu1 %v2422_v26  ;;  %v9642_v26 = vpack.c.bf16 %v9640_v6, %v9641_v35  ;;  %v9659_v35 = vld [vmem:[#allocation79_spill] sm:$0xff] }
 0x247   :  { %3699 = vmatpush3.bf16.msra.mxu1 %v2406_v45  ;;  %v9639_v45 = vpack.c.bf16 %v9637_v60, %v9638_v1  ;;  %v9655_v60 = vld [vmem:[#allocation50_spill] sm:$0xff] }
 0x248   :  { %v9656_v1 = vpack.c.bf16 %v9654_v47, %v9655_v60  ;;  %v9667_v47 = vld [vmem:[#allocation70_spill] sm:$0xff]  ;;  %v9668_v60 = vld [vmem:[#allocation81_spill] sm:$0xff] }
 0x249   :  { %v2759_v19 = vpop.permute.xlu1 %2758 }
 0x24a   :  { %3810 = vmatprep.subr.bf16.mxu0 %v2759_v19  ;;  %v9643_v19 = vld [vmem:[#allocation51_spill] sm:$0xff] }
 0x24b   :  { %3811 = vmatpush3.bf16.msra.mxu0 %v2743_v8  ;;  %v3124_v8 = vld [vmem:[%s8504_s3 + $0x58] sm:$0xff] }
 0x24c   :  { %3202 = vperm.xlu1 %4005, %v3124_v8  }
 0x24d   :  { %v2420_v20 = vpop.permute.xlu1 %2419 }
 0x24e   :  { %3700 = vmatprep.subr.bf16.mxu1 %v2420_v20  ;;  %v9645_v20 = vld [vmem:[#allocation4_spill] sm:$0xff] }
 0x24f   :  { %3701 = vmatpush3.bf16.msra.mxu1 %v2404_v15  ;;  %v2376_v15 = vpack.c.bf16 %v2318_v56, %v9643_v19  ;;  %v9657_v56 = vld [vmem:[#allocation71_spill] sm:$0xff] }
 0x251   :  { %v2757_v32 = vpop.permute.xlu1 %2756 }
 0x252   :  { %2484 = vmatmul.mubr.bf16.vlgmr.msra.gmra.mxu1 %v9631_v52  ;;  %3812 = vmatprep.subr.bf16.mxu0 %v2757_v32  ;;  %v9646_v32 = vpack.c.bf16 %v9644_v27, %v9645_v20  ;;  %v9649_v52 = vld [vmem:[#allocation149_spill] sm:$0xff]  ;;  %v9660_v27 = vld [vmem:[#allocation148_spill] sm:$0xff] }
 0x253   :  { %2491 = vmatprep.mubr.bf16.mxu1 %v9634_v24  ;;  %3813 = vmatpush3.bf16.msra.mxu0 %v2741_v39  ;;  %v9647_v39 = vld [vmem:[#allocation67_spill] sm:$0xff]  ;;  %v2322_v38 = vmul.f32 %v9650_v16, %v9649_v52  ;;  %v9651_v24 = vld [vmem:[#allocation57_spill] sm:$0xff]  ;;  %v9661_v20 = vld [vmem:[#allocation176_spill] sm:$0xff] }
 0x254   :  { %v2317_v23 = vmul.f32 %v9648_v55, %v9647_v39  ;;  %v9653_v12 = vpack.c.bf16 %v9651_v24, %v9652_v62  ;;  %v9662_v55 = vld [vmem:[#allocation151_spill] sm:$0xff]  ;;  %v9663_v52 = vld [vmem:[#allocation9_spill] sm:$0xff]  ;;  %v9664_v24 = vld [vmem:[#allocation124_spill] sm:$0xff] }
 0x255   :  { %v2326_v16 = vmul.f32 %v9663_v52, %v9662_v55  ;;  %v9665_v62 = vld [vmem:[#allocation55_spill] sm:$0xff] }
 0x256   :  { %2821 = vmatmul.mubr.bf16.vlgmr.msra.gmra.mxu0 %v9639_v45  ;;  %v9658_v45 = vld [vmem:[#allocation11_spill] sm:$0xff] }
 0x257   :  { %2828 = vmatprep.mubr.bf16.mxu0 %v9642_v26  ;;  %v2320_v6 = vmul.f32 %v9658_v45, %v9657_v56  ;;  %v2375_v26 = vpack.c.bf16 %v2317_v23, %v9659_v35  ;;  %v3128_v23 = vld [vmem:[%s8504_s3 + $0x78] sm:$0xff]  ;;  %v9669_v56 = vld [vmem:[#allocation120_spill] sm:$0xff] }
 0x258   :  { %v9670_v45 = vld [vmem:[#allocation84_spill] sm:$0xff] }
 0x259   :  { %v2378_v8 = vpack.c.bf16 %v2322_v38, %v2320_v6  ;;  %v9671_v6 = vpack.c.bf16 %v9669_v56, %v9670_v45  ;;  %v9679_v45 = vld [vmem:[#allocation150_spill] sm:$0xff] }
 0x25a   :  { %2492 = vmatmul.mubr.bf16.gmra.mxu1 %v9646_v32  ;;  %v2321_v32 = vmul.f32 %v9661_v20, %v9660_v27  ;;  %v9674_v27 = vld [vmem:[#allocation121_spill] sm:$0xff] }
 0x25b   :  { %2499 = vmatprep.mubr.bf16.mxu1 %v2376_v15  ;;  %v3478_v19 = vpop.f32.mrf.mxu1  ;;  %v3126_v15 = vld [vmem:[%s8504_s3 + $0x68] sm:$0xff] }
 0x25c   :  { %3212 = vperm.xlu1 %4005, %v3126_v15  }
 0x25d   :  { %v3479_v39 = vpop.f32.mrf.mxu1 }
 0x25e   :  { %2829 = vmatmul.mubr.bf16.gmra.mxu0 %v9653_v12  ;;  %v3480_v38 = vadd.f32 %v3479_v39, %v3478_v19  ;;  %v9666_v12 = vpack.c.bf16 %v9664_v24, %v9665_v62  ;;  %v3599_v19 = vpop.f32.mrf.mxu0  ;;  %v9676_v24 = vld [vmem:[#allocation18_spill] sm:$0xff]  ;;  %v9677_v62 = vld [vmem:[#allocation31_spill] sm:$0xff] }
 0x25f   :  { %2836 = vmatprep.mubr.bf16.mxu0 %v9656_v1  ;;  %v2319_v1 = vmul.f32 %v9668_v60, %v9667_v47  ;;  %v3481_v35 = vpop.f32.mrf.mxu1 }
 0x260   :  { %v7613_v20 = vadd.f32 %v9674_v27, %v3480_v38  ;;  %3222 = vperm.xlu1 %4005, %v3128_v23   ;;  %v9681_v27 = vld [vmem:[#allocation153_spill] sm:$0xff] }
 0x261   :  { %v2377_v55 = vpack.c.bf16 %v2321_v32, %v2319_v1  ;;  %v3482_v39 = vpop.f32.mrf.mxu1  ;;  %v9682_v32 = vld [vmem:[#allocation45_spill] sm:$0xff] }
 0x262   :  { %2500 = vmatmul.mubr.bf16.gmra.mxu1 %v2375_v26  ;;  %v9672_v26 = vld [vmem:[#allocation48_spill] sm:$0xff]  ;;  %9675 = vst [vmem:[#allocation122_spill] sm:$0xff] %v7613_v20  ;;  %v3483_v47 = vadd.f32 %v3482_v39, %v3481_v35  ;;  %v2328_v23 = vmul.f32 %v9682_v32, %v9681_v27  ;;  %v9687_v35 = vld [vmem:[#allocation85_spill] sm:$0xff] }
 0x263   :  { %2507 = vmatprep.mubr.bf16.mxu1 %v2378_v8  ;;  %v9673_v8 = vld [vmem:[#allocation86_spill] sm:$0xff] }
 0x264   :  { %v2324_v15 = vmul.f32 %v9673_v8, %v9672_v26  ;;  %v3600_v8 = vpop.f32.mrf.mxu0 }
 0x265   :  { %v3484_v60 = vpop.f32.mrf.mxu1  ;;  %v3601_v32 = vadd.f32 %v3600_v8, %v3599_v19  ;;  %v9699_v19 = vld [vmem:[#allocation17_spill] sm:$0xff] }
 0x266   :  { %2837 = vmatmul.mubr.bf16.gmra.mxu0 %v9666_v12  ;;  %v2380_v52 = vpack.c.bf16 %v2326_v16, %v2324_v15  ;;  %v3595_v12 = vadd.f32 %v9677_v62, %v9676_v24  ;;  %v9684_v16 = vld [vmem:[#allocation83_spill] sm:$0xff]  ;;  %v9686_v24 = vld [vmem:[#allocation5_spill] sm:$0xff] }
 0x267   :  { %2844 = vmatprep.mubr.bf16.mxu0 %v9671_v6  ;;  %v9680_v6 = vld [vmem:[#allocation184_spill] sm:$0xff]  ;;  %v3485_v38 = vpop.f32.mrf.mxu1  ;;  %v9685_v15 = vpack.c.bf16 %v9683_v18, %v9684_v16  ;;  %v3602_v39 = vpop.f32.mrf.mxu0  ;;  %v9689_v62 = vld [vmem:[#allocation89_spill] sm:$0xff]  ;;  %v3130_v18 = vld [vmem:[%s8504_s3 + $0x88] sm:$0xff] }
 0x268   :  { %v7617_v56 = vadd.f32 %v3595_v12, %v3483_v47  ;;  %v2325_v26 = vmul.f32 %v9680_v6, %v9679_v45  ;;  %v3486_v1 = vadd.f32 %v3485_v38, %v3484_v60  ;;  %v9691_v45 = vld [vmem:[#allocation88_spill] sm:$0xff]  ;;  %v9693_v60 = vld [vmem:[#allocation95_spill] sm:$0xff]  ;;  %3232 = vperm.xlu1 %4005, %v3130_v18  }
 0x269   :  { %v3487_v47 = vpop.f32.mrf.mxu1  ;;  %v3603_v58 = vpop.f32.mrf.mxu0  ;;  %v2382_v38 = vpack.c.bf16 %v9693_v60, %v2328_v23  ;;  %v3134_v60 = vld [vmem:[%s8504_s3 + $0xa8] sm:$0xff] }
 0x26a   :  { %2508 = vmatmul.mubr.bf16.gmra.mxu1 %v2377_v55  ;;  %9678 = vst [vmem:[#allocation115_spill] sm:$0xff] %v7617_v56  ;;  %v2323_v55 = vmul.f32 %v9687_v35, %v9686_v24  ;;  %v7632_v6 = vadd.f32 %v9691_v45, %v3486_v1  ;;  %v3604_v16 = vadd.f32 %v3603_v58, %v3602_v39  ;;  %v9695_v1 = vld [vmem:[#allocation152_spill] sm:$0xff]  ;;  %v3132_v45 = vld [vmem:[%s8504_s3 + $0x98] sm:$0xff]  ;;  %v9700_v58 = vld [vmem:[#allocation87_spill] sm:$0xff] }
 0x26b   :  { %2515 = vmatprep.mubr.bf16.mxu1 %v2380_v52  ;;  %v9688_v52 = vld [vmem:[#allocation106_spill] sm:$0xff]  ;;  %v3488_v27 = vpop.f32.mrf.mxu1  ;;  %v3605_v24 = vpop.f32.mrf.mxu0  ;;  %v9701_v8 = vpack.c.bf16 %v9699_v19, %v9700_v58  ;;  %v3136_v19 = vld [vmem:[%s8504_s3 + $0xb8] sm:$0xff] }
 0x26c   :  { %v9690_v12 = vpack.c.bf16 %v9688_v52, %v9689_v62  ;;  %9692 = vst [vmem:[#allocation22_spill] sm:$0xff] %v7632_v6  ;;  %v2379_v34 = vpack.c.bf16 %v2325_v26, %v2323_v55  ;;  %v9696_v52 = vld [vmem:[#allocation145_spill] sm:$0xff]  ;;  %v9697_v62 = vld [vmem:[#allocation154_spill] sm:$0xff]  ;;  %3242 = vperm.xlu1 %4005, %v3132_v45  }
 0x26d   :  { %v2327_v26 = vmul.f32 %v9696_v52, %v9695_v1  ;;  %v3606_v55 = vpop.f32.mrf.mxu0  ;;  %v9702_v39 = vld [vmem:[#allocation94_spill] sm:$0xff]  ;;  %v9706_v1 = vld [vmem:[#allocation105_spill] sm:$0xff] }
 0x26e   :  { %2845 = vmatmul.mubr.bf16.gmra.mxu0 %v9685_v15  ;;  %v3489_v15 = vadd.f32 %v3488_v27, %v3487_v47  ;;  %v9703_v47 = vld [vmem:[#allocation129_spill] sm:$0xff] }
 0x26f   :  { %2852 = vmatprep.mubr.bf16.mxu0 %v9690_v12  ;;  %v9698_v12 = vld [vmem:[#allocation158_spill] sm:$0xff]  ;;  %v9704_v27 = vpack.c.bf16 %v9702_v39, %v9703_v47  ;;  %v9708_v39 = vld [vmem:[#allocation63_spill] sm:$0xff]  ;;  %v9709_v47 = vld [vmem:[#allocation188_spill] sm:$0xff] }
 0x270   :  { %v7638_v35 = vadd.f32 %v3601_v32, %v3489_v15  ;;  %v2332_v23 = vmul.f32 %v9698_v12, %v9697_v62  ;;  %3252 = vperm.xlu1 %4005, %v3134_v60  }
 0x272   :  { %2516 = vmatmul.mubr.bf16.gmra.mxu1 %v2379_v34  ;;  %9694 = vst [vmem:[#allocation166_spill] sm:$0xff] %v7638_v35  ;;  %v3490_v34 = vpop.f32.mrf.mxu1  ;;  %v2384_v52 = vpack.c.bf16 %v9706_v1, %v2332_v23  ;;  %v9711_v23 = vld [vmem:[#allocation127_spill] sm:$0xff]  ;;  %v9713_v1 = vld [vmem:[#allocation170_spill] sm:$0xff] }
 0x273   :  { %2523 = vmatprep.mubr.bf16.mxu1 %v2382_v38  ;;  %v9705_v38 = vld [vmem:[#allocation96_spill] sm:$0xff]  ;;  %v3608_v15 = vpop.f32.mrf.mxu0 }
 0x274   :  { %v2381_v18 = vpack.c.bf16 %v9705_v38, %v2327_v26  ;;  %v3491_v32 = vpop.f32.mrf.mxu1  ;;  %v2331_v26 = vmul.f32 %v9709_v47, %v9708_v39  ;;  %3262 = vperm.xlu1 %4005, %v3136_v19   ;;  %v9720_v47 = vld [vmem:[#allocation116_spill] sm:$0xff] }
 0x275   :  { %v3492_v62 = vadd.f32 %v3491_v32, %v3490_v34  ;;  %v3609_v45 = vpop.f32.mrf.mxu0  ;;  %v2336_v34 = vmul.f32 %v9711_v23, %v9710_v30  ;;  %v9712_v32 = vld [vmem:[#allocation93_spill] sm:$0xff]  ;;  %v9719_v30 = vld [vmem:[#allocation103_spill] sm:$0xff] }
 0x276   :  { %2853 = vmatmul.mubr.bf16.gmra.mxu0 %v9701_v8  ;;  %v3493_v12 = vpop.f32.mrf.mxu1  ;;  %v3610_v8 = vadd.f32 %v3609_v45, %v3608_v15  ;;  %v3138_v45 = vld [vmem:[%s8504_s3 + $0xc8] sm:$0xff] }
 0x277   :  { %2860 = vmatprep.mubr.bf16.mxu0 %v9704_v27  ;;  %v7661_v58 = vadd.f32 %v3604_v16, %v3492_v62  ;;  %v3611_v38 = vpop.f32.mrf.mxu0  ;;  %v9715_v16 = vld [vmem:[#allocation104_spill] sm:$0xff]  ;;  %v9716_v62 = vld [vmem:[#allocation61_spill] sm:$0xff] }
 0x278   :  { %v3494_v27 = vpop.f32.mrf.mxu1  ;;  %v9717_v15 = vpack.c.bf16 %v9715_v16, %v9716_v62  ;;  %3272 = vperm.xlu1 %4005, %v3138_v45   ;;  %v9722_v16 = vld [vmem:[#allocation159_spill] sm:$0xff]  ;;  %v9723_v62 = vld [vmem:[#allocation92_spill] sm:$0xff] }
 0x279   :  { %9707 = vst [vmem:[#allocation137_spill] sm:$0xff] %v7661_v58  ;;  %v3495_v60 = vadd.f32 %v3494_v27, %v3493_v12  ;;  %v3612_v6 = vpop.f32.mrf.mxu0  ;;  %v2386_v27 = vpack.c.bf16 %v9720_v47, %v2336_v34  ;;  %v9726_v34 = vld [vmem:[#allocation102_spill] sm:$0xff] }
 0x27a   :  { %2524 = vmatmul.mubr.bf16.gmra.mxu1 %v2381_v18  ;;  %v3607_v18 = vadd.f32 %v3606_v55, %v3605_v24  ;;  %v3496_v35 = vpop.f32.mrf.mxu1  ;;  %v2383_v24 = vpack.c.bf16 %v9719_v30, %v2331_v26  ;;  %v9725_v26 = vld [vmem:[#allocation91_spill] sm:$0xff]  ;;  %v3613_v58 = vadd.f32 %v3612_v6, %v3611_v38  ;;  %v9729_v47 = vld [vmem:[#allocation114_spill] sm:$0xff] }
 0x27b   :  { %2531 = vmatprep.mubr.bf16.mxu1 %v2384_v52  ;;  %v9714_v52 = vpack.c.bf16 %v9712_v32, %v9713_v1 }
 0x27c   :  { %v7676_v39 = vadd.f32 %v3607_v18, %v3495_v60  ;;  %v3497_v55 = vpop.f32.mrf.mxu1  ;;  %v3614_v12 = vpop.f32.mrf.mxu0 }
 0x27d   :  { %v3498_v23 = vadd.f32 %v3497_v55, %v3496_v35  ;;  %v9727_v35 = vld [vmem:[#allocation52_spill] sm:$0xff] }
 0x27e   :  { %2861 = vmatmul.mubr.bf16.gmra.mxu0 %v9714_v52  ;;  %9718 = vst [vmem:[#allocation125_spill] sm:$0xff] %v7676_v39  ;;  %v3499_v19 = vpop.f32.mrf.mxu1  ;;  %v3615_v32 = vpop.f32.mrf.mxu0  ;;  %v9724_v39 = vld [vmem:[#allocation164_spill] sm:$0xff] }
 0x27f   :  { %2868 = vmatprep.mubr.bf16.mxu0 %v9717_v15  ;;  %v7680_v1 = vadd.f32 %v3610_v8, %v3498_v23  ;;  %v3616_v52 = vadd.f32 %v3615_v32, %v3614_v12  ;;  %v2335_v15 = vmul.f32 %v9723_v62, %v9722_v16  ;;  %v2340_v30 = vmul.f32 %v9725_v26, %v9724_v39  ;;  %v9730_v8 = vld [vmem:[#allocation117_spill] sm:$0xff]  ;;  %v9732_v12 = vld [vmem:[#allocation119_spill] sm:$0xff] }
 0x280   :  { %v3500_v18 = vpop.f32.mrf.mxu1  ;;  %v3617_v60 = vpop.f32.mrf.mxu0  ;;  %v9733_v23 = vld [vmem:[#allocation59_spill] sm:$0xff] }
 0x281   :  { %9721 = vst [vmem:[#allocation167_spill] sm:$0xff] %v7680_v1  ;;  %v3501_v56 = vadd.f32 %v3500_v18, %v3499_v19  ;;  %v2342_v32 = vmul.f32 %v9733_v23, %v9732_v12  ;;  %v9735_v1 = vld [vmem:[#allocation113_spill] sm:$0xff]  ;;  %v9742_v23 = vld [vmem:[#allocation147_spill] sm:$0xff] }
 0x282   :  { %2532 = vmatmul.mubr.bf16.gmra.mxu1 %v2383_v24  ;;  %v9728_v24 = vpack.c.bf16 %v9726_v34, %v9727_v35  ;;  %v3618_v55 = vpop.f32.mrf.mxu0  ;;  %v2385_v39 = vpack.c.bf16 %v9735_v1, %v2335_v15  ;;  %v9741_v15 = vld [vmem:[#allocation112_spill] sm:$0xff] }
 0x283   :  { %2539 = vmatprep.mubr.bf16.mxu1 %v2386_v27  ;;  %v3502_v45 = vpop.f32.mrf.mxu1  ;;  %v9731_v27 = vpack.c.bf16 %v9729_v47, %v9730_v8  ;;  %v7694_v16 = vadd.f32 %v3613_v58, %v3501_v56  ;;  %v3619_v62 = vadd.f32 %v3618_v55, %v3617_v60  ;;  %v2388_v19 = vpack.c.bf16 %v2342_v32, %v2340_v30  ;;  %v9737_v47 = vld [vmem:[#allocation107_spill] sm:$0xff]  ;;  %v9738_v8 = vld [vmem:[#allocation10_spill] sm:$0xff]  ;;  %v9745_v32 = vld [vmem:[#allocation181_spill] sm:$0xff] }
 0x284   :  { %v9739_v58 = vld [vmem:[#allocation179_spill] sm:$0xff]  ;;  %v9740_v60 = vld [vmem:[#allocation14_spill] sm:$0xff]  ;;  %v9743_v30 = vpack.c.bf16 %v9741_v15, %v9742_v23 }
 0x285   :  { %9734 = vst [vmem:[#allocation23_spill] sm:$0xff] %v7694_v16  ;;  %v3503_v6 = vpop.f32.mrf.mxu1  ;;  %v2344_v55 = vmul.f32 %v9740_v60, %v9739_v58 }
 0x286   :  { %2869 = vmatmul.mubr.bf16.gmra.mxu0 %v9728_v24  ;;  %v3620_v38 = vpop.f32.mrf.mxu0  ;;  %v3504_v18 = vadd.f32 %v3503_v6, %v3502_v45  ;;  %v9744_v45 = vld [vmem:[#allocation108_spill] sm:$0xff] }
 0x287   :  { %2876 = vmatprep.mubr.bf16.mxu0 %v9731_v27  ;;  %v3505_v26 = vpop.f32.mrf.mxu1  ;;  %v2339_v27 = vmul.f32 %v9738_v8, %v9737_v47  ;;  %v9750_v47 = vld [vmem:[#allocation143_spill] sm:$0xff] }
 0x288   :  { %v3621_v34 = vpop.f32.mrf.mxu0  ;;  %v7697_v35 = vadd.f32 %v3616_v52, %v3504_v18 }
 0x289   :  { %v3622_v24 = vadd.f32 %v3621_v34, %v3620_v38  ;;  %v3506_v12 = vpop.f32.mrf.mxu1  ;;  %v9747_v38 = vld [vmem:[#allocation131_spill] sm:$0xff]  ;;  %v9749_v34 = vld [vmem:[#allocation172_spill] sm:$0xff] }
 0x28a   :  { %2540 = vmatmul.mubr.bf16.gmra.mxu1 %v2385_v39  ;;  %9736 = vst [vmem:[#allocation6_spill] sm:$0xff] %v7697_v35  ;;  %v3623_v56 = vpop.f32.mrf.mxu0  ;;  %v3507_v1 = vadd.f32 %v3506_v12, %v3505_v26  ;;  %v2341_v39 = vmul.f32 %v9745_v32, %v9744_v45  ;;  %v2346_v8 = vmul.f32 %v9750_v47, %v9749_v34 }
 0x28b   :  { %2547 = vmatprep.mubr.bf16.mxu1 %v2388_v19  ;;  %v9746_v19 = vld [vmem:[#allocation90_spill] sm:$0xff] }
 0x28c   :  { %v3624_v52 = vpop.f32.mrf.mxu0  ;;  %v9748_v18 = vpack.c.bf16 %v9746_v19, %v9747_v38  ;;  %v7713_v35 = vadd.f32 %v3619_v62, %v3507_v1  ;;  %v2387_v26 = vpack.c.bf16 %v2341_v39, %v2339_v27  ;;  %v2390_v15 = vpack.c.bf16 %v2346_v8, %v2344_v55  ;;  %v9751_v19 = vld [vmem:[#allocation56_spill] sm:$0xff]  ;;  %v9752_v38 = vld [vmem:[#allocation126_spill] sm:$0xff]  ;;  %v9757_v55 = vld [vmem:[#allocation155_spill] sm:$0xff] }
 0x28d   :  { %v3508_v6 = vpop.f32.mrf.mxu1  ;;  %v3625_v58 = vadd.f32 %v3624_v52, %v3623_v56  ;;  %v9753_v1 = vld [vmem:[#allocation130_spill] sm:$0xff]  ;;  %v9754_v56 = vld [vmem:[#allocation60_spill] sm:$0xff]  ;;  %v9758_v8 = vld [vmem:[#allocation165_spill] sm:$0xff] }
 0x28e   :  { %2877 = vmatmul.mubr.bf16.gmra.mxu0 %v9743_v30  ;;  %v9755_v27 = vpack.c.bf16 %v9753_v1, %v9754_v56  ;;  %v9756_v39 = vld [vmem:[#allocation58_spill] sm:$0xff]  ;;  %v9763_v1 = vld [vmem:[#allocation20_spill] sm:$0xff] }
 0x28f   :  { %2884 = vmatprep.mubr.bf16.mxu0 %v9748_v18  ;;  %v3509_v12 = vpop.f32.mrf.mxu1  ;;  %v2343_v18 = vmul.f32 %v9752_v38, %v9751_v19 }
 0x290   :  { %v3626_v60 = vpop.f32.mrf.mxu0  ;;  %v3510_v23 = vadd.f32 %v3509_v12, %v3508_v6  ;;  %v2345_v6 = vmul.f32 %v9757_v55, %v9756_v39  ;;  %v9761_v12 = vld [vmem:[#allocation187_spill] sm:$0xff] }
 0x291   :  { %v3511_v30 = vpop.f32.mrf.mxu1 }
 0x292   :  { %2548 = vmatmul.mubr.bf16.gmra.mxu1 %v2387_v26  ;;  %v3627_v45 = vpop.f32.mrf.mxu0  ;;  %v7715_v32 = vadd.f32 %v3622_v24, %v3510_v23  ;;  %v9759_v26 = vld [vmem:[#allocation8_spill] sm:$0xff] }
 0x293   :  { %2555 = vmatprep.mubr.bf16.mxu1 %v2390_v15  ;;  %v3628_v16 = vadd.f32 %v3627_v45, %v3626_v60  ;;  %v3512_v20 = vpop.f32.mrf.mxu1  ;;  %v9760_v24 = vpack.c.bf16 %v9758_v8, %v9759_v26  ;;  %v9762_v60 = vld [vmem:[#allocation99_spill] sm:$0xff]  ;;  %v2389_v45 = vpack.c.bf16 %v2345_v6, %v2343_v18  ;;  %v9766_v6 = vld [vmem:[#allocation142_spill] sm:$0xff] }
 0x294   :  { %v3629_v34 = vpop.f32.mrf.mxu0  ;;  %v3513_v62 = vadd.f32 %v3512_v20, %v3511_v30  ;;  %v2350_v15 = vmul.f32 %v9762_v60, %v9761_v12  ;;  %v3140_v20 = vld [vmem:[%s8504_s3 + $0xd8] sm:$0xff]  ;;  %v9769_v12 = vld [vmem:[#allocation132_spill] sm:$0xff] }
 0x295   :  { %3282 = vperm.xlu1 %4005, %v3140_v20  }
 0x296   :  { %2885 = vmatmul.mubr.bf16.gmra.mxu0 %v9755_v27  ;;  %v3514_v52 = vpop.f32.mrf.mxu1  ;;  %v3630_v47 = vpop.f32.mrf.mxu0  ;;  %v7732_v23 = vadd.f32 %v3625_v58, %v3513_v62  ;;  %v2392_v56 = vpack.c.bf16 %v2350_v15, %v9763_v1  ;;  %v4171_v62 = vmov 0.0  }
 0x297   :  { %2892 = vmatprep.mubr.bf16.mxu0 %v9760_v24  ;;  %v3631_v30 = vadd.f32 %v3630_v47, %v3629_v34  ;;  %v9764_v24 = vld [vmem:[#allocation186_spill] sm:$0xff]  ;;  %32 = vst.msk [vmem:[%s8505_s7] sm:$0xff] %vm31_vm2, %v4171_v62  ;;  %33 = vst.msk [vmem:[%s8505_s7 + $0x8] sm:$0xff] %vm31_vm2, %v4171_v62  ;;  %v9765_v34 = vld [vmem:[#allocation49_spill] sm:$0xff] }
 0x298   :  { %v3515_v19 = vpop.f32.mrf.mxu1  ;;  %v3632_v38 = vpop.f32.mrf.mxu0  ;;  %v2347_v58 = vmul.f32 %v6964_v10, %v9764_v24  ;;  %34 = vst.msk [vmem:[%s8505_s7 + $0x10] sm:$0xff] %vm31_vm2, %v4171_v62  ;;  %35 = vst.msk [vmem:[%s8505_s7 + $0x18] sm:$0xff] %vm31_vm2, %v4171_v62  ;;  %v9768_v47 = vld [vmem:[#allocation185_spill] sm:$0xff] }
 0x299   :  { %v3516_v27 = vadd.f32 %v3515_v19, %v3514_v52  ;;  %36 = vst.msk [vmem:[%s8505_s7 + $0x20] sm:$0xff] %vm31_vm2, %v4171_v62  ;;  %37 = vst.msk [vmem:[%s8505_s7 + $0x28] sm:$0xff] %vm31_vm2, %v4171_v62  ;;  %v9767_v52 = vpack.c.bf16 %v9765_v34, %v9766_v6  ;;  %v2349_v60 = vmul.f32 %v9769_v12, %v9768_v47 }
 0x29a   :  { %2556 = vmatmul.mubr.bf16.gmra.mxu1 %v2389_v45  ;;  %v3517_v39 = vpop.f32.mrf.mxu1  ;;  %v3633_v55 = vpop.f32.mrf.mxu0  ;;  %38 = vst.msk [vmem:[%s8505_s7 + $0x30] sm:$0xff] %vm31_vm2, %v4171_v62  ;;  %39 = vst.msk [vmem:[%s8505_s7 + $0x38] sm:$0xff] %vm31_vm2, %v4171_v62  ;;  %v9770_v45 = vld [vmem:[#allocation133_spill] sm:$0xff] }
 0x29b   :  { %2563 = vmatprep.mubr.bf16.mxu1 %v2392_v56  ;;  %v7735_v8 = vadd.f32 %v3628_v16, %v3516_v27  ;;  %v3634_v26 = vadd.f32 %v3633_v55, %v3632_v38  ;;  %40 = vst.msk [vmem:[%s8505_s7 + $0x40] sm:$0xff] %vm31_vm2, %v4171_v62  ;;  %41 = vst.msk [vmem:[%s8505_s7 + $0x48] sm:$0xff] %vm31_vm2, %v4171_v62  ;;  %v9771_v19 = vpack.c.bf16 %v7329_v29, %v9770_v45 }
 0x29c   :  { %42 = vst.msk [vmem:[%s8505_s7 + $0x50] sm:$0xff] %vm31_vm2, %v4171_v62  ;;  %43 = vst.msk [vmem:[%s8505_s7 + $0x58] sm:$0xff] %vm31_vm2, %v4171_v62  ;;  %v3518_v10 = vpop.f32.mrf.mxu1  ;;  %v3635_v16 = vpop.f32.mrf.mxu0  ;;  %v2391_v56 = vpack.c.bf16 %v2349_v60, %v2347_v58 }
 0x29d   :  { %44 = vst.msk [vmem:[%s8505_s7 + $0x60] sm:$0xff] %vm31_vm2, %v4171_v62  ;;  %45 = vst.msk [vmem:[%s8505_s7 + $0x68] sm:$0xff] %vm31_vm2, %v4171_v62  ;;  %v3519_v18 = vadd.f32 %v3518_v10, %v3517_v39  ;;  %v9772_v10 = vpack.c.bf16 %v7389_v14, %v7384_v13 }
 0x29e   :  { %46 = vst.msk [vmem:[%s8505_s7 + $0x70] sm:$0xff] %vm31_vm2, %v4171_v62  ;;  %47 = vst.msk [vmem:[%s8505_s7 + $0x78] sm:$0xff] %vm31_vm2, %v4171_v62  ;;  %2893 = vmatmul.mubr.bf16.gmra.mxu0 %v9767_v52  ;;  %v3636_v20 = vpop.f32.mrf.mxu0 }
 0x29f   :  { %48 = vst.msk [vmem:[%s8505_s7 + $0x80] sm:$0xff] %vm31_vm2, %v4171_v62  ;;  %49 = vst.msk [vmem:[%s8505_s7 + $0x88] sm:$0xff] %vm31_vm2, %v4171_v62  ;;  %v3520_v15 = vpop.f32.mrf.mxu1  ;;  %2900 = vmatprep.mubr.bf16.mxu0 %v9771_v19  ;;  %v7875_v38 = vadd.f32 %v3631_v30, %v3519_v18  ;;  %v3637_v1 = vadd.f32 %v3636_v20, %v3635_v16  ;;  %v9773_v30 = vpack.c.bf16 %v7321_v11, %v7393_v17 }
 0x2a0   :  { %50 = vst.msk [vmem:[%s8505_s7 + $0x90] sm:$0xff] %vm31_vm2, %v4171_v62  ;;  %51 = vst.msk [vmem:[%s8505_s7 + $0x98] sm:$0xff] %vm31_vm2, %v4171_v62  ;;  %v9774_v18 = vpack.c.bf16 %v9607_v33, %v7397_v25  ;;  %v9776_v17 = vpack.c.bf16 %v7417_v59, %v7409_v44 }
 0x2a1   :  { %52 = vst.msk [vmem:[%s8505_s7 + $0xa0] sm:$0xff] %vm31_vm2, %v4171_v62  ;;  %53 = vst.msk [vmem:[%s8505_s7 + $0xa8] sm:$0xff] %vm31_vm2, %v4171_v62  ;;  %v3521_v27 = vpop.f32.mrf.mxu1  ;;  %v3638_v55 = vpop.f32.mrf.mxu0 }
 0x2a2   :  { %54 = vst.msk [vmem:[%s8505_s7 + $0xb0] sm:$0xff] %vm31_vm2, %v4171_v62  ;;  %55 = vst.msk [vmem:[%s8505_s7 + $0xb8] sm:$0xff] %vm31_vm2, %v4171_v62  ;;  %v3522_v39 = vadd.f32 %v3521_v27, %v3520_v15  ;;  %2564 = vmatmul.mubr.bf16.gmra.mxu1 %v2391_v56  ;;  %v9775_v15 = vpack.c.bf16 %v7405_v61, %v7401_v42  ;;  %v9777_v56 = vpack.c.bf16 %v9612_v2, %v7425_v3  ;;  %v3142_v61 = vld [vmem:[%s8504_s3 + $0xe8] sm:$0xff]  ;;  %v3144_v3 = vld [vmem:[%s8504_s3 + $0xf8] sm:$0xff] }
 0x2a3   :  { %56 = vst.msk [vmem:[%s8505_s7 + $0xc0] sm:$0xff] %vm31_vm2, %v4171_v62  ;;  %57 = vst.msk [vmem:[%s8505_s7 + $0xc8] sm:$0xff] %vm31_vm2, %v4171_v62  ;;  %v3523_v24 = vpop.f32.mrf.mxu1  ;;  %2571 = vmatprep.mubr.bf16.mxu1 %v9772_v10  ;;  %v9778_v42 = vpack.c.bf16 %v7035_v22, %v7432_v37  ;;  %3292 = vperm.xlu1 %4005, %v3142_v61   ;;  %v9780_v10 = vpack.c.bf16 %v7448_v48, %v7128_v43 }
 0x2a4   :  { %58 = vst.msk [vmem:[%s8505_s7 + $0xd0] sm:$0xff] %vm31_vm2, %v4171_v62  ;;  %59 = vst.msk [vmem:[%s8505_s7 + $0xd8] sm:$0xff] %vm31_vm2, %v4171_v62  ;;  %v7880_v34 = vadd.f32 %v3634_v26, %v3522_v39 }
 0x2a5   :  { %60 = vst.msk [vmem:[%s8505_s7 + $0xe0] sm:$0xff] %vm31_vm2, %v4171_v62  ;;  %61 = vst.msk [vmem:[%s8505_s7 + $0xe8] sm:$0xff] %vm31_vm2, %v4171_v62  ;;  %v3524_v52 = vpop.f32.mrf.mxu1 }
 0x2a6   :  { %62 = vst.msk [vmem:[%s8505_s7 + $0xf0] sm:$0xff] %vm31_vm2, %v4171_v62  ;;  %63 = vst.msk [vmem:[%s8505_s7 + $0xf8] sm:$0xff] %vm31_vm2, %v4171_v62  ;;  %v3639_v62 = vpop.f32.mrf.mxu0  ;;  %v3525_v47 = vadd.f32 %v3524_v52, %v3523_v24  ;;  %2901 = vmatmul.mubr.bf16.gmra.mxu0 %v9773_v30 }
 0x2a7   :  { %v3640_v6 = vadd.f32 %v3639_v62, %v3638_v55  ;;  %2908 = vmatprep.mubr.bf16.mxu0 %v9774_v18  ;;  %v9779_v62 = vpack.c.bf16 %v7440_v49, %v7436_v5  ;;  %3302 = vperm.xlu1 %4005, %v3144_v3   ;;  %v9784_v49 = vpack.c.bf16 %v9615_v46, %v7452_v50 }
 0x2a8   :  { %v3641_v29 = vpop.f32.mrf.mxu0  ;;  %v7888_v12 = vadd.f32 %v3637_v1, %v3525_v47 }
 0x2aa   :  { %v3526_v58 = vpop.f32.mrf.mxu1  ;;  %v3642_v16 = vpop.f32.mrf.mxu0  ;;  %2572 = vmatmul.mubr.bf16.gmra.mxu1 %v9775_v15  ;;  %v9785_v15 = vpack.c.bf16 %v7456_v54, %v9616_v53  ;;  %v9790_v54 = vld [vmem:[#allocation135_spill] sm:$0xff] }
 0x2ab   :  { %v3643_v13 = vadd.f32 %v3642_v16, %v3641_v29  ;;  %2579 = vmatprep.mubr.bf16.mxu1 %v9776_v17  ;;  %v9782_v16 = vld [vmem:[#allocation98_spill] sm:$0xff]  ;;  %v9786_v17 = vpack.c.bf16 %v7467_v36, %v7305_v40  ;;  %v9791_v53 = vpack.c.bf16 %v7365_v41, %v9790_v54 }
 0x2ac   :  { %v3527_v14 = vpop.f32.mrf.mxu1  ;;  %v3644_v26 = vpop.f32.mrf.mxu0 }
 0x2ad   :  { %v3528_v60 = vadd.f32 %v3527_v14, %v3526_v58  ;;  %v9781_v58 = vld [vmem:[#allocation169_spill] sm:$0xff] }
 0x2ae   :  { %v3529_v20 = vpop.f32.mrf.mxu1  ;;  %v3645_v45 = vpop.f32.mrf.mxu0  ;;  %2909 = vmatmul.mubr.bf16.gmra.mxu0 %v9777_v56  ;;  %v9783_v18 = vpack.c.bf16 %v9781_v58, %v9782_v16  ;;  %v9788_v56 = vld [vmem:[#allocation177_spill] sm:$0xff] }
 0x2af   :  { %v7896_v11 = vadd.f32 %v3640_v6, %v3528_v60  ;;  %v3646_v25 = vadd.f32 %v3645_v45, %v3644_v26  ;;  %2916 = vmatprep.mubr.bf16.mxu0 %v9778_v42 }
 0x2b0   :  { %v3530_v33 = vpop.f32.mrf.mxu1  ;;  %v3647_v19 = vpop.f32.mrf.mxu0 }
 0x2b1   :  { %v3531_v1 = vadd.f32 %v3530_v33, %v3529_v20 }
 0x2b2   :  { %v3648_v55 = vpop.f32.mrf.mxu0  ;;  %2580 = vmatmul.mubr.bf16.gmra.mxu1 %v9779_v62  ;;  %v9793_v62 = vpack.c.bf16 %v7522_v0, %v7483_v4 }
 0x2b3   :  { %v3532_v27 = vpop.f32.mrf.mxu1  ;;  %v7907_v44 = vadd.f32 %v3643_v13, %v3531_v1  ;;  %v3649_v59 = vadd.f32 %v3648_v55, %v3647_v19  ;;  %2587 = vmatprep.mubr.bf16.mxu1 %v9780_v10  ;;  %v9787_v1 = vld [vmem:[#allocation19_spill] sm:$0xff] }
 0x2b5   :  { %v3533_v39 = vpop.f32.mrf.mxu1  ;;  %v3650_v24 = vpop.f32.mrf.mxu0 }
 0x2b6   :  { %v3534_v2 = vadd.f32 %v3533_v39, %v3532_v27  ;;  %2917 = vmatmul.mubr.bf16.gmra.mxu0 %v9783_v18  ;;  %v9789_v27 = vpack.c.bf16 %v9787_v1, %v9788_v56 }
 0x2b7   :  { %v3535_v22 = vpop.f32.mrf.mxu1  ;;  %v3651_v37 = vpop.f32.mrf.mxu0  ;;  %2924 = vmatprep.mubr.bf16.mxu0 %v9784_v49 }
 0x2b8   :  { %v7918_v6 = vadd.f32 %v3646_v25, %v3534_v2  ;;  %v3652_v52 = vadd.f32 %v3651_v37, %v3650_v24  ;;  %v9792_v24 = vpack.c.bf16 %v7493_v57, %v7298_v21  ;;  %v9797_v21 = vpack.c.bf16 %v7516_v7, %v7496_v31 }
 0x2b9   :  { %v3536_v29 = vpop.f32.mrf.mxu1  ;;  %v3653_v47 = vpop.f32.mrf.mxu0  ;;  %v9799_v31 = vpack.c.bf16 %v7508_v51, %v7479_v9 }
 0x2ba   :  { %v3537_v30 = vadd.f32 %v3536_v29, %v3535_v22  ;;  %2588 = vmatmul.mubr.bf16.gmra.mxu1 %v9785_v15  ;;  %v9794_v29 = vld [vmem:[#allocation110_spill] sm:$0xff] }
 0x2bb   :  { %v3538_v13 = vpop.f32.mrf.mxu1  ;;  %v3654_v5 = vpop.f32.mrf.mxu0  ;;  %2595 = vmatprep.mubr.bf16.mxu1 %v9786_v17 }
 0x2bc   :  { %v7926_v14 = vadd.f32 %v3649_v59, %v3537_v30  ;;  %v3655_v43 = vadd.f32 %v3654_v5, %v3653_v47  ;;  %v9795_v47 = vld [vmem:[#allocation27_spill] sm:$0xff]  ;;  %v9798_v5 = vpack.c.bf16 %v7513_v63, %v7476_v28 }
 0x2bd   :  { %v3539_v48 = vpop.f32.mrf.mxu1  ;;  %v3656_v26 = vpop.f32.mrf.mxu0  ;;  %v9796_v30 = vpack.c.bf16 %v9794_v29, %v9795_v47 }
 0x2be   :  { %v3540_v60 = vadd.f32 %v3539_v48, %v3538_v13  ;;  %2925 = vmatmul.mubr.bf16.gmra.mxu0 %v9789_v27 }
 0x2bf   :  { %v3541_v20 = vpop.f32.mrf.mxu1  ;;  %v3657_v45 = vpop.f32.mrf.mxu0  ;;  %2932 = vmatprep.mubr.bf16.mxu0 %v9791_v53 }
 0x2c0   :  { %v7934_v25 = vadd.f32 %v3652_v52, %v3540_v60  ;;  %v3658_v50 = vadd.f32 %v3657_v45, %v3656_v26 }
 0x2c1   :  { %v3542_v46 = vpop.f32.mrf.mxu1  ;;  %v3659_v33 = vpop.f32.mrf.mxu0 }
 0x2c2   :  { %v3543_v19 = vadd.f32 %v3542_v46, %v3541_v20  ;;  %2596 = vmatmul.mubr.bf16.gmra.mxu1 %v9792_v24 }
 0x2c3   :  { %v3544_v55 = vpop.f32.mrf.mxu1  ;;  %v3660_v42 = vpop.f32.mrf.mxu0  ;;  %2603 = vmatprep.mubr.bf16.mxu1 %v9793_v62 }
 0x2c4   :  { %v7942_v61 = vadd.f32 %v3655_v43, %v3543_v19  ;;  %v3661_v40 = vadd.f32 %v3660_v42, %v3659_v33 }
 0x2c5   :  { %v3545_v36 = vpop.f32.mrf.mxu1  ;;  %v3662_v59 = vpop.f32.mrf.mxu0 }
 0x2c6   :  { %v3546_v39 = vadd.f32 %v3545_v36, %v3544_v55  ;;  %2933 = vmatmul.mubr.bf16.gmra.mxu0 %v9796_v30 }
 0x2c7   :  { %v3547_v3 = vpop.f32.mrf.mxu1  ;;  %v3663_v2 = vpop.f32.mrf.mxu0  ;;  %2940 = vmatprep.mubr.bf16.mxu0 %v9797_v21 }
 0x2c8   :  { %v7950_v22 = vadd.f32 %v3658_v50, %v3546_v39  ;;  %v3664_v41 = vadd.f32 %v3663_v2, %v3662_v59 }
 0x2c9   :  { %v3548_v37 = vpop.f32.mrf.mxu1  ;;  %v3665_v10 = vpop.f32.mrf.mxu0 }
 0x2ca   :  { %v3549_v52 = vadd.f32 %v3548_v37, %v3547_v3  ;;  %2604 = vmatmul.mubr.bf16.gmra.mxu1 %v9798_v5 }
 0x2cb   :  { %v3550_v58 = vpop.f32.mrf.mxu1  ;;  %v3666_v16 = vpop.f32.mrf.mxu0 }
 0x2cc   :  { %v7958_v57 = vadd.f32 %v3661_v40, %v3549_v52  ;;  %v3667_v4 = vadd.f32 %v3666_v16, %v3665_v10 }
 0x2cd   :  { %v3551_v0 = vpop.f32.mrf.mxu1  ;;  %v3668_v18 = vpop.f32.mrf.mxu0 }
 0x2ce   :  { %v3552_v13 = vadd.f32 %v3551_v0, %v3550_v58  ;;  %2941 = vmatmul.mubr.bf16.gmra.mxu0 %v9799_v31 }
 0x2cf   :  { %v3553_v49 = vpop.f32.mrf.mxu1  ;;  %v3669_v43 = vpop.f32.mrf.mxu0 }
 0x2d0   :  { %v7963_v48 = vadd.f32 %v3664_v41, %v3552_v13  ;;  %v3670_v26 = vadd.f32 %v3669_v43, %v3668_v18 }
 0x2d1   :  { %v3554_v60 = vpop.f32.mrf.mxu1  ;;  %v3671_v15 = vpop.f32.mrf.mxu0 }
 0x2d2   :  { %v3555_v20 = vadd.f32 %v3554_v60, %v3553_v49 }
 0x2d3   :  { %v3556_v7 = vpop.f32.mrf.mxu1  ;;  %v3672_v45 = vpop.f32.mrf.mxu0 }
 0x2d4   :  { %v7968_v17 = vadd.f32 %v3667_v4, %v3555_v20  ;;  %v3673_v50 = vadd.f32 %v3672_v45, %v3671_v15  ;;  %v9800_v20 = vld [vmem:[#allocation122_spill] sm:$0xff] }
 0x2d5   :  { %v3557_v46 = vpop.f32.mrf.mxu1 }
 0x2d6   :  { %v3558_v28 = vadd.f32 %v3557_v46, %v3556_v7 }
 0x2d7   :  { %v3559_v63 = vpop.f32.mrf.mxu1 }
 0x2d8   :  { %v7970_v33 = vadd.f32 %v3670_v26, %v3558_v28 }
 0x2d9   :  { %v3560_v19 = vpop.f32.mrf.mxu1 }
 0x2da   :  { %v3561_v1 = vadd.f32 %v3560_v19, %v3559_v63 }
 0x2dc   :  { %v7972_v56 = vadd.f32 %v3673_v50, %v3561_v1  ;;  %v3562_v27 = vpop.f32.mrf.mxu1  ;;  %v3674_v55 = vpop.f32.mrf.mxu0  ;;  %v2981_v50 = vld [vmem:[%s8505_s7] sm:$0xff] }
 0x2de   :  { %v3563_v42 = vpop.f32.mrf.mxu1  ;;  %v3675_v9 = vpop.f32.mrf.mxu0 }
 0x2df   :  { %v3564_v54 = vadd.f32 %v3563_v42, %v3562_v27  ;;  %v3676_v51 = vadd.f32 %v3675_v9, %v3674_v55  ;;  %v9801_v27 = vld [vmem:[#allocation115_spill] sm:$0xff] }
 0x2e0   :  { %v3565_v53 = vpop.f32.mrf.mxu1  ;;  %v3677_v40 = vpop.f32.mrf.mxu0 }
 0x2e1   :  { %v7974_v36 = vadd.f32 %v3676_v51, %v3564_v54  ;;  %v2982_v51 = vld [vmem:[%s8505_s7 + $0x8] sm:$0xff] }
 0x2e2   :  { %v3566_v59 = vpop.f32.mrf.mxu1  ;;  %v3678_v24 = vpop.f32.mrf.mxu0 }
 0x2e3   :  { %v3567_v39 = vadd.f32 %v3566_v59, %v3565_v53  ;;  %v3679_v3 = vadd.f32 %v3678_v24, %v3677_v40 }
 0x2e5   :  { %v7976_v2 = vadd.f32 %v3679_v3, %v3567_v39  ;;  %v9802_v3 = vld [vmem:[#allocation22_spill] sm:$0xff] }
 0x2ee   :  { %v3568_v62 = vpop.f32.mrf.mxu1  ;;  %v3680_v41 = vpop.f32.mrf.mxu0 }
 0x2f0   :  { %v3569_v37 = vpop.f32.mrf.mxu1  ;;  %v3681_v10 = vpop.f32.mrf.mxu0 }
 0x2f1   :  { %v3570_v52 = vadd.f32 %v3569_v37, %v3568_v62  ;;  %v3682_v29 = vadd.f32 %v3681_v10, %v3680_v41 }
 0x2f2   :  { %v3571_v47 = vpop.f32.mrf.mxu1  ;;  %v3683_v30 = vpop.f32.mrf.mxu0 }
 0x2f3   :  { %v7978_v58 = vadd.f32 %v3682_v29, %v3570_v52  ;;  %v2983_v52 = vld [vmem:[%s8505_s7 + $0x10] sm:$0xff] }
 0x2f4   :  { %v3572_v16 = vpop.f32.mrf.mxu1  ;;  %v3684_v21 = vpop.f32.mrf.mxu0 }
 0x2f5   :  { %v3573_v4 = vadd.f32 %v3572_v16, %v3571_v47  ;;  %v3685_v0 = vadd.f32 %v3684_v21, %v3683_v30 }
 0x2f7   :  { %v7980_v18 = vadd.f32 %v3685_v0, %v3573_v4  ;;  %v9803_v4 = vld [vmem:[#allocation166_spill] sm:$0xff] }
 0x312   :  { %v3702_v13 = vpop.f32.mrf.mxu1 }
 0x314   :  { %v3703_v5 = vpop.f32.mrf.mxu1 }
 0x315   :  { %v3704_v49 = vadd.f32 %v3703_v5, %v3702_v13 }
 0x316   :  { %v3705_v43 = vpop.f32.mrf.mxu1  ;;  %v3814_v26 = vpop.f32.mrf.mxu0 }
 0x317   :  { %v2612_v31 = vadd.f32 %v3704_v49, %v9800_v20 }
 0x318   :  { %v3706_v60 = vpop.f32.mrf.mxu1  ;;  %v3815_v15 = vpop.f32.mrf.mxu0 }
 0x319   :  { %v3707_v7 = vadd.f32 %v3706_v60, %v3705_v43  ;;  %v3816_v45 = vadd.f32 %v3815_v15, %v3814_v26  ;;  %v3148_v43 = vpop.permute.xlu1 %3147  ;;  %v8006_v26 = vld [vmem:[%s8506_s6] ss:$0 sm:$0xff]  ;;  %v2984_v60 = vld [vmem:[%s8505_s7 + $0x18] sm:$0xff] }
 0x31a   :  { %v3708_v46 = vpop.f32.mrf.mxu1  ;;  %v3817_v28 = vpop.f32.mrf.mxu0 }
 0x31b   :  { %v2949_v63 = vadd.f32 %v3816_v45, %v2612_v31  ;;  %v2613_v55 = vadd.f32 %v3707_v7, %v9801_v27 }
 0x31c   :  { %v3709_v19 = vpop.f32.mrf.mxu1  ;;  %v3818_v1 = vpop.f32.mrf.mxu0 }
 0x31d   :  { %v3013_v42 = vadd.f32 %v2981_v50, %v2949_v63  ;;  %v3710_v54 = vadd.f32 %v3709_v19, %v3708_v46  ;;  %v3819_v9 = vadd.f32 %v3818_v1, %v3817_v28  ;;  %v9804_v50 = vld [vmem:[#allocation137_spill] sm:$0xff]  ;;  %v3153_v19 = vpop.permute.xlu0 %3152 }
 0x31e   :  { %v3711_v53 = vpop.f32.mrf.mxu1  ;;  %v3820_v40 = vpop.f32.mrf.mxu0 }
 0x31f   :  { %3046 = vst.msk [vmem:[%s8505_s7] sm:$0xff] %vm31_vm2, %v3013_v42  ;;  %v2950_v59 = vadd.f32 %v3819_v9, %v2613_v55  ;;  %v2614_v62 = vadd.f32 %v3710_v54, %v9802_v3  ;;  %v2985_v9 = vld [vmem:[%s8505_s7 + $0x20] sm:$0xff] }
 0x320   :  { %v3712_v39 = vpop.f32.mrf.mxu1  ;;  %v3821_v24 = vpop.f32.mrf.mxu0 }
 0x321   :  { %v3014_v41 = vadd.f32 %v2982_v51, %v2950_v59  ;;  %v3713_v37 = vadd.f32 %v3712_v39, %v3711_v53  ;;  %v3822_v10 = vadd.f32 %v3821_v24, %v3820_v40  ;;  %v3158_v39 = vpop.permute.xlu1 %3157  ;;  %v9805_v24 = vld [vmem:[#allocation125_spill] sm:$0xff] }
 0x322   :  { %v3714_v29 = vpop.f32.mrf.mxu1  ;;  %v3823_v47 = vpop.f32.mrf.mxu0 }
 0x323   :  { %3047 = vst.msk [vmem:[%s8505_s7 + $0x8] sm:$0xff] %vm31_vm2, %v3014_v41  ;;  %v2951_v30 = vadd.f32 %v3822_v10, %v2614_v62  ;;  %v2615_v0 = vadd.f32 %v3713_v37, %v9803_v4 }
 0x324   :  { %v3715_v16 = vpop.f32.mrf.mxu1  ;;  %v3824_v21 = vpop.f32.mrf.mxu0 }
 0x325   :  { %v3015_v13 = vadd.f32 %v2983_v52, %v2951_v30  ;;  %v3716_v5 = vadd.f32 %v3715_v16, %v3714_v29  ;;  %v3825_v49 = vadd.f32 %v3824_v21, %v3823_v47  ;;  %v2986_v47 = vld [vmem:[%s8505_s7 + $0x28] sm:$0xff] }
 0x326   :  { %v3081_v15 = vld [vmem:[%s8505_s7] sm:$0xff]  ;;  %v3717_v20 = vpop.f32.mrf.mxu1  ;;  %v3826_v31 = vpop.f32.mrf.mxu0 }
 0x327   :  { %3048 = vst.msk [vmem:[%s8505_s7 + $0x10] sm:$0xff] %vm31_vm2, %v3015_v13  ;;  %v2952_v7 = vadd.f32 %v3825_v49, %v2615_v0  ;;  %v3305_v45 = vmul.f32 %v3148_v43, %v3081_v15  ;;  %v2616_v46 = vadd.f32 %v3716_v5, %v9804_v50  ;;  %v9806_v13 = vld [vmem:[#allocation167_spill] sm:$0xff] }
 0x328   :  { %v3718_v28 = vpop.f32.mrf.mxu1  ;;  %v3827_v63 = vpop.f32.mrf.mxu0 }
 0x329   :  { %v3016_v1 = vadd.f32 %v2984_v60, %v2952_v7  ;;  %v3344_v27 = vadd.f32 %v8006_v26, %v3305_v45  ;;  %v3719_v55 = vadd.f32 %v3718_v28, %v3717_v20  ;;  %v3828_v42 = vadd.f32 %v3827_v63, %v3826_v31  ;;  %v3163_v7 = vpop.permute.xlu1 %3162  ;;  %v2987_v45 = vld [vmem:[%s8505_s7 + $0x30] sm:$0xff] }
 0x32a   :  { %v3082_v54 = vld [vmem:[%s8505_s7 + $0x8] sm:$0xff]  ;;  %v3720_v51 = vpop.f32.mrf.mxu1  ;;  %v3829_v53 = vpop.f32.mrf.mxu0 }
 0x32b   :  { %v3306_v40 = vmul.f32 %v3153_v19, %v3082_v54  ;;  %3049 = vst.msk [vmem:[%s8505_s7 + $0x18] sm:$0xff] %vm31_vm2, %v3016_v1  ;;  %3376 = vst.msk [vmem:[%s8505_s7] sm:$0xff] %vm31_vm2, %v3344_v27  ;;  %v2953_v59 = vadd.f32 %v3828_v42, %v2616_v46  ;;  %v2617_v3 = vadd.f32 %v3719_v55, %v9805_v24  ;;  %v9807_v1 = vld [vmem:[#allocation23_spill] sm:$0xff]  ;;  %v3168_v54 = vpop.permute.xlu0 %3167 }
 0x32c   :  { %v3721_v62 = vpop.f32.mrf.mxu1  ;;  %v3830_v41 = vpop.f32.mrf.mxu0 }
 0x32d   :  { %v3345_v37 = vadd.f32 %v8006_v26, %v3306_v40  ;;  %v3017_v10 = vadd.f32 %v2985_v9, %v2953_v59  ;;  %v3722_v52 = vadd.f32 %v3721_v62, %v3720_v51  ;;  %v3831_v29 = vadd.f32 %v3830_v41, %v3829_v53 }
 0x32e   :  { %v3083_v30 = vld [vmem:[%s8505_s7 + $0x10] sm:$0xff]  ;;  %v3723_v16 = vpop.f32.mrf.mxu1  ;;  %v3832_v21 = vpop.f32.mrf.mxu0 }
 0x32f   :  { %3377 = vst.msk [vmem:[%s8505_s7 + $0x8] sm:$0xff] %vm31_vm2, %v3345_v37  ;;  %3050 = vst.msk [vmem:[%s8505_s7 + $0x20] sm:$0xff] %vm31_vm2, %v3017_v10  ;;  %v2954_v4 = vadd.f32 %v3831_v29, %v2617_v3  ;;  %v3307_v0 = vmul.f32 %v3158_v39, %v3083_v30  ;;  %v2618_v5 = vadd.f32 %v3722_v52, %v9806_v13  ;;  %v2988_v39 = vld [vmem:[%s8505_s7 + $0x38] sm:$0xff]  ;;  %v9808_v37 = vld [vmem:[#allocation6_spill] sm:$0xff] }
 0x330   :  { %v3724_v49 = vpop.f32.mrf.mxu1  ;;  %v3833_v43 = vpop.f32.mrf.mxu0 }
 0x331   :  { %v3018_v60 = vadd.f32 %v2986_v47, %v2954_v4  ;;  %v3346_v15 = vadd.f32 %v8006_v26, %v3307_v0  ;;  %v3725_v20 = vadd.f32 %v3724_v49, %v3723_v16  ;;  %v3834_v31 = vadd.f32 %v3833_v43, %v3832_v21  ;;  %v3173_v4 = vpop.permute.xlu1 %3172  ;;  %v2989_v0 = vld [vmem:[%s8505_s7 + $0x40] sm:$0xff] }
 0x332   :  { %v3084_v50 = vld [vmem:[%s8505_s7 + $0x18] sm:$0xff]  ;;  %v3726_v46 = vpop.f32.mrf.mxu1  ;;  %v3835_v28 = vpop.f32.mrf.mxu0 }
 0x333   :  { %3051 = vst.msk [vmem:[%s8505_s7 + $0x28] sm:$0xff] %vm31_vm2, %v3018_v60  ;;  %3378 = vst.msk [vmem:[%s8505_s7 + $0x10] sm:$0xff] %vm31_vm2, %v3346_v15  ;;  %v2955_v63 = vadd.f32 %v3834_v31, %v2618_v5  ;;  %v3308_v19 = vmul.f32 %v3163_v7, %v3084_v50  ;;  %v2619_v27 = vadd.f32 %v3725_v20, %v9807_v1  ;;  %v3178_v7 = vpop.permute.xlu0 %3177 }
 0x334   :  { %v3727_v55 = vpop.f32.mrf.mxu1  ;;  %v3836_v42 = vpop.f32.mrf.mxu0 }
 0x335   :  { %v3019_v9 = vadd.f32 %v2987_v45, %v2955_v63  ;;  %v3347_v51 = vadd.f32 %v8006_v26, %v3308_v19  ;;  %v3728_v53 = vadd.f32 %v3727_v55, %v3726_v46  ;;  %v3837_v40 = vadd.f32 %v3836_v42, %v3835_v28  ;;  %v2990_v19 = vld [vmem:[%s8505_s7 + $0x48] sm:$0xff] }
 0x336   :  { %v3085_v59 = vld [vmem:[%s8505_s7 + $0x20] sm:$0xff]  ;;  %v3729_v24 = vpop.f32.mrf.mxu1  ;;  %v3838_v3 = vpop.f32.mrf.mxu0 }
 0x337   :  { %v3309_v62 = vmul.f32 %v3168_v54, %v3085_v59  ;;  %3052 = vst.msk [vmem:[%s8505_s7 + $0x30] sm:$0xff] %vm31_vm2, %v3019_v9  ;;  %3379 = vst.msk [vmem:[%s8505_s7 + $0x18] sm:$0xff] %vm31_vm2, %v3347_v51  ;;  %v2956_v41 = vadd.f32 %v3837_v40, %v2619_v27  ;;  %v2620_v10 = vadd.f32 %v3728_v53, %v9808_v37 }
 0x338   :  { %v3730_v52 = vpop.f32.mrf.mxu1  ;;  %v3839_v29 = vpop.f32.mrf.mxu0 }
 0x339   :  { %v3348_v47 = vadd.f32 %v8006_v26, %v3309_v62  ;;  %v3020_v30 = vadd.f32 %v2988_v39, %v2956_v41  ;;  %v3731_v16 = vadd.f32 %v3730_v52, %v3729_v24  ;;  %v3840_v21 = vadd.f32 %v3839_v29, %v3838_v3  ;;  %v3183_v39 = vpop.permute.xlu1 %3182  ;;  %v2991_v24 = vld [vmem:[%s8505_s7 + $0x50] sm:$0xff] }
 0x33a   :  { %v3086_v13 = vld [vmem:[%s8505_s7 + $0x28] sm:$0xff]  ;;  %v3732_v5 = vpop.f32.mrf.mxu1  ;;  %v3841_v49 = vpop.f32.mrf.mxu0 }
 0x33b   :  { %3380 = vst.msk [vmem:[%s8505_s7 + $0x20] sm:$0xff] %vm31_vm2, %v3348_v47  ;;  %3053 = vst.msk [vmem:[%s8505_s7 + $0x38] sm:$0xff] %vm31_vm2, %v3020_v30  ;;  %v2957_v43 = vadd.f32 %v3840_v21, %v2620_v10  ;;  %v3310_v60 = vmul.f32 %v3173_v4, %v3086_v13  ;;  %v2621_v15 = vadd.f32 %v3731_v16, %v7713_v35  ;;  %v3188_v47 = vpop.permute.xlu0 %3187  ;;  %v2992_v13 = vld [vmem:[%s8505_s7 + $0x58] sm:$0xff] }
 0x33c   :  { %v3733_v20 = vpop.f32.mrf.mxu1  ;;  %v3842_v31 = vpop.f32.mrf.mxu0 }
 0x33d   :  { %v3021_v45 = vadd.f32 %v2989_v0, %v2957_v43  ;;  %v3349_v50 = vadd.f32 %v8006_v26, %v3310_v60  ;;  %v3734_v46 = vadd.f32 %v3733_v20, %v3732_v5  ;;  %v3843_v28 = vadd.f32 %v3842_v31, %v3841_v49 }
 0x33e   :  { %v3087_v63 = vld [vmem:[%s8505_s7 + $0x30] sm:$0xff]  ;;  %v3735_v1 = vpop.f32.mrf.mxu1  ;;  %v3844_v27 = vpop.f32.mrf.mxu0 }
 0x33f   :  { %v3311_v55 = vmul.f32 %v3178_v7, %v3087_v63  ;;  %3054 = vst.msk [vmem:[%s8505_s7 + $0x40] sm:$0xff] %vm31_vm2, %v3021_v45  ;;  %3381 = vst.msk [vmem:[%s8505_s7 + $0x28] sm:$0xff] %vm31_vm2, %v3349_v50  ;;  %v2958_v35 = vadd.f32 %v3843_v28, %v2621_v15  ;;  %v2622_v42 = vadd.f32 %v3734_v46, %v7715_v32  ;;  %v3193_v46 = vpop.permute.xlu1 %3192  ;;  %v2993_v28 = vld [vmem:[%s8505_s7 + $0x60] sm:$0xff] }
 0x340   :  { %v3736_v54 = vpop.f32.mrf.mxu1  ;;  %v3845_v9 = vpop.f32.mrf.mxu0 }
 0x341   :  { %v3350_v51 = vadd.f32 %v8006_v26, %v3311_v55  ;;  %v3022_v53 = vadd.f32 %v2990_v19, %v2958_v35  ;;  %v3737_v40 = vadd.f32 %v3736_v54, %v3735_v1  ;;  %v3846_v59 = vadd.f32 %v3845_v9, %v3844_v27  ;;  %v3198_v54 = vpop.permute.xlu0 %3197 }
 0x342   :  { %v3088_v3 = vld [vmem:[%s8505_s7 + $0x38] sm:$0xff]  ;;  %v3738_v62 = vpop.f32.mrf.mxu1  ;;  %v3847_v41 = vpop.f32.mrf.mxu0 }
 0x343   :  { %3382 = vst.msk [vmem:[%s8505_s7 + $0x30] sm:$0xff] %vm31_vm2, %v3350_v51  ;;  %3055 = vst.msk [vmem:[%s8505_s7 + $0x48] sm:$0xff] %vm31_vm2, %v3022_v53  ;;  %v2959_v32 = vadd.f32 %v3846_v59, %v2622_v42  ;;  %v3312_v37 = vmul.f32 %v3183_v39, %v3088_v3  ;;  %v2623_v10 = vadd.f32 %v3737_v40, %v7732_v23  ;;  %v2994_v39 = vld [vmem:[%s8505_s7 + $0x68] sm:$0xff] }
 0x344   :  { %v3739_v52 = vpop.f32.mrf.mxu1  ;;  %v3848_v29 = vpop.f32.mrf.mxu0 }
 0x345   :  { %v3023_v30 = vadd.f32 %v2991_v24, %v2959_v32  ;;  %v3351_v16 = vadd.f32 %v8006_v26, %v3312_v37  ;;  %v3740_v21 = vadd.f32 %v3739_v52, %v3738_v62  ;;  %v3849_v4 = vadd.f32 %v3848_v29, %v3847_v41 }
 0x346   :  { %v3089_v0 = vld [vmem:[%s8505_s7 + $0x40] sm:$0xff]  ;;  %v3741_v5 = vpop.f32.mrf.mxu1  ;;  %v3850_v49 = vpop.f32.mrf.mxu0 }
 0x347   :  { %v3313_v43 = vmul.f32 %v3188_v47, %v3089_v0  ;;  %3056 = vst.msk [vmem:[%s8505_s7 + $0x50] sm:$0xff] %vm31_vm2, %v3023_v30  ;;  %3383 = vst.msk [vmem:[%s8505_s7 + $0x38] sm:$0xff] %vm31_vm2, %v3351_v16  ;;  %v2960_v23 = vadd.f32 %v3849_v4, %v2623_v10  ;;  %v2624_v60 = vadd.f32 %v3740_v21, %v7735_v8  ;;  %v3203_v30 = vpop.permute.xlu1 %3202  ;;  %v2995_v16 = vld [vmem:[%s8505_s7 + $0x70] sm:$0xff] }
 0x348   :  { %v3742_v15 = vpop.f32.mrf.mxu1  ;;  %v3851_v20 = vpop.f32.mrf.mxu0 }
 0x349   :  { %v3352_v31 = vadd.f32 %v8006_v26, %v3313_v43  ;;  %v3024_v7 = vadd.f32 %v2992_v13, %v2960_v23  ;;  %v3743_v45 = vadd.f32 %v3742_v15, %v3741_v5  ;;  %v3852_v50 = vadd.f32 %v3851_v20, %v3850_v49  ;;  %v3208_v23 = vpop.permute.xlu0 %3207 }
 0x34a   :  { %v3090_v63 = vld [vmem:[%s8505_s7 + $0x48] sm:$0xff]  ;;  %v3744_v19 = vpop.f32.mrf.mxu1  ;;  %v3853_v1 = vpop.f32.mrf.mxu0 }
 0x34b   :  { %3384 = vst.msk [vmem:[%s8505_s7 + $0x40] sm:$0xff] %vm31_vm2, %v3352_v31  ;;  %3057 = vst.msk [vmem:[%s8505_s7 + $0x58] sm:$0xff] %vm31_vm2, %v3024_v7  ;;  %v2961_v8 = vadd.f32 %v3852_v50, %v2624_v60  ;;  %v3314_v27 = vmul.f32 %v3193_v46, %v3090_v63  ;;  %v2625_v55 = vadd.f32 %v3743_v45, %v7875_v38  ;;  %v2996_v45 = vld [vmem:[%s8505_s7 + $0x78] sm:$0xff] }
 0x34c   :  { %v3745_v35 = vpop.f32.mrf.mxu1  ;;  %v3854_v42 = vpop.f32.mrf.mxu0 }
 0x34d   :  { %v3025_v9 = vadd.f32 %v2993_v28, %v2961_v8  ;;  %v3353_v51 = vadd.f32 %v8006_v26, %v3314_v27  ;;  %v3746_v53 = vadd.f32 %v3745_v35, %v3744_v19  ;;  %v3855_v40 = vadd.f32 %v3854_v42, %v3853_v1  ;;  %v3213_v42 = vpop.permute.xlu1 %3212 }
 0x34e   :  { %v3091_v59 = vld [vmem:[%s8505_s7 + $0x50] sm:$0xff]  ;;  %v3747_v24 = vpop.f32.mrf.mxu1  ;;  %v3856_v3 = vpop.f32.mrf.mxu0 }
 0x34f   :  { %v3315_v62 = vmul.f32 %v3198_v54, %v3091_v59  ;;  %3058 = vst.msk [vmem:[%s8505_s7 + $0x60] sm:$0xff] %vm31_vm2, %v3025_v9  ;;  %3385 = vst.msk [vmem:[%s8505_s7 + $0x48] sm:$0xff] %vm31_vm2, %v3353_v51  ;;  %v2962_v38 = vadd.f32 %v3855_v40, %v2625_v55  ;;  %v2626_v41 = vadd.f32 %v3746_v53, %v7880_v34  ;;  %v2997_v54 = vld [vmem:[%s8505_s7 + $0x80] sm:$0xff] }
 0x350   :  { %v3748_v32 = vpop.f32.mrf.mxu1  ;;  %v3857_v37 = vpop.f32.mrf.mxu0 }
 0x351   :  { %v3354_v10 = vadd.f32 %v8006_v26, %v3315_v62  ;;  %v3026_v52 = vadd.f32 %v2994_v39, %v2962_v38  ;;  %v3749_v29 = vadd.f32 %v3748_v32, %v3747_v24  ;;  %v3858_v47 = vadd.f32 %v3857_v37, %v3856_v3  ;;  %v3218_v3 = vpop.permute.xlu0 %3217 }
 0x352   :  { %v3092_v21 = vld [vmem:[%s8505_s7 + $0x58] sm:$0xff]  ;;  %v3750_v4 = vpop.f32.mrf.mxu1  ;;  %v3859_v0 = vpop.f32.mrf.mxu0 }
 0x353   :  { %3386 = vst.msk [vmem:[%s8505_s7 + $0x50] sm:$0xff] %vm31_vm2, %v3354_v10  ;;  %3059 = vst.msk [vmem:[%s8505_s7 + $0x68] sm:$0xff] %vm31_vm2, %v3026_v52  ;;  %v2963_v34 = vadd.f32 %v3858_v47, %v2626_v41  ;;  %v3316_v13 = vmul.f32 %v3203_v30, %v3092_v21  ;;  %v2627_v5 = vadd.f32 %v3749_v29, %v7888_v12  ;;  %v2998_v10 = vld [vmem:[%s8505_s7 + $0x88] sm:$0xff] }
 0x354   :  { %v3751_v49 = vpop.f32.mrf.mxu1  ;;  %v3860_v43 = vpop.f32.mrf.mxu0 }
 0x355   :  { %v3027_v60 = vadd.f32 %v2995_v16, %v2963_v34  ;;  %v3355_v15 = vadd.f32 %v8006_v26, %v3316_v13  ;;  %v3752_v20 = vadd.f32 %v3751_v49, %v3750_v4  ;;  %v3861_v31 = vadd.f32 %v3860_v43, %v3859_v0  ;;  %v2999_v49 = vld [vmem:[%s8505_s7 + $0x90] sm:$0xff] }
 0x356   :  { %v3093_v7 = vld [vmem:[%s8505_s7 + $0x60] sm:$0xff]  ;;  %v3753_v50 = vpop.f32.mrf.mxu1  ;;  %v3862_v46 = vpop.f32.mrf.mxu0 }
 0x357   :  { %v3317_v28 = vmul.f32 %v3208_v23, %v3093_v7  ;;  %3060 = vst.msk [vmem:[%s8505_s7 + $0x70] sm:$0xff] %vm31_vm2, %v3027_v60  ;;  %3387 = vst.msk [vmem:[%s8505_s7 + $0x58] sm:$0xff] %vm31_vm2, %v3355_v15  ;;  %v2964_v12 = vadd.f32 %v3861_v31, %v2627_v5  ;;  %v2628_v63 = vadd.f32 %v3752_v20, %v7896_v11  ;;  %v3223_v5 = vpop.permute.xlu1 %3222 }
 0x358   :  { %v3754_v19 = vpop.f32.mrf.mxu1  ;;  %v3863_v1 = vpop.f32.mrf.mxu0 }
 0x359   :  { %v3356_v8 = vadd.f32 %v8006_v26, %v3317_v28  ;;  %v3028_v27 = vadd.f32 %v2996_v45, %v2964_v12  ;;  %v3755_v55 = vadd.f32 %v3754_v19, %v3753_v50  ;;  %v3864_v35 = vadd.f32 %v3863_v1, %v3862_v46  ;;  %v3228_v45 = vpop.permute.xlu0 %3227  ;;  %v3000_v19 = vld [vmem:[%s8505_s7 + $0x98] sm:$0xff] }
 0x35a   :  { %v3094_v9 = vld [vmem:[%s8505_s7 + $0x68] sm:$0xff]  ;;  %v3756_v51 = vpop.f32.mrf.mxu1  ;;  %v3865_v53 = vpop.f32.mrf.mxu0 }
 0x35b   :  { %3388 = vst.msk [vmem:[%s8505_s7 + $0x60] sm:$0xff] %vm31_vm2, %v3356_v8  ;;  %3061 = vst.msk [vmem:[%s8505_s7 + $0x78] sm:$0xff] %vm31_vm2, %v3028_v27  ;;  %v2965_v11 = vadd.f32 %v3864_v35, %v2628_v63  ;;  %v3318_v40 = vmul.f32 %v3213_v42, %v3094_v9  ;;  %v2629_v59 = vadd.f32 %v3755_v55, %v7907_v44 }
 0x35c   :  { %v3757_v39 = vpop.f32.mrf.mxu1  ;;  %v3866_v24 = vpop.f32.mrf.mxu0 }
 0x35d   :  { %v3029_v62 = vadd.f32 %v2997_v54, %v2965_v11  ;;  %v3357_v38 = vadd.f32 %v8006_v26, %v3318_v40  ;;  %v3758_v41 = vadd.f32 %v3757_v39, %v3756_v51  ;;  %v3867_v32 = vadd.f32 %v3866_v24, %v3865_v53  ;;  %v3233_v11 = vpop.permute.xlu1 %3232  ;;  %v3001_v40 = vld [vmem:[%s8505_s7 + $0xa0] sm:$0xff] }
 0x35e   :  { %v3095_v37 = vld [vmem:[%s8505_s7 + $0x70] sm:$0xff]  ;;  %v3759_v52 = vpop.f32.mrf.mxu1  ;;  %v3868_v29 = vpop.f32.mrf.mxu0 }
 0x35f   :  { %v3319_v47 = vmul.f32 %v3218_v3, %v3095_v37  ;;  %3062 = vst.msk [vmem:[%s8505_s7 + $0x80] sm:$0xff] %vm31_vm2, %v3029_v62  ;;  %3389 = vst.msk [vmem:[%s8505_s7 + $0x68] sm:$0xff] %vm31_vm2, %v3357_v38  ;;  %v2966_v44 = vadd.f32 %v3867_v32, %v2629_v59  ;;  %v2630_v30 = vadd.f32 %v3758_v41, %v7918_v6  ;;  %v3238_v32 = vpop.permute.xlu0 %3237 }
 0x360   :  { %v3760_v16 = vpop.f32.mrf.mxu1  ;;  %v3869_v21 = vpop.f32.mrf.mxu0 }
 0x361   :  { %v3358_v4 = vadd.f32 %v8006_v26, %v3319_v47  ;;  %v3030_v0 = vadd.f32 %v2998_v10, %v2966_v44  ;;  %v3761_v34 = vadd.f32 %v3760_v16, %v3759_v52  ;;  %v3870_v13 = vadd.f32 %v3869_v21, %v3868_v29  ;;  %v3002_v44 = vld [vmem:[%s8505_s7 + $0xa8] sm:$0xff] }
 0x362   :  { %v3096_v43 = vld [vmem:[%s8505_s7 + $0x78] sm:$0xff]  ;;  %v3762_v23 = vpop.f32.mrf.mxu1  ;;  %v3871_v60 = vpop.f32.mrf.mxu0 }
 0x363   :  { %3390 = vst.msk [vmem:[%s8505_s7 + $0x70] sm:$0xff] %vm31_vm2, %v3358_v4  ;;  %3063 = vst.msk [vmem:[%s8505_s7 + $0x88] sm:$0xff] %vm31_vm2, %v3030_v0  ;;  %v2967_v6 = vadd.f32 %v3870_v13, %v2630_v30  ;;  %v3320_v15 = vmul.f32 %v3223_v5, %v3096_v43  ;;  %v2631_v20 = vadd.f32 %v3761_v34, %v7926_v14 }
 0x364   :  { %v3763_v31 = vpop.f32.mrf.mxu1  ;;  %v3872_v7 = vpop.f32.mrf.mxu0 }
 0x365   :  { %v3031_v50 = vadd.f32 %v2999_v49, %v2967_v6  ;;  %v3359_v46 = vadd.f32 %v8006_v26, %v3320_v15  ;;  %v3764_v28 = vadd.f32 %v3763_v31, %v3762_v23  ;;  %v3873_v12 = vadd.f32 %v3872_v7, %v3871_v60  ;;  %v3243_v23 = vpop.permute.xlu1 %3242  ;;  %v3003_v60 = vld [vmem:[%s8505_s7 + $0xb0] sm:$0xff] }
 0x366   :  { %v3097_v63 = vld [vmem:[%s8505_s7 + $0x80] sm:$0xff]  ;;  %v3765_v1 = vpop.f32.mrf.mxu1  ;;  %v3874_v8 = vpop.f32.mrf.mxu0 }
 0x367   :  { %v3321_v27 = vmul.f32 %v3228_v45, %v3097_v63  ;;  %3064 = vst.msk [vmem:[%s8505_s7 + $0x90] sm:$0xff] %vm31_vm2, %v3031_v50  ;;  %3391 = vst.msk [vmem:[%s8505_s7 + $0x78] sm:$0xff] %vm31_vm2, %v3359_v46  ;;  %v2968_v14 = vadd.f32 %v3873_v12, %v2631_v20  ;;  %v2632_v55 = vadd.f32 %v3764_v28, %v7934_v25  ;;  %v3248_v46 = vpop.permute.xlu0 %3247 }
 0x368   :  { %v3766_v35 = vpop.f32.mrf.mxu1  ;;  %v3875_v42 = vpop.f32.mrf.mxu0 }
 0x369   :  { %v3360_v54 = vadd.f32 %v8006_v26, %v3321_v27  ;;  %v3032_v9 = vadd.f32 %v3000_v19, %v2968_v14  ;;  %v3767_v51 = vadd.f32 %v3766_v35, %v3765_v1  ;;  %v3876_v53 = vadd.f32 %v3875_v42, %v3874_v8  ;;  %v3004_v8 = vld [vmem:[%s8505_s7 + $0xb8] sm:$0xff] }
 0x36a   :  { %v3098_v59 = vld [vmem:[%s8505_s7 + $0x88] sm:$0xff]  ;;  %v3768_v39 = vpop.f32.mrf.mxu1  ;;  %v3877_v24 = vpop.f32.mrf.mxu0 }
 0x36b   :  { %3392 = vst.msk [vmem:[%s8505_s7 + $0x80] sm:$0xff] %vm31_vm2, %v3360_v54  ;;  %3065 = vst.msk [vmem:[%s8505_s7 + $0x98] sm:$0xff] %vm31_vm2, %v3032_v9  ;;  %v2969_v25 = vadd.f32 %v3876_v53, %v2632_v55  ;;  %v3322_v3 = vmul.f32 %v3233_v11, %v3098_v59  ;;  %v2633_v62 = vadd.f32 %v3767_v51, %v7942_v61  ;;  %v3005_v59 = vld [vmem:[%s8505_s7 + $0xc0] sm:$0xff] }
 0x36c   :  { %v3769_v38 = vpop.f32.mrf.mxu1  ;;  %v3878_v41 = vpop.f32.mrf.mxu0 }
 0x36d   :  { %v3033_v37 = vadd.f32 %v3001_v40, %v2969_v25  ;;  %v3361_v10 = vadd.f32 %v8006_v26, %v3322_v3  ;;  %v3770_v52 = vadd.f32 %v3769_v38, %v3768_v39  ;;  %v3879_v29 = vadd.f32 %v3878_v41, %v3877_v24  ;;  %v3253_v40 = vpop.permute.xlu1 %3252 }
 0x36e   :  { %v3099_v47 = vld [vmem:[%s8505_s7 + $0x90] sm:$0xff]  ;;  %v3771_v30 = vpop.f32.mrf.mxu1  ;;  %v3880_v16 = vpop.f32.mrf.mxu0 }
 0x36f   :  { %v3323_v21 = vmul.f32 %v3238_v32, %v3099_v47  ;;  %3066 = vst.msk [vmem:[%s8505_s7 + $0xa0] sm:$0xff] %vm31_vm2, %v3033_v37  ;;  %3393 = vst.msk [vmem:[%s8505_s7 + $0x88] sm:$0xff] %vm31_vm2, %v3361_v10  ;;  %v2970_v61 = vadd.f32 %v3879_v29, %v2633_v62  ;;  %v2634_v4 = vadd.f32 %v3770_v52, %v7950_v22  ;;  %v3258_v32 = vpop.permute.xlu0 %3257 }
 0x370   :  { %v3772_v0 = vpop.f32.mrf.mxu1  ;;  %v3881_v34 = vpop.f32.mrf.mxu0 }
 0x371   :  { %v3362_v13 = vadd.f32 %v8006_v26, %v3323_v21  ;;  %v3034_v5 = vadd.f32 %v3002_v44, %v2970_v61  ;;  %v3773_v49 = vadd.f32 %v3772_v0, %v3771_v30  ;;  %v3882_v43 = vadd.f32 %v3881_v34, %v3880_v16  ;;  %v3006_v44 = vld [vmem:[%s8505_s7 + $0xc8] sm:$0xff] }
 0x372   :  { %v3100_v6 = vld [vmem:[%s8505_s7 + $0x98] sm:$0xff]  ;;  %v3774_v15 = vpop.f32.mrf.mxu1  ;;  %v3883_v20 = vpop.f32.mrf.mxu0 }
 0x373   :  { %3394 = vst.msk [vmem:[%s8505_s7 + $0x90] sm:$0xff] %vm31_vm2, %v3362_v13  ;;  %3067 = vst.msk [vmem:[%s8505_s7 + $0xa8] sm:$0xff] %vm31_vm2, %v3034_v5  ;;  %v2971_v22 = vadd.f32 %v3882_v43, %v2634_v4  ;;  %v3324_v31 = vmul.f32 %v3243_v23, %v3100_v6  ;;  %v2635_v7 = vadd.f32 %v3773_v49, %v7958_v57  ;;  %v3263_v43 = vpop.permute.xlu1 %3262  ;;  %v3007_v23 = vld [vmem:[%s8505_s7 + $0xd0] sm:$0xff] }
 0x374   :  { %v3775_v45 = vpop.f32.mrf.mxu1  ;;  %v3884_v50 = vpop.f32.mrf.mxu0 }
 0x375   :  { %v3035_v28 = vadd.f32 %v3003_v60, %v2971_v22  ;;  %v3363_v12 = vadd.f32 %v8006_v26, %v3324_v31  ;;  %v3776_v63 = vadd.f32 %v3775_v45, %v3774_v15  ;;  %v3885_v19 = vadd.f32 %v3884_v50, %v3883_v20  ;;  %v3268_v45 = vpop.permute.xlu0 %3267 }
 0x376   :  { %v3101_v1 = vld [vmem:[%s8505_s7 + $0xa0] sm:$0xff]  ;;  %v3777_v27 = vpop.f32.mrf.mxu1  ;;  %v3886_v14 = vpop.f32.mrf.mxu0 }
 0x377   :  { %v3325_v55 = vmul.f32 %v3248_v46, %v3101_v1  ;;  %3068 = vst.msk [vmem:[%s8505_s7 + $0xb0] sm:$0xff] %vm31_vm2, %v3035_v28  ;;  %3395 = vst.msk [vmem:[%s8505_s7 + $0x98] sm:$0xff] %vm31_vm2, %v3363_v12  ;;  %v2972_v57 = vadd.f32 %v3885_v19, %v2635_v7  ;;  %v2636_v35 = vadd.f32 %v3776_v63, %v7963_v48  ;;  %v3008_v19 = vld [vmem:[%s8505_s7 + $0xd8] sm:$0xff] }
 0x378   :  { %v3778_v42 = vpop.f32.mrf.mxu1  ;;  %v3887_v54 = vpop.f32.mrf.mxu0 }
 0x379   :  { %v3364_v9 = vadd.f32 %v8006_v26, %v3325_v55  ;;  %v3036_v51 = vadd.f32 %v3004_v8, %v2972_v57  ;;  %v3779_v53 = vadd.f32 %v3778_v42, %v3777_v27  ;;  %v3888_v11 = vadd.f32 %v3887_v54, %v3886_v14 }
 0x37a   :  { %v3102_v39 = vld [vmem:[%s8505_s7 + $0xa8] sm:$0xff]  ;;  %v3780_v24 = vpop.f32.mrf.mxu1  ;;  %v3889_v25 = vpop.f32.mrf.mxu0 }
 0x37b   :  { %3396 = vst.msk [vmem:[%s8505_s7 + $0xa0] sm:$0xff] %vm31_vm2, %v3364_v9  ;;  %3069 = vst.msk [vmem:[%s8505_s7 + $0xb8] sm:$0xff] %vm31_vm2, %v3036_v51  ;;  %v2973_v48 = vadd.f32 %v3888_v11, %v2636_v35  ;;  %v3326_v3 = vmul.f32 %v3253_v40, %v3102_v39  ;;  %v2637_v62 = vadd.f32 %v3779_v53, %v7968_v17  ;;  %v3273_v51 = vpop.permute.xlu1 %3272  ;;  %v3009_v53 = vld [vmem:[%s8505_s7 + $0xe0] sm:$0xff] }
 0x37c   :  { %v3781_v38 = vpop.f32.mrf.mxu1  ;;  %v3890_v41 = vpop.f32.mrf.mxu0 }
 0x37d   :  { %v3037_v37 = vadd.f32 %v3005_v59, %v2973_v48  ;;  %v3365_v10 = vadd.f32 %v8006_v26, %v3326_v3  ;;  %v3782_v52 = vadd.f32 %v3781_v38, %v3780_v24  ;;  %v3891_v29 = vadd.f32 %v3890_v41, %v3889_v25  ;;  %v3278_v3 = vpop.permute.xlu0 %3277 }
 0x37e   :  { %v3103_v47 = vld [vmem:[%s8505_s7 + $0xb0] sm:$0xff]  ;;  %v3783_v30 = vpop.f32.mrf.mxu1  ;;  %v3892_v16 = vpop.f32.mrf.mxu0 }
 0x37f   :  { %v3327_v21 = vmul.f32 %v3258_v32, %v3103_v47  ;;  %3070 = vst.msk [vmem:[%s8505_s7 + $0xc0] sm:$0xff] %vm31_vm2, %v3037_v37  ;;  %3397 = vst.msk [vmem:[%s8505_s7 + $0xa8] sm:$0xff] %vm31_vm2, %v3365_v10  ;;  %v2974_v17 = vadd.f32 %v3891_v29, %v2637_v62  ;;  %v2638_v61 = vadd.f32 %v3782_v52, %v7970_v33  ;;  %v3010_v10 = vld [vmem:[%s8505_s7 + $0xe8] sm:$0xff] }
 0x380   :  { %v3784_v4 = vpop.f32.mrf.mxu1  ;;  %v3893_v0 = vpop.f32.mrf.mxu0 }
 0x381   :  { %v3366_v34 = vadd.f32 %v8006_v26, %v3327_v21  ;;  %v3038_v13 = vadd.f32 %v3006_v44, %v2974_v17  ;;  %v3785_v5 = vadd.f32 %v3784_v4, %v3783_v30  ;;  %v3894_v49 = vadd.f32 %v3893_v0, %v3892_v16  ;;  %v3011_v0 = vld [vmem:[%s8505_s7 + $0xf0] sm:$0xff] }
 0x382   :  { %v3104_v60 = vld [vmem:[%s8505_s7 + $0xb8] sm:$0xff]  ;;  %v3786_v6 = vpop.f32.mrf.mxu1  ;;  %v3895_v15 = vpop.f32.mrf.mxu0 }
 0x383   :  { %3398 = vst.msk [vmem:[%s8505_s7 + $0xb0] sm:$0xff] %vm31_vm2, %v3366_v34  ;;  %3071 = vst.msk [vmem:[%s8505_s7 + $0xc8] sm:$0xff] %vm31_vm2, %v3038_v13  ;;  %v2975_v33 = vadd.f32 %v3894_v49, %v2638_v61  ;;  %v3328_v20 = vmul.f32 %v3263_v43, %v3104_v60  ;;  %v2639_v22 = vadd.f32 %v3785_v5, %v7972_v56  ;;  %v3283_v34 = vpop.permute.xlu1 %3282 }
 0x384   :  { %v3787_v31 = vpop.f32.mrf.mxu1  ;;  %v3896_v7 = vpop.f32.mrf.mxu0 }
 0x385   :  { %v3039_v50 = vadd.f32 %v3007_v23, %v2975_v33  ;;  %v3367_v46 = vadd.f32 %v8006_v26, %v3328_v20  ;;  %v3788_v28 = vadd.f32 %v3787_v31, %v3786_v6  ;;  %v3897_v12 = vadd.f32 %v3896_v7, %v3895_v15  ;;  %v3288_v33 = vpop.permute.xlu0 %3287 }
 0x386   :  { %v3105_v63 = vld [vmem:[%s8505_s7 + $0xc0] sm:$0xff]  ;;  %v3789_v1 = vpop.f32.mrf.mxu1  ;;  %v3898_v8 = vpop.f32.mrf.mxu0 }
 0x387   :  { %v3329_v27 = vmul.f32 %v3268_v45, %v3105_v63  ;;  %3072 = vst.msk [vmem:[%s8505_s7 + $0xd0] sm:$0xff] %vm31_vm2, %v3039_v50  ;;  %3399 = vst.msk [vmem:[%s8505_s7 + $0xb8] sm:$0xff] %vm31_vm2, %v3367_v46  ;;  %v2976_v56 = vadd.f32 %v3897_v12, %v2639_v22  ;;  %v2640_v14 = vadd.f32 %v3788_v28, %v7974_v36  ;;  %v3012_v22 = vld [vmem:[%s8505_s7 + $0xf8] sm:$0xff]  ;;  %v3293_v50 = vpop.permute.xlu1 %3292 }
 0x388   :  { %v3790_v55 = vpop.f32.mrf.mxu1  ;;  %v3899_v57 = vpop.f32.mrf.mxu0 }
 0x389   :  { %v3368_v35 = vadd.f32 %v8006_v26, %v3329_v27  ;;  %v3040_v42 = vadd.f32 %v3008_v19, %v2976_v56  ;;  %v3791_v54 = vadd.f32 %v3790_v55, %v3789_v1  ;;  %v3900_v9 = vadd.f32 %v3899_v57, %v3898_v8  ;;  %v3298_v63 = vpop.permute.xlu0 %3297 }
 0x38a   :  { %v3106_v11 = vld [vmem:[%s8505_s7 + $0xc8] sm:$0xff]  ;;  %v3792_v40 = vpop.f32.mrf.mxu1  ;;  %v3901_v59 = vpop.f32.mrf.mxu0 }
 0x38b   :  { %3400 = vst.msk [vmem:[%s8505_s7 + $0xc0] sm:$0xff] %vm31_vm2, %v3368_v35  ;;  %3073 = vst.msk [vmem:[%s8505_s7 + $0xd8] sm:$0xff] %vm31_vm2, %v3040_v42  ;;  %v2977_v36 = vadd.f32 %v3900_v9, %v2640_v14  ;;  %v3330_v39 = vmul.f32 %v3273_v51, %v3106_v11  ;;  %v2641_v24 = vadd.f32 %v3791_v54, %v7976_v2  ;;  %v3303_v27 = vpop.permute.xlu1 %3302 }
 0x38c   :  { %v3793_v25 = vpop.f32.mrf.mxu1  ;;  %v3902_v48 = vpop.f32.mrf.mxu0 }
 0x38d   :  { %v3041_v62 = vadd.f32 %v3009_v53, %v2977_v36  ;;  %v3369_v38 = vadd.f32 %v8006_v26, %v3330_v39  ;;  %v3794_v41 = vadd.f32 %v3793_v25, %v3792_v40  ;;  %v3903_v32 = vadd.f32 %v3902_v48, %v3901_v59 }
 0x38e   :  { %v3107_v37 = vld [vmem:[%s8505_s7 + $0xd0] sm:$0xff]  ;;  %v3795_v52 = vpop.f32.mrf.mxu1  ;;  %v3904_v29 = vpop.f32.mrf.mxu0 }
 0x38f   :  { %v3331_v47 = vmul.f32 %v3278_v3, %v3107_v37  ;;  %3074 = vst.msk [vmem:[%s8505_s7 + $0xe0] sm:$0xff] %vm31_vm2, %v3041_v62  ;;  %3401 = vst.msk [vmem:[%s8505_s7 + $0xc8] sm:$0xff] %vm31_vm2, %v3369_v38  ;;  %v2978_v2 = vadd.f32 %v3903_v32, %v2641_v24  ;;  %v2642_v44 = vadd.f32 %v3794_v41, %v7978_v58 }
 0x390   :  { %v3796_v30 = vpop.f32.mrf.mxu1  ;;  %v3905_v16 = vpop.f32.mrf.mxu0 }
 0x391   :  { %v3370_v21 = vadd.f32 %v8006_v26, %v3331_v47  ;;  %v3042_v17 = vadd.f32 %v3010_v10, %v2978_v2  ;;  %v3797_v61 = vadd.f32 %v3796_v30, %v3795_v52  ;;  %v3906_v4 = vadd.f32 %v3905_v16, %v3904_v29 }
 0x392   :  { %v3108_v13 = vld [vmem:[%s8505_s7 + $0xd8] sm:$0xff]  ;;  %v3907_v5 = vpop.f32.mrf.mxu0 }
 0x393   :  { %3402 = vst.msk [vmem:[%s8505_s7 + $0xd0] sm:$0xff] %vm31_vm2, %v3370_v21  ;;  %3075 = vst.msk [vmem:[%s8505_s7 + $0xe8] sm:$0xff] %vm31_vm2, %v3042_v17  ;;  %v2979_v58 = vadd.f32 %v3906_v4, %v2642_v44  ;;  %v3332_v49 = vmul.f32 %v3283_v34, %v3108_v13  ;;  %v2643_v23 = vadd.f32 %v3797_v61, %v7980_v18 }
 0x394   :  { %v3908_v43 = vpop.f32.mrf.mxu0 }
 0x395   :  { %v3043_v60 = vadd.f32 %v3011_v0, %v2979_v58  ;;  %v3371_v6 = vadd.f32 %v8006_v26, %v3332_v49  ;;  %v3909_v15 = vadd.f32 %v3908_v43, %v3907_v5 }
 0x396   :  { %v3109_v20 = vld [vmem:[%s8505_s7 + $0xe0] sm:$0xff] }
 0x397   :  { %v3333_v31 = vmul.f32 %v3288_v33, %v3109_v20  ;;  %3076 = vst.msk [vmem:[%s8505_s7 + $0xf0] sm:$0xff] %vm31_vm2, %v3043_v60  ;;  %3403 = vst.msk [vmem:[%s8505_s7 + $0xd8] sm:$0xff] %vm31_vm2, %v3371_v6  ;;  %v2980_v18 = vadd.f32 %v3909_v15, %v2643_v23 }
 0x399   :  { %v3372_v7 = vadd.f32 %v8006_v26, %v3333_v31  ;;  %v3044_v45 = vadd.f32 %v3012_v22, %v2980_v18 }
 0x39a   :  { %v3110_v46 = vld [vmem:[%s8505_s7 + $0xe8] sm:$0xff] }
 0x39b   :  { %3404 = vst.msk [vmem:[%s8505_s7 + $0xe0] sm:$0xff] %vm31_vm2, %v3372_v7  ;;  %3077 = vst.msk [vmem:[%s8505_s7 + $0xf8] sm:$0xff] %vm31_vm2, %v3044_v45  ;;  %v3334_v28 = vmul.f32 %v3293_v50, %v3110_v46 }
 0x39d   :  { %v3373_v12 = vadd.f32 %v8006_v26, %v3334_v28 }
 0x39e   :  { %v3111_v19 = vld [vmem:[%s8505_s7 + $0xf0] sm:$0xff] }
 0x39f   :  { %v3335_v1 = vmul.f32 %v3298_v63, %v3111_v19  ;;  %3405 = vst.msk [vmem:[%s8505_s7 + $0xe8] sm:$0xff] %vm31_vm2, %v3373_v12 }
 0x3a1   :  { %v3374_v8 = vadd.f32 %v8006_v26, %v3335_v1 }
 0x3a2   :  { %v3112_v56 = vld [vmem:[%s8505_s7 + $0xf8] sm:$0xff] }
 0x3a3   :  { %3406 = vst.msk [vmem:[%s8505_s7 + $0xf0] sm:$0xff] %vm31_vm2, %v3374_v8  ;;  %v3336_v14 = vmul.f32 %v3303_v27, %v3112_v56 }
 0x3a5   :  { %v3375_v55 = vadd.f32 %v8006_v26, %v3336_v14 }
 0x3a7   :  { %3407 = vst.msk [vmem:[%s8505_s7 + $0xf8] sm:$0xff] %vm31_vm2, %v3375_v55 }

</bundles_post_ra>
